<compile_context>
chip_gen: v5e
topology: v5e:2x2
jax: 0.10.0
libtpu: 0.0.40
codegen_flags: <defaults>
</compile_context>

<pallas_src>
import functools

import jax
import jax.numpy as jnp
import numpy as np
from jax.experimental import pallas as pl
from jax.experimental.pallas import tpu as pltpu


# ---------------------------------------------------------------------------
# Fused kernel: channel attention -> channel gating -> spatial pooling ->
#               7x7 spatial conv -> sigmoid -> spatial gating.
# ---------------------------------------------------------------------------
def _lesion_attention_kernel(x_ref, w1_ref, w2_ref, wsp_ref, y_ref,
                             sp_pad_ref, att_ref, *, H, W, ksize):
    # x_ref      : (1, C, HW) f32   one batch element, HW on the lane axis
    # w1_ref     : (Cr, C)    f32   first 1x1-conv weight (matrix form)
    # w2_ref     : (C, Cr)    f32   second 1x1-conv weight
    # wsp_ref    : (2*k*k,)   f32   flattened 7x7 conv weight (c, ky, kx), in SMEM
    # y_ref      : (1, C, HW) f32   output block
    # sp_pad_ref : VMEM (2, H+2P, W+2P) scratch -- zero-padded spatial planes
    # att_ref    : VMEM (1, HW)         scratch -- flattened spatial attention
    P = (ksize - 1) // 2

    x = x_ref[0]                                      # (C, HW)

    # ---- channel attention (avg/max pool over HW -> shared MLP -> sigmoid) ----
    avg = jnp.mean(x, axis=1, keepdims=True)          # (C, 1)  == AdaptiveAvgPool2d(1)
    mx = jnp.max(x, axis=1, keepdims=True)            # (C, 1)  == AdaptiveMaxPool2d(1)

    # Stack into one (C, 2) operand so the shared MLP runs once (fewer MXU pushes).
    col_idx = jax.lax.broadcasted_iota(jnp.int32, (avg.shape[0], 2), 1)
    pooled = jnp.where(col_idx == 0, avg, mx)         # (C, 2): col 0 = avg, col 1 = max

    h = jnp.dot(w1_ref[...], pooled, preferred_element_type=jnp.float32)   # (Cr, 2)
    h = jnp.maximum(h, 0.0)                                                 # ReLU
    o = jnp.dot(w2_ref[...], h, preferred_element_type=jnp.float32)         # (C, 2)
    channel_att = jax.nn.sigmoid(o[:, 0:1] + o[:, 1:2])                     # (C, 1)

    xc = x * channel_att                              # (C, HW) lane-dense channel gating

    # ---- spatial pooling (mean/max over C) into the padded VMEM planes --------
    mean_c = jnp.mean(xc, axis=0, keepdims=True)      # (1, HW)
    max_c = jnp.max(xc, axis=0, keepdims=True)        # (1, HW)

    sp_pad_ref[...] = jnp.zeros_like(sp_pad_ref)      # zero the (tiny) padded border
    for i in range(H):
        lo = i * W
        sp_pad_ref[0, P + i:P + i + 1, P:P + W] = mean_c[:, lo:lo + W]
        sp_pad_ref[1, P + i:P + i + 1, P:P + W] = max_c[:, lo:lo + W]

    # ---- 7x7 conv (cross-correlation, zero padding), unrolled -----------------
    # Lane shift (dx) hoisted out of the dy loop: 2*k shifted planes, reused k times.
    acc = jnp.zeros((H, W), jnp.float32)
    for c in range(2):
        for dx in range(ksize):
            col = sp_pad_ref[c, :, dx:dx + W]         # (H+2P, W): one lane shift
            for dy in range(ksize):
                w = wsp_ref[c * ksize * ksize + dy * ksize + dx]   # scalar from SMEM
                acc = acc + w * col[dy:dy + H, :]     # sublane shift + FMA
    spatial_att = jax.nn.sigmoid(acc)                 # (H, W)

    # Flatten (H, W) -> (1, HW) through scratch (avoids an in-register reshape).
    for i in range(H):
        att_ref[:, i * W:(i + 1) * W] = spatial_att[i:i + 1, :]

    # ---- final spatial gating: single lane-dense store -------------------------
    y_ref[0] = xc * att_ref[...]                      # (C, HW) * (1, HW)


# ---------------------------------------------------------------------------
# Wrapper (public API stays NCHW, matching the PyTorch module)
# ---------------------------------------------------------------------------
def lesion_attention(x, w1, w2, w_spatial, *, kernel_size=7):
    """x: (B, C, H, W) f32. w1: (C//r, C). w2: (C, C//r). w_spatial: (2, k, k)."""
    B, C, H, W = x.shape
    Cr = w1.shape[0]
    HW = H * W
    P = (kernel_size - 1) // 2

    # Free reshape only (contiguous NCHW -> (B, C, H*W)); no transpose, no pad.
    x_flat = x.reshape(B, C, HW).astype(jnp.float32)

    kernel = functools.partial(_lesion_attention_kernel, H=H, W=W, ksize=kernel_size)

    # VMEM budget: double-buffered in/out blocks + small scratch, with margin.
    block_bytes = C * HW * 4
    vmem_bytes = 4 * block_bytes + 4 * (2 * (H + 2 * P) * (W + 2 * P) + HW + 2 * C * Cr)
    vmem_limit = int(min(max(2 * vmem_bytes, 8 << 20), 32 << 20))

    cost = pl.CostEstimate(
        flops=B * (4 * C * HW + 4 * kernel_size * kernel_size * HW + 8 * C * Cr + 2 * HW),
        transcendentals=B * (C + HW),
        bytes_accessed=2 * B * C * HW * 4 + (2 * C * Cr + 2 * kernel_size * kernel_size) * 4,
    )

    y_flat = pl.pallas_call(
        kernel,
        out_shape=jax.ShapeDtypeStruct((B, C, HW), jnp.float32),
        grid=(B,),
        in_specs=[
            pl.BlockSpec((1, C, HW), lambda b: (b, 0, 0)),
            pl.BlockSpec((Cr, C), lambda b: (0, 0)),
            pl.BlockSpec((C, Cr), lambda b: (0, 0)),
            pl.BlockSpec(memory_space=pltpu.MemorySpace.SMEM),
        ],
        out_specs=pl.BlockSpec((1, C, HW), lambda b: (b, 0, 0)),
        scratch_shapes=[
            pltpu.VMEM((2, H + 2 * P, W + 2 * P), jnp.float32),
            pltpu.VMEM((1, HW), jnp.float32),
        ],
        compiler_params=pltpu.CompilerParams(
            dimension_semantics=("parallel",),       # batches are independent (v7x megacore)
            vmem_limit_bytes=vmem_limit,
        ),
        cost_estimate=cost,
    )(x_flat, w1.astype(jnp.float32), w2.astype(jnp.float32),
      w_spatial.reshape(-1).astype(jnp.float32))

    return y_flat.reshape(B, C, H, W)


# ---------------------------------------------------------------------------
# Pure-JAX reference (mirrors the PyTorch forward exactly)
# ---------------------------------------------------------------------------
def reference(x, w1, w2, w_spatial, *, kernel_size=7):
    avg = jnp.mean(x, axis=(2, 3))                     # (B, C)
    mx = jnp.max(x, axis=(2, 3))                       # (B, C)

    def mlp(v):
        h = jax.nn.relu(v @ w1.T)
        return h @ w2.T

    channel_att = jax.nn.sigmoid(mlp(avg) + mlp(mx))[:, :, None, None]
    xc = x * channel_att
    avg_sp = jnp.mean(xc, axis=1, keepdims=True)
    max_sp = jnp.max(xc, axis=1, keepdims=True)
    sp_in = jnp.concatenate([avg_sp, max_sp], axis=1)  # (B, 2, H, W)
    pad = (kernel_size - 1) // 2
    conv = jax.lax.conv_general_dilated(
        sp_in, w_spatial[None],                        # OIHW = (1, 2, k, k)
        window_strides=(1, 1), padding=[(pad, pad), (pad, pad)],
        dimension_numbers=("NCHW", "OIHW", "NCHW"))
    spatial_att = jax.nn.sigmoid(conv)
    return xc * spatial_att


if __name__ == "__main__":
    B, C, H, W = 2, 16, 16, 16          # in_channels=16, reduction_ratio=8 -> hidden=2
    reduction = 8
    ksize = 7
    Cr = C // reduction

    key = jax.random.PRNGKey(0)
    k1, k2, k3, k4 = jax.random.split(key, 4)
    x = jax.random.normal(k4, (B, C, H, W), dtype=jnp.float32)
    w1 = 0.1 * jax.random.normal(k1, (Cr, C), dtype=jnp.float32)       # Conv2d(C, C//r, 1)
    w2 = 0.1 * jax.random.normal(k2, (C, Cr), dtype=jnp.float32)       # Conv2d(C//r, C, 1)
    w_spatial = 0.1 * jax.random.normal(k3, (2, ksize, ksize), dtype=jnp.float32)  # Conv2d(2,1,7)

    y = lesion_attention(x, w1, w2, w_spatial, kernel_size=ksize)
    y = jax.block_until_ready(y)

    y_ref = reference(x, w1, w2, w_spatial, kernel_size=ksize)
    np.testing.assert_allclose(np.asarray(y), np.asarray(y_ref), rtol=1e-3, atol=1e-3)

    print("KERNEL_OK")
</pallas_src>

<mosaic_0001>
module attributes {stable_mosaic.version = 11 : i64} {
  func.func @_lesion_attention_kernel(%arg0: i32, %arg1: memref<1x16x256xf32, #tpu.memory_space<vmem>>, %arg2: memref<2x16xf32, #tpu.memory_space<vmem>>, %arg3: memref<16x2xf32, #tpu.memory_space<vmem>>, %arg4: memref<98xf32, #tpu.memory_space<smem>>, %arg5: memref<1x16x256xf32, #tpu.memory_space<vmem>>, %arg6: memref<2x22x22xf32, #tpu.memory_space<vmem>>, %arg7: memref<1x256xf32, #tpu.memory_space<vmem>>) attributes {dimension_semantics = [#tpu.dimension_semantics<parallel>], iteration_bounds = array<i64: 2>, scalar_prefetch = 0 : i64, scratch_operands = 2 : i64, tpu.core_type = #tpu.core_type<tc>, window_params = [{transform_indices = @transform_0, window_bounds = array<i64: 1, 16, 256>}, {pipeline_mode = #tpu.pipeline_mode<synchronous>, transform_indices = @transform_1, window_bounds = array<i64: 2, 16>}, {pipeline_mode = #tpu.pipeline_mode<synchronous>, transform_indices = @transform_2, window_bounds = array<i64: 16, 2>}, {transform_indices = @transform_3, window_bounds = array<i64: 98>}, {transform_indices = @transform_4, window_bounds = array<i64: 1, 16, 256>}]} {
    %c0 = arith.constant 0 : index
    %c0_0 = arith.constant 0 : index
    %c0_1 = arith.constant 0 : index
    %0 = vector.load %arg1[%c0, %c0_0, %c0_1] : memref<1x16x256xf32, #tpu.memory_space<vmem>>, vector<1x16x256xf32>
    %1 = vector.shape_cast %0 : vector<1x16x256xf32> to vector<16x256xf32>
    %cst = arith.constant dense<0.000000e+00> : vector<16xf32>
    %2 = vector.multi_reduction <add>, %1, %cst [1] : vector<16x256xf32> to vector<16xf32>
    %3 = vector.shape_cast %2 : vector<16xf32> to vector<16x1xf32>
    %cst_2 = arith.constant 2.560000e+02 : f32
    %4 = vector.broadcast %cst_2 : f32 to vector<16x1xf32>
    %5 = arith.divf %3, %4 : vector<16x1xf32>
    %cst_3 = arith.constant dense<0xFF800000> : vector<16xf32>
    %6 = vector.multi_reduction <maximumf>, %1, %cst_3 [1] : vector<16x256xf32> to vector<16xf32>
    %7 = vector.shape_cast %6 : vector<16xf32> to vector<16x1xf32>
    %8 = tpu.iota {dimensions = array<i32: 1>} : vector<16x2xi32>
    %c0_i32 = arith.constant 0 : i32
    %9 = vector.broadcast %c0_i32 : i32 to vector<16x2xi32>
    %10 = arith.cmpi eq, %8, %9 : vector<16x2xi32>
    %11 = vector.shape_cast %5 : vector<16x1xf32> to vector<16x1xf32>
    %12 = vector.broadcast %11 : vector<16x1xf32> to vector<16x2xf32>
    %13 = vector.shape_cast %7 : vector<16x1xf32> to vector<16x1xf32>
    %14 = vector.broadcast %13 : vector<16x1xf32> to vector<16x2xf32>
    %15 = arith.select %10, %12, %14 : vector<16x2xi1>, vector<16x2xf32>
    %c0_4 = arith.constant 0 : index
    %c0_5 = arith.constant 0 : index
    %16 = vector.load %arg2[%c0_4, %c0_5] : memref<2x16xf32, #tpu.memory_space<vmem>>, vector<2x16xf32>
    %cst_6 = arith.constant dense<0.000000e+00> : vector<2x2xf32>
    %17 = tpu.matmul %16, %15, %cst_6 {dimension_numbers = #tpu.dot_dimension_numbers<[1], [0], [0], [1], [0, 0, 1, 1], [], []>} : vector<2x16xf32>, vector<16x2xf32>, vector<2x2xf32> -> vector<2x2xf32>
    %cst_7 = arith.constant 0.000000e+00 : f32
    %18 = vector.broadcast %cst_7 : f32 to vector<2x2xf32>
    %19 = arith.maximumf %17, %18 : vector<2x2xf32>
    %c0_8 = arith.constant 0 : index
    %c0_9 = arith.constant 0 : index
    %20 = vector.load %arg3[%c0_8, %c0_9] : memref<16x2xf32, #tpu.memory_space<vmem>>, vector<16x2xf32>
    %cst_10 = arith.constant dense<0.000000e+00> : vector<16x2xf32>
    %21 = tpu.matmul %20, %19, %cst_10 {dimension_numbers = #tpu.dot_dimension_numbers<[1], [0], [0], [1], [0, 0, 1, 1], [], []>} : vector<16x2xf32>, vector<2x2xf32>, vector<16x2xf32> -> vector<16x2xf32>
    %22 = vector.extract_strided_slice %21 {offsets = [0, 0], sizes = [16, 1], strides = [1, 1]} : vector<16x2xf32> to vector<16x1xf32>
    %23 = vector.extract_strided_slice %21 {offsets = [0, 1], sizes = [16, 1], strides = [1, 1]} : vector<16x2xf32> to vector<16x1xf32>
    %24 = arith.addf %22, %23 : vector<16x1xf32>
    %25 = arith.negf %24 : vector<16x1xf32>
    %26 = math.exp %25 : vector<16x1xf32>
    %cst_11 = arith.constant 1.000000e+00 : f32
    %27 = vector.broadcast %cst_11 : f32 to vector<16x1xf32>
    %28 = arith.addf %27, %26 : vector<16x1xf32>
    %29 = arith.divf %27, %28 : vector<16x1xf32>
    %30 = vector.broadcast %29 : vector<16x1xf32> to vector<16x256xf32>
    %31 = arith.mulf %1, %30 : vector<16x256xf32>
    %cst_12 = arith.constant dense<0.000000e+00> : vector<256xf32>
    %32 = vector.multi_reduction <add>, %31, %cst_12 [0] : vector<16x256xf32> to vector<256xf32>
    %33 = vector.shape_cast %32 : vector<256xf32> to vector<1x256xf32>
    %cst_13 = arith.constant 1.600000e+01 : f32
    %34 = vector.broadcast %cst_13 : f32 to vector<1x256xf32>
    %35 = arith.divf %33, %34 : vector<1x256xf32>
    %cst_14 = arith.constant dense<0xFF800000> : vector<256xf32>
    %36 = vector.multi_reduction <maximumf>, %31, %cst_14 [0] : vector<16x256xf32> to vector<256xf32>
    %37 = vector.shape_cast %36 : vector<256xf32> to vector<1x256xf32>
    %cst_15 = arith.constant 0.000000e+00 : f32
    %38 = vector.broadcast %cst_15 : f32 to vector<2x22x22xf32>
    %c0_16 = arith.constant 0 : index
    %c0_17 = arith.constant 0 : index
    %c0_18 = arith.constant 0 : index
    %39 = vector.load %arg6[%c0_16, %c0_17, %c0_18] : memref<2x22x22xf32, #tpu.memory_space<vmem>>, vector<2x22x22xf32>
    tpu.vector_store %arg6[%c0_16, %c0_17, %c0_18], %38 {strides = array<i32>} : memref<2x22x22xf32, #tpu.memory_space<vmem>>, vector<2x22x22xf32>,
    %40 = vector.extract_strided_slice %35 {offsets = [0, 0], sizes = [1, 16], strides = [1, 1]} : vector<1x256xf32> to vector<1x16xf32>
    %c0_19 = arith.constant 0 : index
    %c3 = arith.constant 3 : index
    %c3_20 = arith.constant 3 : index
    %41 = vector.load %arg6[%c0_19, %c3, %c3_20] : memref<2x22x22xf32, #tpu.memory_space<vmem>>, vector<1x1x16xf32>
    %42 = vector.shape_cast %41 : vector<1x1x16xf32> to vector<1x16xf32>
    %43 = vector.shape_cast %40 : vector<1x16xf32> to vector<1x1x16xf32>
    tpu.vector_store %arg6[%c0_19, %c3, %c3_20], %43 {strides = array<i32>} : memref<2x22x22xf32, #tpu.memory_space<vmem>>, vector<1x1x16xf32>,
    %44 = vector.extract_strided_slice %37 {offsets = [0, 0], sizes = [1, 16], strides = [1, 1]} : vector<1x256xf32> to vector<1x16xf32>
    %c1 = arith.constant 1 : index
    %c3_21 = arith.constant 3 : index
    %c3_22 = arith.constant 3 : index
    %45 = vector.load %arg6[%c1, %c3_21, %c3_22] : memref<2x22x22xf32, #tpu.memory_space<vmem>>, vector<1x1x16xf32>
    %46 = vector.shape_cast %45 : vector<1x1x16xf32> to vector<1x16xf32>
    %47 = vector.shape_cast %44 : vector<1x16xf32> to vector<1x1x16xf32>
    tpu.vector_store %arg6[%c1, %c3_21, %c3_22], %47 {strides = array<i32>} : memref<2x22x22xf32, #tpu.memory_space<vmem>>, vector<1x1x16xf32>,
    %48 = vector.extract_strided_slice %35 {offsets = [0, 16], sizes = [1, 16], strides = [1, 1]} : vector<1x256xf32> to vector<1x16xf32>
    %c0_23 = arith.constant 0 : index
    %c4 = arith.constant 4 : index
    %c3_24 = arith.constant 3 : index
    %49 = vector.load %arg6[%c0_23, %c4, %c3_24] : memref<2x22x22xf32, #tpu.memory_space<vmem>>, vector<1x1x16xf32>
    %50 = vector.shape_cast %49 : vector<1x1x16xf32> to vector<1x16xf32>
    %51 = vector.shape_cast %48 : vector<1x16xf32> to vector<1x1x16xf32>
    tpu.vector_store %arg6[%c0_23, %c4, %c3_24], %51 {strides = array<i32>} : memref<2x22x22xf32, #tpu.memory_space<vmem>>, vector<1x1x16xf32>,
    %52 = vector.extract_strided_slice %37 {offsets = [0, 16], sizes = [1, 16], strides = [1, 1]} : vector<1x256xf32> to vector<1x16xf32>
    %c1_25 = arith.constant 1 : index
    %c4_26 = arith.constant 4 : index
    %c3_27 = arith.constant 3 : index
    %53 = vector.load %arg6[%c1_25, %c4_26, %c3_27] : memref<2x22x22xf32, #tpu.memory_space<vmem>>, vector<1x1x16xf32>
    %54 = vector.shape_cast %53 : vector<1x1x16xf32> to vector<1x16xf32>
    %55 = vector.shape_cast %52 : vector<1x16xf32> to vector<1x1x16xf32>
    tpu.vector_store %arg6[%c1_25, %c4_26, %c3_27], %55 {strides = array<i32>} : memref<2x22x22xf32, #tpu.memory_space<vmem>>, vector<1x1x16xf32>,
    %56 = vector.extract_strided_slice %35 {offsets = [0, 32], sizes = [1, 16], strides = [1, 1]} : vector<1x256xf32> to vector<1x16xf32>
    %c0_28 = arith.constant 0 : index
    %c5 = arith.constant 5 : index
    %c3_29 = arith.constant 3 : index
    %57 = vector.load %arg6[%c0_28, %c5, %c3_29] : memref<2x22x22xf32, #tpu.memory_space<vmem>>, vector<1x1x16xf32>
    %58 = vector.shape_cast %57 : vector<1x1x16xf32> to vector<1x16xf32>
    %59 = vector.shape_cast %56 : vector<1x16xf32> to vector<1x1x16xf32>
    tpu.vector_store %arg6[%c0_28, %c5, %c3_29], %59 {strides = array<i32>} : memref<2x22x22xf32, #tpu.memory_space<vmem>>, vector<1x1x16xf32>,
    %60 = vector.extract_strided_slice %37 {offsets = [0, 32], sizes = [1, 16], strides = [1, 1]} : vector<1x256xf32> to vector<1x16xf32>
    %c1_30 = arith.constant 1 : index
    %c5_31 = arith.constant 5 : index
    %c3_32 = arith.constant 3 : index
    %61 = vector.load %arg6[%c1_30, %c5_31, %c3_32] : memref<2x22x22xf32, #tpu.memory_space<vmem>>, vector<1x1x16xf32>
    %62 = vector.shape_cast %61 : vector<1x1x16xf32> to vector<1x16xf32>
    %63 = vector.shape_cast %60 : vector<1x16xf32> to vector<1x1x16xf32>
    tpu.vector_store %arg6[%c1_30, %c5_31, %c3_32], %63 {strides = array<i32>} : memref<2x22x22xf32, #tpu.memory_space<vmem>>, vector<1x1x16xf32>,
    %64 = vector.extract_strided_slice %35 {offsets = [0, 48], sizes = [1, 16], strides = [1, 1]} : vector<1x256xf32> to vector<1x16xf32>
    %c0_33 = arith.constant 0 : index
    %c6 = arith.constant 6 : index
    %c3_34 = arith.constant 3 : index
    %65 = vector.load %arg6[%c0_33, %c6, %c3_34] : memref<2x22x22xf32, #tpu.memory_space<vmem>>, vector<1x1x16xf32>
    %66 = vector.shape_cast %65 : vector<1x1x16xf32> to vector<1x16xf32>
    %67 = vector.shape_cast %64 : vector<1x16xf32> to vector<1x1x16xf32>
    tpu.vector_store %arg6[%c0_33, %c6, %c3_34], %67 {strides = array<i32>} : memref<2x22x22xf32, #tpu.memory_space<vmem>>, vector<1x1x16xf32>,
    %68 = vector.extract_strided_slice %37 {offsets = [0, 48], sizes = [1, 16], strides = [1, 1]} : vector<1x256xf32> to vector<1x16xf32>
    %c1_35 = arith.constant 1 : index
    %c6_36 = arith.constant 6 : index
    %c3_37 = arith.constant 3 : index
    %69 = vector.load %arg6[%c1_35, %c6_36, %c3_37] : memref<2x22x22xf32, #tpu.memory_space<vmem>>, vector<1x1x16xf32>
    %70 = vector.shape_cast %69 : vector<1x1x16xf32> to vector<1x16xf32>
    %71 = vector.shape_cast %68 : vector<1x16xf32> to vector<1x1x16xf32>
    tpu.vector_store %arg6[%c1_35, %c6_36, %c3_37], %71 {strides = array<i32>} : memref<2x22x22xf32, #tpu.memory_space<vmem>>, vector<1x1x16xf32>,
    %72 = vector.extract_strided_slice %35 {offsets = [0, 64], sizes = [1, 16], strides = [1, 1]} : vector<1x256xf32> to vector<1x16xf32>
    %c0_38 = arith.constant 0 : index
    %c7 = arith.constant 7 : index
    %c3_39 = arith.constant 3 : index
    %73 = vector.load %arg6[%c0_38, %c7, %c3_39] : memref<2x22x22xf32, #tpu.memory_space<vmem>>, vector<1x1x16xf32>
    %74 = vector.shape_cast %73 : vector<1x1x16xf32> to vector<1x16xf32>
    %75 = vector.shape_cast %72 : vector<1x16xf32> to vector<1x1x16xf32>
    tpu.vector_store %arg6[%c0_38, %c7, %c3_39], %75 {strides = array<i32>} : memref<2x22x22xf32, #tpu.memory_space<vmem>>, vector<1x1x16xf32>,
    %76 = vector.extract_strided_slice %37 {offsets = [0, 64], sizes = [1, 16], strides = [1, 1]} : vector<1x256xf32> to vector<1x16xf32>
    %c1_40 = arith.constant 1 : index
    %c7_41 = arith.constant 7 : index
    %c3_42 = arith.constant 3 : index
    %77 = vector.load %arg6[%c1_40, %c7_41, %c3_42] : memref<2x22x22xf32, #tpu.memory_space<vmem>>, vector<1x1x16xf32>
    %78 = vector.shape_cast %77 : vector<1x1x16xf32> to vector<1x16xf32>
    %79 = vector.shape_cast %76 : vector<1x16xf32> to vector<1x1x16xf32>
    tpu.vector_store %arg6[%c1_40, %c7_41, %c3_42], %79 {strides = array<i32>} : memref<2x22x22xf32, #tpu.memory_space<vmem>>, vector<1x1x16xf32>,
    %80 = vector.extract_strided_slice %35 {offsets = [0, 80], sizes = [1, 16], strides = [1, 1]} : vector<1x256xf32> to vector<1x16xf32>
    %c0_43 = arith.constant 0 : index
    %c8 = arith.constant 8 : index
    %c3_44 = arith.constant 3 : index
    %81 = vector.load %arg6[%c0_43, %c8, %c3_44] : memref<2x22x22xf32, #tpu.memory_space<vmem>>, vector<1x1x16xf32>
    %82 = vector.shape_cast %81 : vector<1x1x16xf32> to vector<1x16xf32>
    %83 = vector.shape_cast %80 : vector<1x16xf32> to vector<1x1x16xf32>
    tpu.vector_store %arg6[%c0_43, %c8, %c3_44], %83 {strides = array<i32>} : memref<2x22x22xf32, #tpu.memory_space<vmem>>, vector<1x1x16xf32>,
    %84 = vector.extract_strided_slice %37 {offsets = [0, 80], sizes = [1, 16], strides = [1, 1]} : vector<1x256xf32> to vector<1x16xf32>
    %c1_45 = arith.constant 1 : index
    %c8_46 = arith.constant 8 : index
    %c3_47 = arith.constant 3 : index
    %85 = vector.load %arg6[%c1_45, %c8_46, %c3_47] : memref<2x22x22xf32, #tpu.memory_space<vmem>>, vector<1x1x16xf32>
    %86 = vector.shape_cast %85 : vector<1x1x16xf32> to vector<1x16xf32>
    %87 = vector.shape_cast %84 : vector<1x16xf32> to vector<1x1x16xf32>
    tpu.vector_store %arg6[%c1_45, %c8_46, %c3_47], %87 {strides = array<i32>} : memref<2x22x22xf32, #tpu.memory_space<vmem>>, vector<1x1x16xf32>,
    %88 = vector.extract_strided_slice %35 {offsets = [0, 96], sizes = [1, 16], strides = [1, 1]} : vector<1x256xf32> to vector<1x16xf32>
    %c0_48 = arith.constant 0 : index
    %c9 = arith.constant 9 : index
    %c3_49 = arith.constant 3 : index
    %89 = vector.load %arg6[%c0_48, %c9, %c3_49] : memref<2x22x22xf32, #tpu.memory_space<vmem>>, vector<1x1x16xf32>
    %90 = vector.shape_cast %89 : vector<1x1x16xf32> to vector<1x16xf32>
    %91 = vector.shape_cast %88 : vector<1x16xf32> to vector<1x1x16xf32>
    tpu.vector_store %arg6[%c0_48, %c9, %c3_49], %91 {strides = array<i32>} : memref<2x22x22xf32, #tpu.memory_space<vmem>>, vector<1x1x16xf32>,
    %92 = vector.extract_strided_slice %37 {offsets = [0, 96], sizes = [1, 16], strides = [1, 1]} : vector<1x256xf32> to vector<1x16xf32>
    %c1_50 = arith.constant 1 : index
    %c9_51 = arith.constant 9 : index
    %c3_52 = arith.constant 3 : index
    %93 = vector.load %arg6[%c1_50, %c9_51, %c3_52] : memref<2x22x22xf32, #tpu.memory_space<vmem>>, vector<1x1x16xf32>
    %94 = vector.shape_cast %93 : vector<1x1x16xf32> to vector<1x16xf32>
    %95 = vector.shape_cast %92 : vector<1x16xf32> to vector<1x1x16xf32>
    tpu.vector_store %arg6[%c1_50, %c9_51, %c3_52], %95 {strides = array<i32>} : memref<2x22x22xf32, #tpu.memory_space<vmem>>, vector<1x1x16xf32>,
    %96 = vector.extract_strided_slice %35 {offsets = [0, 112], sizes = [1, 16], strides = [1, 1]} : vector<1x256xf32> to vector<1x16xf32>
    %c0_53 = arith.constant 0 : index
    %c10 = arith.constant 10 : index
    %c3_54 = arith.constant 3 : index
    %97 = vector.load %arg6[%c0_53, %c10, %c3_54] : memref<2x22x22xf32, #tpu.memory_space<vmem>>, vector<1x1x16xf32>
    %98 = vector.shape_cast %97 : vector<1x1x16xf32> to vector<1x16xf32>
    %99 = vector.shape_cast %96 : vector<1x16xf32> to vector<1x1x16xf32>
    tpu.vector_store %arg6[%c0_53, %c10, %c3_54], %99 {strides = array<i32>} : memref<2x22x22xf32, #tpu.memory_space<vmem>>, vector<1x1x16xf32>,
    %100 = vector.extract_strided_slice %37 {offsets = [0, 112], sizes = [1, 16], strides = [1, 1]} : vector<1x256xf32> to vector<1x16xf32>
    %c1_55 = arith.constant 1 : index
    %c10_56 = arith.constant 10 : index
    %c3_57 = arith.constant 3 : index
    %101 = vector.load %arg6[%c1_55, %c10_56, %c3_57] : memref<2x22x22xf32, #tpu.memory_space<vmem>>, vector<1x1x16xf32>
    %102 = vector.shape_cast %101 : vector<1x1x16xf32> to vector<1x16xf32>
    %103 = vector.shape_cast %100 : vector<1x16xf32> to vector<1x1x16xf32>
    tpu.vector_store %arg6[%c1_55, %c10_56, %c3_57], %103 {strides = array<i32>} : memref<2x22x22xf32, #tpu.memory_space<vmem>>, vector<1x1x16xf32>,
    %104 = vector.extract_strided_slice %35 {offsets = [0, 128], sizes = [1, 16], strides = [1, 1]} : vector<1x256xf32> to vector<1x16xf32>
    %c0_58 = arith.constant 0 : index
    %c11 = arith.constant 11 : index
    %c3_59 = arith.constant 3 : index
    %105 = vector.load %arg6[%c0_58, %c11, %c3_59] : memref<2x22x22xf32, #tpu.memory_space<vmem>>, vector<1x1x16xf32>
    %106 = vector.shape_cast %105 : vector<1x1x16xf32> to vector<1x16xf32>
    %107 = vector.shape_cast %104 : vector<1x16xf32> to vector<1x1x16xf32>
    tpu.vector_store %arg6[%c0_58, %c11, %c3_59], %107 {strides = array<i32>} : memref<2x22x22xf32, #tpu.memory_space<vmem>>, vector<1x1x16xf32>,
    %108 = vector.extract_strided_slice %37 {offsets = [0, 128], sizes = [1, 16], strides = [1, 1]} : vector<1x256xf32> to vector<1x16xf32>
    %c1_60 = arith.constant 1 : index
    %c11_61 = arith.constant 11 : index
    %c3_62 = arith.constant 3 : index
    %109 = vector.load %arg6[%c1_60, %c11_61, %c3_62] : memref<2x22x22xf32, #tpu.memory_space<vmem>>, vector<1x1x16xf32>
    %110 = vector.shape_cast %109 : vector<1x1x16xf32> to vector<1x16xf32>
    %111 = vector.shape_cast %108 : vector<1x16xf32> to vector<1x1x16xf32>
    tpu.vector_store %arg6[%c1_60, %c11_61, %c3_62], %111 {strides = array<i32>} : memref<2x22x22xf32, #tpu.memory_space<vmem>>, vector<1x1x16xf32>,
    %112 = vector.extract_strided_slice %35 {offsets = [0, 144], sizes = [1, 16], strides = [1, 1]} : vector<1x256xf32> to vector<1x16xf32>
    %c0_63 = arith.constant 0 : index
    %c12 = arith.constant 12 : index
    %c3_64 = arith.constant 3 : index
    %113 = vector.load %arg6[%c0_63, %c12, %c3_64] : memref<2x22x22xf32, #tpu.memory_space<vmem>>, vector<1x1x16xf32>
    %114 = vector.shape_cast %113 : vector<1x1x16xf32> to vector<1x16xf32>
    %115 = vector.shape_cast %112 : vector<1x16xf32> to vector<1x1x16xf32>
    tpu.vector_store %arg6[%c0_63, %c12, %c3_64], %115 {strides = array<i32>} : memref<2x22x22xf32, #tpu.memory_space<vmem>>, vector<1x1x16xf32>,
    %116 = vector.extract_strided_slice %37 {offsets = [0, 144], sizes = [1, 16], strides = [1, 1]} : vector<1x256xf32> to vector<1x16xf32>
    %c1_65 = arith.constant 1 : index
    %c12_66 = arith.constant 12 : index
    %c3_67 = arith.constant 3 : index
    %117 = vector.load %arg6[%c1_65, %c12_66, %c3_67] : memref<2x22x22xf32, #tpu.memory_space<vmem>>, vector<1x1x16xf32>
    %118 = vector.shape_cast %117 : vector<1x1x16xf32> to vector<1x16xf32>
    %119 = vector.shape_cast %116 : vector<1x16xf32> to vector<1x1x16xf32>
    tpu.vector_store %arg6[%c1_65, %c12_66, %c3_67], %119 {strides = array<i32>} : memref<2x22x22xf32, #tpu.memory_space<vmem>>, vector<1x1x16xf32>,
    %120 = vector.extract_strided_slice %35 {offsets = [0, 160], sizes = [1, 16], strides = [1, 1]} : vector<1x256xf32> to vector<1x16xf32>
    %c0_68 = arith.constant 0 : index
    %c13 = arith.constant 13 : index
    %c3_69 = arith.constant 3 : index
    %121 = vector.load %arg6[%c0_68, %c13, %c3_69] : memref<2x22x22xf32, #tpu.memory_space<vmem>>, vector<1x1x16xf32>
    %122 = vector.shape_cast %121 : vector<1x1x16xf32> to vector<1x16xf32>
    %123 = vector.shape_cast %120 : vector<1x16xf32> to vector<1x1x16xf32>
    tpu.vector_store %arg6[%c0_68, %c13, %c3_69], %123 {strides = array<i32>} : memref<2x22x22xf32, #tpu.memory_space<vmem>>, vector<1x1x16xf32>,
    %124 = vector.extract_strided_slice %37 {offsets = [0, 160], sizes = [1, 16], strides = [1, 1]} : vector<1x256xf32> to vector<1x16xf32>
    %c1_70 = arith.constant 1 : index
    %c13_71 = arith.constant 13 : index
    %c3_72 = arith.constant 3 : index
    %125 = vector.load %arg6[%c1_70, %c13_71, %c3_72] : memref<2x22x22xf32, #tpu.memory_space<vmem>>, vector<1x1x16xf32>
    %126 = vector.shape_cast %125 : vector<1x1x16xf32> to vector<1x16xf32>
    %127 = vector.shape_cast %124 : vector<1x16xf32> to vector<1x1x16xf32>
    tpu.vector_store %arg6[%c1_70, %c13_71, %c3_72], %127 {strides = array<i32>} : memref<2x22x22xf32, #tpu.memory_space<vmem>>, vector<1x1x16xf32>,
    %128 = vector.extract_strided_slice %35 {offsets = [0, 176], sizes = [1, 16], strides = [1, 1]} : vector<1x256xf32> to vector<1x16xf32>
    %c0_73 = arith.constant 0 : index
    %c14 = arith.constant 14 : index
    %c3_74 = arith.constant 3 : index
    %129 = vector.load %arg6[%c0_73, %c14, %c3_74] : memref<2x22x22xf32, #tpu.memory_space<vmem>>, vector<1x1x16xf32>
    %130 = vector.shape_cast %129 : vector<1x1x16xf32> to vector<1x16xf32>
    %131 = vector.shape_cast %128 : vector<1x16xf32> to vector<1x1x16xf32>
    tpu.vector_store %arg6[%c0_73, %c14, %c3_74], %131 {strides = array<i32>} : memref<2x22x22xf32, #tpu.memory_space<vmem>>, vector<1x1x16xf32>,
    %132 = vector.extract_strided_slice %37 {offsets = [0, 176], sizes = [1, 16], strides = [1, 1]} : vector<1x256xf32> to vector<1x16xf32>
    %c1_75 = arith.constant 1 : index
    %c14_76 = arith.constant 14 : index
    %c3_77 = arith.constant 3 : index
    %133 = vector.load %arg6[%c1_75, %c14_76, %c3_77] : memref<2x22x22xf32, #tpu.memory_space<vmem>>, vector<1x1x16xf32>
    %134 = vector.shape_cast %133 : vector<1x1x16xf32> to vector<1x16xf32>
    %135 = vector.shape_cast %132 : vector<1x16xf32> to vector<1x1x16xf32>
    tpu.vector_store %arg6[%c1_75, %c14_76, %c3_77], %135 {strides = array<i32>} : memref<2x22x22xf32, #tpu.memory_space<vmem>>, vector<1x1x16xf32>,
    %136 = vector.extract_strided_slice %35 {offsets = [0, 192], sizes = [1, 16], strides = [1, 1]} : vector<1x256xf32> to vector<1x16xf32>
    %c0_78 = arith.constant 0 : index
    %c15 = arith.constant 15 : index
    %c3_79 = arith.constant 3 : index
    %137 = vector.load %arg6[%c0_78, %c15, %c3_79] : memref<2x22x22xf32, #tpu.memory_space<vmem>>, vector<1x1x16xf32>
    %138 = vector.shape_cast %137 : vector<1x1x16xf32> to vector<1x16xf32>
    %139 = vector.shape_cast %136 : vector<1x16xf32> to vector<1x1x16xf32>
    tpu.vector_store %arg6[%c0_78, %c15, %c3_79], %139 {strides = array<i32>} : memref<2x22x22xf32, #tpu.memory_space<vmem>>, vector<1x1x16xf32>,
    %140 = vector.extract_strided_slice %37 {offsets = [0, 192], sizes = [1, 16], strides = [1, 1]} : vector<1x256xf32> to vector<1x16xf32>
    %c1_80 = arith.constant 1 : index
    %c15_81 = arith.constant 15 : index
    %c3_82 = arith.constant 3 : index
    %141 = vector.load %arg6[%c1_80, %c15_81, %c3_82] : memref<2x22x22xf32, #tpu.memory_space<vmem>>, vector<1x1x16xf32>
    %142 = vector.shape_cast %141 : vector<1x1x16xf32> to vector<1x16xf32>
    %143 = vector.shape_cast %140 : vector<1x16xf32> to vector<1x1x16xf32>
    tpu.vector_store %arg6[%c1_80, %c15_81, %c3_82], %143 {strides = array<i32>} : memref<2x22x22xf32, #tpu.memory_space<vmem>>, vector<1x1x16xf32>,
    %144 = vector.extract_strided_slice %35 {offsets = [0, 208], sizes = [1, 16], strides = [1, 1]} : vector<1x256xf32> to vector<1x16xf32>
    %c0_83 = arith.constant 0 : index
    %c16 = arith.constant 16 : index
    %c3_84 = arith.constant 3 : index
    %145 = vector.load %arg6[%c0_83, %c16, %c3_84] : memref<2x22x22xf32, #tpu.memory_space<vmem>>, vector<1x1x16xf32>
    %146 = vector.shape_cast %145 : vector<1x1x16xf32> to vector<1x16xf32>
    %147 = vector.shape_cast %144 : vector<1x16xf32> to vector<1x1x16xf32>
    tpu.vector_store %arg6[%c0_83, %c16, %c3_84], %147 {strides = array<i32>} : memref<2x22x22xf32, #tpu.memory_space<vmem>>, vector<1x1x16xf32>,
    %148 = vector.extract_strided_slice %37 {offsets = [0, 208], sizes = [1, 16], strides = [1, 1]} : vector<1x256xf32> to vector<1x16xf32>
    %c1_85 = arith.constant 1 : index
    %c16_86 = arith.constant 16 : index
    %c3_87 = arith.constant 3 : index
    %149 = vector.load %arg6[%c1_85, %c16_86, %c3_87] : memref<2x22x22xf32, #tpu.memory_space<vmem>>, vector<1x1x16xf32>
    %150 = vector.shape_cast %149 : vector<1x1x16xf32> to vector<1x16xf32>
    %151 = vector.shape_cast %148 : vector<1x16xf32> to vector<1x1x16xf32>
    tpu.vector_store %arg6[%c1_85, %c16_86, %c3_87], %151 {strides = array<i32>} : memref<2x22x22xf32, #tpu.memory_space<vmem>>, vector<1x1x16xf32>,
    %152 = vector.extract_strided_slice %35 {offsets = [0, 224], sizes = [1, 16], strides = [1, 1]} : vector<1x256xf32> to vector<1x16xf32>
    %c0_88 = arith.constant 0 : index
    %c17 = arith.constant 17 : index
    %c3_89 = arith.constant 3 : index
    %153 = vector.load %arg6[%c0_88, %c17, %c3_89] : memref<2x22x22xf32, #tpu.memory_space<vmem>>, vector<1x1x16xf32>
    %154 = vector.shape_cast %153 : vector<1x1x16xf32> to vector<1x16xf32>
    %155 = vector.shape_cast %152 : vector<1x16xf32> to vector<1x1x16xf32>
    tpu.vector_store %arg6[%c0_88, %c17, %c3_89], %155 {strides = array<i32>} : memref<2x22x22xf32, #tpu.memory_space<vmem>>, vector<1x1x16xf32>,
    %156 = vector.extract_strided_slice %37 {offsets = [0, 224], sizes = [1, 16], strides = [1, 1]} : vector<1x256xf32> to vector<1x16xf32>
    %c1_90 = arith.constant 1 : index
    %c17_91 = arith.constant 17 : index
    %c3_92 = arith.constant 3 : index
    %157 = vector.load %arg6[%c1_90, %c17_91, %c3_92] : memref<2x22x22xf32, #tpu.memory_space<vmem>>, vector<1x1x16xf32>
    %158 = vector.shape_cast %157 : vector<1x1x16xf32> to vector<1x16xf32>
    %159 = vector.shape_cast %156 : vector<1x16xf32> to vector<1x1x16xf32>
    tpu.vector_store %arg6[%c1_90, %c17_91, %c3_92], %159 {strides = array<i32>} : memref<2x22x22xf32, #tpu.memory_space<vmem>>, vector<1x1x16xf32>,
    %160 = vector.extract_strided_slice %35 {offsets = [0, 240], sizes = [1, 16], strides = [1, 1]} : vector<1x256xf32> to vector<1x16xf32>
    %c0_93 = arith.constant 0 : index
    %c18 = arith.constant 18 : index
    %c3_94 = arith.constant 3 : index
    %161 = vector.load %arg6[%c0_93, %c18, %c3_94] : memref<2x22x22xf32, #tpu.memory_space<vmem>>, vector<1x1x16xf32>
    %162 = vector.shape_cast %161 : vector<1x1x16xf32> to vector<1x16xf32>
    %163 = vector.shape_cast %160 : vector<1x16xf32> to vector<1x1x16xf32>
    tpu.vector_store %arg6[%c0_93, %c18, %c3_94], %163 {strides = array<i32>} : memref<2x22x22xf32, #tpu.memory_space<vmem>>, vector<1x1x16xf32>,
    %164 = vector.extract_strided_slice %37 {offsets = [0, 240], sizes = [1, 16], strides = [1, 1]} : vector<1x256xf32> to vector<1x16xf32>
    %c1_95 = arith.constant 1 : index
    %c18_96 = arith.constant 18 : index
    %c3_97 = arith.constant 3 : index
    %165 = vector.load %arg6[%c1_95, %c18_96, %c3_97] : memref<2x22x22xf32, #tpu.memory_space<vmem>>, vector<1x1x16xf32>
    %166 = vector.shape_cast %165 : vector<1x1x16xf32> to vector<1x16xf32>
    %167 = vector.shape_cast %164 : vector<1x16xf32> to vector<1x1x16xf32>
    tpu.vector_store %arg6[%c1_95, %c18_96, %c3_97], %167 {strides = array<i32>} : memref<2x22x22xf32, #tpu.memory_space<vmem>>, vector<1x1x16xf32>,
    %cst_98 = arith.constant 0.000000e+00 : f32
    %168 = vector.broadcast %cst_98 : f32 to vector<16x16xf32>
    %c0_99 = arith.constant 0 : index
    %c0_100 = arith.constant 0 : index
    %c0_101 = arith.constant 0 : index
    %169 = vector.load %arg6[%c0_99, %c0_100, %c0_101] : memref<2x22x22xf32, #tpu.memory_space<vmem>>, vector<1x22x16xf32>
    %170 = vector.shape_cast %169 : vector<1x22x16xf32> to vector<22x16xf32>
    %c0_102 = arith.constant 0 : index
    %171 = memref.load %arg4[%c0_102] : memref<98xf32, #tpu.memory_space<smem>>
    %172 = vector.extract_strided_slice %170 {offsets = [0, 0], sizes = [16, 16], strides = [1, 1]} : vector<22x16xf32> to vector<16x16xf32>
    %173 = vector.broadcast %171 : f32 to vector<16x16xf32>
    %174 = arith.mulf %173, %172 : vector<16x16xf32>
    %175 = arith.addf %168, %174 : vector<16x16xf32>
    %c7_103 = arith.constant 7 : index
    %176 = memref.load %arg4[%c7_103] : memref<98xf32, #tpu.memory_space<smem>>
    %177 = vector.extract_strided_slice %170 {offsets = [1, 0], sizes = [16, 16], strides = [1, 1]} : vector<22x16xf32> to vector<16x16xf32>
    %178 = vector.broadcast %176 : f32 to vector<16x16xf32>
    %179 = arith.mulf %178, %177 : vector<16x16xf32>
    %180 = arith.addf %175, %179 : vector<16x16xf32>
    %c14_104 = arith.constant 14 : index
    %181 = memref.load %arg4[%c14_104] : memref<98xf32, #tpu.memory_space<smem>>
    %182 = vector.extract_strided_slice %170 {offsets = [2, 0], sizes = [16, 16], strides = [1, 1]} : vector<22x16xf32> to vector<16x16xf32>
    %183 = vector.broadcast %181 : f32 to vector<16x16xf32>
    %184 = arith.mulf %183, %182 : vector<16x16xf32>
    %185 = arith.addf %180, %184 : vector<16x16xf32>
    %c21 = arith.constant 21 : index
    %186 = memref.load %arg4[%c21] : memref<98xf32, #tpu.memory_space<smem>>
    %187 = vector.extract_strided_slice %170 {offsets = [3, 0], sizes = [16, 16], strides = [1, 1]} : vector<22x16xf32> to vector<16x16xf32>
    %188 = vector.broadcast %186 : f32 to vector<16x16xf32>
    %189 = arith.mulf %188, %187 : vector<16x16xf32>
    %190 = arith.addf %185, %189 : vector<16x16xf32>
    %c28 = arith.constant 28 : index
    %191 = memref.load %arg4[%c28] : memref<98xf32, #tpu.memory_space<smem>>
    %192 = vector.extract_strided_slice %170 {offsets = [4, 0], sizes = [16, 16], strides = [1, 1]} : vector<22x16xf32> to vector<16x16xf32>
    %193 = vector.broadcast %191 : f32 to vector<16x16xf32>
    %194 = arith.mulf %193, %192 : vector<16x16xf32>
    %195 = arith.addf %190, %194 : vector<16x16xf32>
    %c35 = arith.constant 35 : index
    %196 = memref.load %arg4[%c35] : memref<98xf32, #tpu.memory_space<smem>>
    %197 = vector.extract_strided_slice %170 {offsets = [5, 0], sizes = [16, 16], strides = [1, 1]} : vector<22x16xf32> to vector<16x16xf32>
    %198 = vector.broadcast %196 : f32 to vector<16x16xf32>
    %199 = arith.mulf %198, %197 : vector<16x16xf32>
    %200 = arith.addf %195, %199 : vector<16x16xf32>
    %c42 = arith.constant 42 : index
    %201 = memref.load %arg4[%c42] : memref<98xf32, #tpu.memory_space<smem>>
    %202 = vector.extract_strided_slice %170 {offsets = [6, 0], sizes = [16, 16], strides = [1, 1]} : vector<22x16xf32> to vector<16x16xf32>
    %203 = vector.broadcast %201 : f32 to vector<16x16xf32>
    %204 = arith.mulf %203, %202 : vector<16x16xf32>
    %205 = arith.addf %200, %204 : vector<16x16xf32>
    %c0_105 = arith.constant 0 : index
    %c0_106 = arith.constant 0 : index
    %c1_107 = arith.constant 1 : index
    %206 = vector.load %arg6[%c0_105, %c0_106, %c1_107] : memref<2x22x22xf32, #tpu.memory_space<vmem>>, vector<1x22x16xf32>
    %207 = vector.shape_cast %206 : vector<1x22x16xf32> to vector<22x16xf32>
    %c1_108 = arith.constant 1 : index
    %208 = memref.load %arg4[%c1_108] : memref<98xf32, #tpu.memory_space<smem>>
    %209 = vector.extract_strided_slice %207 {offsets = [0, 0], sizes = [16, 16], strides = [1, 1]} : vector<22x16xf32> to vector<16x16xf32>
    %210 = vector.broadcast %208 : f32 to vector<16x16xf32>
    %211 = arith.mulf %210, %209 : vector<16x16xf32>
    %212 = arith.addf %205, %211 : vector<16x16xf32>
    %c8_109 = arith.constant 8 : index
    %213 = memref.load %arg4[%c8_109] : memref<98xf32, #tpu.memory_space<smem>>
    %214 = vector.extract_strided_slice %207 {offsets = [1, 0], sizes = [16, 16], strides = [1, 1]} : vector<22x16xf32> to vector<16x16xf32>
    %215 = vector.broadcast %213 : f32 to vector<16x16xf32>
    %216 = arith.mulf %215, %214 : vector<16x16xf32>
    %217 = arith.addf %212, %216 : vector<16x16xf32>
    %c15_110 = arith.constant 15 : index
    %218 = memref.load %arg4[%c15_110] : memref<98xf32, #tpu.memory_space<smem>>
    %219 = vector.extract_strided_slice %207 {offsets = [2, 0], sizes = [16, 16], strides = [1, 1]} : vector<22x16xf32> to vector<16x16xf32>
    %220 = vector.broadcast %218 : f32 to vector<16x16xf32>
    %221 = arith.mulf %220, %219 : vector<16x16xf32>
    %222 = arith.addf %217, %221 : vector<16x16xf32>
    %c22 = arith.constant 22 : index
    %223 = memref.load %arg4[%c22] : memref<98xf32, #tpu.memory_space<smem>>
    %224 = vector.extract_strided_slice %207 {offsets = [3, 0], sizes = [16, 16], strides = [1, 1]} : vector<22x16xf32> to vector<16x16xf32>
    %225 = vector.broadcast %223 : f32 to vector<16x16xf32>
    %226 = arith.mulf %225, %224 : vector<16x16xf32>
    %227 = arith.addf %222, %226 : vector<16x16xf32>
    %c29 = arith.constant 29 : index
    %228 = memref.load %arg4[%c29] : memref<98xf32, #tpu.memory_space<smem>>
    %229 = vector.extract_strided_slice %207 {offsets = [4, 0], sizes = [16, 16], strides = [1, 1]} : vector<22x16xf32> to vector<16x16xf32>
    %230 = vector.broadcast %228 : f32 to vector<16x16xf32>
    %231 = arith.mulf %230, %229 : vector<16x16xf32>
    %232 = arith.addf %227, %231 : vector<16x16xf32>
    %c36 = arith.constant 36 : index
    %233 = memref.load %arg4[%c36] : memref<98xf32, #tpu.memory_space<smem>>
    %234 = vector.extract_strided_slice %207 {offsets = [5, 0], sizes = [16, 16], strides = [1, 1]} : vector<22x16xf32> to vector<16x16xf32>
    %235 = vector.broadcast %233 : f32 to vector<16x16xf32>
    %236 = arith.mulf %235, %234 : vector<16x16xf32>
    %237 = arith.addf %232, %236 : vector<16x16xf32>
    %c43 = arith.constant 43 : index
    %238 = memref.load %arg4[%c43] : memref<98xf32, #tpu.memory_space<smem>>
    %239 = vector.extract_strided_slice %207 {offsets = [6, 0], sizes = [16, 16], strides = [1, 1]} : vector<22x16xf32> to vector<16x16xf32>
    %240 = vector.broadcast %238 : f32 to vector<16x16xf32>
    %241 = arith.mulf %240, %239 : vector<16x16xf32>
    %242 = arith.addf %237, %241 : vector<16x16xf32>
    %c0_111 = arith.constant 0 : index
    %c0_112 = arith.constant 0 : index
    %c2 = arith.constant 2 : index
    %243 = vector.load %arg6[%c0_111, %c0_112, %c2] : memref<2x22x22xf32, #tpu.memory_space<vmem>>, vector<1x22x16xf32>
    %244 = vector.shape_cast %243 : vector<1x22x16xf32> to vector<22x16xf32>
    %c2_113 = arith.constant 2 : index
    %245 = memref.load %arg4[%c2_113] : memref<98xf32, #tpu.memory_space<smem>>
    %246 = vector.extract_strided_slice %244 {offsets = [0, 0], sizes = [16, 16], strides = [1, 1]} : vector<22x16xf32> to vector<16x16xf32>
    %247 = vector.broadcast %245 : f32 to vector<16x16xf32>
    %248 = arith.mulf %247, %246 : vector<16x16xf32>
    %249 = arith.addf %242, %248 : vector<16x16xf32>
    %c9_114 = arith.constant 9 : index
    %250 = memref.load %arg4[%c9_114] : memref<98xf32, #tpu.memory_space<smem>>
    %251 = vector.extract_strided_slice %244 {offsets = [1, 0], sizes = [16, 16], strides = [1, 1]} : vector<22x16xf32> to vector<16x16xf32>
    %252 = vector.broadcast %250 : f32 to vector<16x16xf32>
    %253 = arith.mulf %252, %251 : vector<16x16xf32>
    %254 = arith.addf %249, %253 : vector<16x16xf32>
    %c16_115 = arith.constant 16 : index
    %255 = memref.load %arg4[%c16_115] : memref<98xf32, #tpu.memory_space<smem>>
    %256 = vector.extract_strided_slice %244 {offsets = [2, 0], sizes = [16, 16], strides = [1, 1]} : vector<22x16xf32> to vector<16x16xf32>
    %257 = vector.broadcast %255 : f32 to vector<16x16xf32>
    %258 = arith.mulf %257, %256 : vector<16x16xf32>
    %259 = arith.addf %254, %258 : vector<16x16xf32>
    %c23 = arith.constant 23 : index
    %260 = memref.load %arg4[%c23] : memref<98xf32, #tpu.memory_space<smem>>
    %261 = vector.extract_strided_slice %244 {offsets = [3, 0], sizes = [16, 16], strides = [1, 1]} : vector<22x16xf32> to vector<16x16xf32>
    %262 = vector.broadcast %260 : f32 to vector<16x16xf32>
    %263 = arith.mulf %262, %261 : vector<16x16xf32>
    %264 = arith.addf %259, %263 : vector<16x16xf32>
    %c30 = arith.constant 30 : index
    %265 = memref.load %arg4[%c30] : memref<98xf32, #tpu.memory_space<smem>>
    %266 = vector.extract_strided_slice %244 {offsets = [4, 0], sizes = [16, 16], strides = [1, 1]} : vector<22x16xf32> to vector<16x16xf32>
    %267 = vector.broadcast %265 : f32 to vector<16x16xf32>
    %268 = arith.mulf %267, %266 : vector<16x16xf32>
    %269 = arith.addf %264, %268 : vector<16x16xf32>
    %c37 = arith.constant 37 : index
    %270 = memref.load %arg4[%c37] : memref<98xf32, #tpu.memory_space<smem>>
    %271 = vector.extract_strided_slice %244 {offsets = [5, 0], sizes = [16, 16], strides = [1, 1]} : vector<22x16xf32> to vector<16x16xf32>
    %272 = vector.broadcast %270 : f32 to vector<16x16xf32>
    %273 = arith.mulf %272, %271 : vector<16x16xf32>
    %274 = arith.addf %269, %273 : vector<16x16xf32>
    %c44 = arith.constant 44 : index
    %275 = memref.load %arg4[%c44] : memref<98xf32, #tpu.memory_space<smem>>
    %276 = vector.extract_strided_slice %244 {offsets = [6, 0], sizes = [16, 16], strides = [1, 1]} : vector<22x16xf32> to vector<16x16xf32>
    %277 = vector.broadcast %275 : f32 to vector<16x16xf32>
    %278 = arith.mulf %277, %276 : vector<16x16xf32>
    %279 = arith.addf %274, %278 : vector<16x16xf32>
    %c0_116 = arith.constant 0 : index
    %c0_117 = arith.constant 0 : index
    %c3_118 = arith.constant 3 : index
    %280 = vector.load %arg6[%c0_116, %c0_117, %c3_118] : memref<2x22x22xf32, #tpu.memory_space<vmem>>, vector<1x22x16xf32>
    %281 = vector.shape_cast %280 : vector<1x22x16xf32> to vector<22x16xf32>
    %c3_119 = arith.constant 3 : index
    %282 = memref.load %arg4[%c3_119] : memref<98xf32, #tpu.memory_space<smem>>
    %283 = vector.extract_strided_slice %281 {offsets = [0, 0], sizes = [16, 16], strides = [1, 1]} : vector<22x16xf32> to vector<16x16xf32>
    %284 = vector.broadcast %282 : f32 to vector<16x16xf32>
    %285 = arith.mulf %284, %283 : vector<16x16xf32>
    %286 = arith.addf %279, %285 : vector<16x16xf32>
    %c10_120 = arith.constant 10 : index
    %287 = memref.load %arg4[%c10_120] : memref<98xf32, #tpu.memory_space<smem>>
    %288 = vector.extract_strided_slice %281 {offsets = [1, 0], sizes = [16, 16], strides = [1, 1]} : vector<22x16xf32> to vector<16x16xf32>
    %289 = vector.broadcast %287 : f32 to vector<16x16xf32>
    %290 = arith.mulf %289, %288 : vector<16x16xf32>
    %291 = arith.addf %286, %290 : vector<16x16xf32>
    %c17_121 = arith.constant 17 : index
    %292 = memref.load %arg4[%c17_121] : memref<98xf32, #tpu.memory_space<smem>>
    %293 = vector.extract_strided_slice %281 {offsets = [2, 0], sizes = [16, 16], strides = [1, 1]} : vector<22x16xf32> to vector<16x16xf32>
    %294 = vector.broadcast %292 : f32 to vector<16x16xf32>
    %295 = arith.mulf %294, %293 : vector<16x16xf32>
    %296 = arith.addf %291, %295 : vector<16x16xf32>
    %c24 = arith.constant 24 : index
    %297 = memref.load %arg4[%c24] : memref<98xf32, #tpu.memory_space<smem>>
    %298 = vector.extract_strided_slice %281 {offsets = [3, 0], sizes = [16, 16], strides = [1, 1]} : vector<22x16xf32> to vector<16x16xf32>
    %299 = vector.broadcast %297 : f32 to vector<16x16xf32>
    %300 = arith.mulf %299, %298 : vector<16x16xf32>
    %301 = arith.addf %296, %300 : vector<16x16xf32>
    %c31 = arith.constant 31 : index
    %302 = memref.load %arg4[%c31] : memref<98xf32, #tpu.memory_space<smem>>
    %303 = vector.extract_strided_slice %281 {offsets = [4, 0], sizes = [16, 16], strides = [1, 1]} : vector<22x16xf32> to vector<16x16xf32>
    %304 = vector.broadcast %302 : f32 to vector<16x16xf32>
    %305 = arith.mulf %304, %303 : vector<16x16xf32>
    %306 = arith.addf %301, %305 : vector<16x16xf32>
    %c38 = arith.constant 38 : index
    %307 = memref.load %arg4[%c38] : memref<98xf32, #tpu.memory_space<smem>>
    %308 = vector.extract_strided_slice %281 {offsets = [5, 0], sizes = [16, 16], strides = [1, 1]} : vector<22x16xf32> to vector<16x16xf32>
    %309 = vector.broadcast %307 : f32 to vector<16x16xf32>
    %310 = arith.mulf %309, %308 : vector<16x16xf32>
    %311 = arith.addf %306, %310 : vector<16x16xf32>
    %c45 = arith.constant 45 : index
    %312 = memref.load %arg4[%c45] : memref<98xf32, #tpu.memory_space<smem>>
    %313 = vector.extract_strided_slice %281 {offsets = [6, 0], sizes = [16, 16], strides = [1, 1]} : vector<22x16xf32> to vector<16x16xf32>
    %314 = vector.broadcast %312 : f32 to vector<16x16xf32>
    %315 = arith.mulf %314, %313 : vector<16x16xf32>
    %316 = arith.addf %311, %315 : vector<16x16xf32>
    %c0_122 = arith.constant 0 : index
    %c0_123 = arith.constant 0 : index
    %c4_124 = arith.constant 4 : index
    %317 = vector.load %arg6[%c0_122, %c0_123, %c4_124] : memref<2x22x22xf32, #tpu.memory_space<vmem>>, vector<1x22x16xf32>
    %318 = vector.shape_cast %317 : vector<1x22x16xf32> to vector<22x16xf32>
    %c4_125 = arith.constant 4 : index
    %319 = memref.load %arg4[%c4_125] : memref<98xf32, #tpu.memory_space<smem>>
    %320 = vector.extract_strided_slice %318 {offsets = [0, 0], sizes = [16, 16], strides = [1, 1]} : vector<22x16xf32> to vector<16x16xf32>
    %321 = vector.broadcast %319 : f32 to vector<16x16xf32>
    %322 = arith.mulf %321, %320 : vector<16x16xf32>
    %323 = arith.addf %316, %322 : vector<16x16xf32>
    %c11_126 = arith.constant 11 : index
    %324 = memref.load %arg4[%c11_126] : memref<98xf32, #tpu.memory_space<smem>>
    %325 = vector.extract_strided_slice %318 {offsets = [1, 0], sizes = [16, 16], strides = [1, 1]} : vector<22x16xf32> to vector<16x16xf32>
    %326 = vector.broadcast %324 : f32 to vector<16x16xf32>
    %327 = arith.mulf %326, %325 : vector<16x16xf32>
    %328 = arith.addf %323, %327 : vector<16x16xf32>
    %c18_127 = arith.constant 18 : index
    %329 = memref.load %arg4[%c18_127] : memref<98xf32, #tpu.memory_space<smem>>
    %330 = vector.extract_strided_slice %318 {offsets = [2, 0], sizes = [16, 16], strides = [1, 1]} : vector<22x16xf32> to vector<16x16xf32>
    %331 = vector.broadcast %329 : f32 to vector<16x16xf32>
    %332 = arith.mulf %331, %330 : vector<16x16xf32>
    %333 = arith.addf %328, %332 : vector<16x16xf32>
    %c25 = arith.constant 25 : index
    %334 = memref.load %arg4[%c25] : memref<98xf32, #tpu.memory_space<smem>>
    %335 = vector.extract_strided_slice %318 {offsets = [3, 0], sizes = [16, 16], strides = [1, 1]} : vector<22x16xf32> to vector<16x16xf32>
    %336 = vector.broadcast %334 : f32 to vector<16x16xf32>
    %337 = arith.mulf %336, %335 : vector<16x16xf32>
    %338 = arith.addf %333, %337 : vector<16x16xf32>
    %c32 = arith.constant 32 : index
    %339 = memref.load %arg4[%c32] : memref<98xf32, #tpu.memory_space<smem>>
    %340 = vector.extract_strided_slice %318 {offsets = [4, 0], sizes = [16, 16], strides = [1, 1]} : vector<22x16xf32> to vector<16x16xf32>
    %341 = vector.broadcast %339 : f32 to vector<16x16xf32>
    %342 = arith.mulf %341, %340 : vector<16x16xf32>
    %343 = arith.addf %338, %342 : vector<16x16xf32>
    %c39 = arith.constant 39 : index
    %344 = memref.load %arg4[%c39] : memref<98xf32, #tpu.memory_space<smem>>
    %345 = vector.extract_strided_slice %318 {offsets = [5, 0], sizes = [16, 16], strides = [1, 1]} : vector<22x16xf32> to vector<16x16xf32>
    %346 = vector.broadcast %344 : f32 to vector<16x16xf32>
    %347 = arith.mulf %346, %345 : vector<16x16xf32>
    %348 = arith.addf %343, %347 : vector<16x16xf32>
    %c46 = arith.constant 46 : index
    %349 = memref.load %arg4[%c46] : memref<98xf32, #tpu.memory_space<smem>>
    %350 = vector.extract_strided_slice %318 {offsets = [6, 0], sizes = [16, 16], strides = [1, 1]} : vector<22x16xf32> to vector<16x16xf32>
    %351 = vector.broadcast %349 : f32 to vector<16x16xf32>
    %352 = arith.mulf %351, %350 : vector<16x16xf32>
    %353 = arith.addf %348, %352 : vector<16x16xf32>
    %c0_128 = arith.constant 0 : index
    %c0_129 = arith.constant 0 : index
    %c5_130 = arith.constant 5 : index
    %354 = vector.load %arg6[%c0_128, %c0_129, %c5_130] : memref<2x22x22xf32, #tpu.memory_space<vmem>>, vector<1x22x16xf32>
    %355 = vector.shape_cast %354 : vector<1x22x16xf32> to vector<22x16xf32>
    %c5_131 = arith.constant 5 : index
    %356 = memref.load %arg4[%c5_131] : memref<98xf32, #tpu.memory_space<smem>>
    %357 = vector.extract_strided_slice %355 {offsets = [0, 0], sizes = [16, 16], strides = [1, 1]} : vector<22x16xf32> to vector<16x16xf32>
    %358 = vector.broadcast %356 : f32 to vector<16x16xf32>
    %359 = arith.mulf %358, %357 : vector<16x16xf32>
    %360 = arith.addf %353, %359 : vector<16x16xf32>
    %c12_132 = arith.constant 12 : index
    %361 = memref.load %arg4[%c12_132] : memref<98xf32, #tpu.memory_space<smem>>
    %362 = vector.extract_strided_slice %355 {offsets = [1, 0], sizes = [16, 16], strides = [1, 1]} : vector<22x16xf32> to vector<16x16xf32>
    %363 = vector.broadcast %361 : f32 to vector<16x16xf32>
    %364 = arith.mulf %363, %362 : vector<16x16xf32>
    %365 = arith.addf %360, %364 : vector<16x16xf32>
    %c19 = arith.constant 19 : index
    %366 = memref.load %arg4[%c19] : memref<98xf32, #tpu.memory_space<smem>>
    %367 = vector.extract_strided_slice %355 {offsets = [2, 0], sizes = [16, 16], strides = [1, 1]} : vector<22x16xf32> to vector<16x16xf32>
    %368 = vector.broadcast %366 : f32 to vector<16x16xf32>
    %369 = arith.mulf %368, %367 : vector<16x16xf32>
    %370 = arith.addf %365, %369 : vector<16x16xf32>
    %c26 = arith.constant 26 : index
    %371 = memref.load %arg4[%c26] : memref<98xf32, #tpu.memory_space<smem>>
    %372 = vector.extract_strided_slice %355 {offsets = [3, 0], sizes = [16, 16], strides = [1, 1]} : vector<22x16xf32> to vector<16x16xf32>
    %373 = vector.broadcast %371 : f32 to vector<16x16xf32>
    %374 = arith.mulf %373, %372 : vector<16x16xf32>
    %375 = arith.addf %370, %374 : vector<16x16xf32>
    %c33 = arith.constant 33 : index
    %376 = memref.load %arg4[%c33] : memref<98xf32, #tpu.memory_space<smem>>
    %377 = vector.extract_strided_slice %355 {offsets = [4, 0], sizes = [16, 16], strides = [1, 1]} : vector<22x16xf32> to vector<16x16xf32>
    %378 = vector.broadcast %376 : f32 to vector<16x16xf32>
    %379 = arith.mulf %378, %377 : vector<16x16xf32>
    %380 = arith.addf %375, %379 : vector<16x16xf32>
    %c40 = arith.constant 40 : index
    %381 = memref.load %arg4[%c40] : memref<98xf32, #tpu.memory_space<smem>>
    %382 = vector.extract_strided_slice %355 {offsets = [5, 0], sizes = [16, 16], strides = [1, 1]} : vector<22x16xf32> to vector<16x16xf32>
    %383 = vector.broadcast %381 : f32 to vector<16x16xf32>
    %384 = arith.mulf %383, %382 : vector<16x16xf32>
    %385 = arith.addf %380, %384 : vector<16x16xf32>
    %c47 = arith.constant 47 : index
    %386 = memref.load %arg4[%c47] : memref<98xf32, #tpu.memory_space<smem>>
    %387 = vector.extract_strided_slice %355 {offsets = [6, 0], sizes = [16, 16], strides = [1, 1]} : vector<22x16xf32> to vector<16x16xf32>
    %388 = vector.broadcast %386 : f32 to vector<16x16xf32>
    %389 = arith.mulf %388, %387 : vector<16x16xf32>
    %390 = arith.addf %385, %389 : vector<16x16xf32>
    %c0_133 = arith.constant 0 : index
    %c0_134 = arith.constant 0 : index
    %c6_135 = arith.constant 6 : index
    %391 = vector.load %arg6[%c0_133, %c0_134, %c6_135] : memref<2x22x22xf32, #tpu.memory_space<vmem>>, vector<1x22x16xf32>
    %392 = vector.shape_cast %391 : vector<1x22x16xf32> to vector<22x16xf32>
    %c6_136 = arith.constant 6 : index
    %393 = memref.load %arg4[%c6_136] : memref<98xf32, #tpu.memory_space<smem>>
    %394 = vector.extract_strided_slice %392 {offsets = [0, 0], sizes = [16, 16], strides = [1, 1]} : vector<22x16xf32> to vector<16x16xf32>
    %395 = vector.broadcast %393 : f32 to vector<16x16xf32>
    %396 = arith.mulf %395, %394 : vector<16x16xf32>
    %397 = arith.addf %390, %396 : vector<16x16xf32>
    %c13_137 = arith.constant 13 : index
    %398 = memref.load %arg4[%c13_137] : memref<98xf32, #tpu.memory_space<smem>>
    %399 = vector.extract_strided_slice %392 {offsets = [1, 0], sizes = [16, 16], strides = [1, 1]} : vector<22x16xf32> to vector<16x16xf32>
    %400 = vector.broadcast %398 : f32 to vector<16x16xf32>
    %401 = arith.mulf %400, %399 : vector<16x16xf32>
    %402 = arith.addf %397, %401 : vector<16x16xf32>
    %c20 = arith.constant 20 : index
    %403 = memref.load %arg4[%c20] : memref<98xf32, #tpu.memory_space<smem>>
    %404 = vector.extract_strided_slice %392 {offsets = [2, 0], sizes = [16, 16], strides = [1, 1]} : vector<22x16xf32> to vector<16x16xf32>
    %405 = vector.broadcast %403 : f32 to vector<16x16xf32>
    %406 = arith.mulf %405, %404 : vector<16x16xf32>
    %407 = arith.addf %402, %406 : vector<16x16xf32>
    %c27 = arith.constant 27 : index
    %408 = memref.load %arg4[%c27] : memref<98xf32, #tpu.memory_space<smem>>
    %409 = vector.extract_strided_slice %392 {offsets = [3, 0], sizes = [16, 16], strides = [1, 1]} : vector<22x16xf32> to vector<16x16xf32>
    %410 = vector.broadcast %408 : f32 to vector<16x16xf32>
    %411 = arith.mulf %410, %409 : vector<16x16xf32>
    %412 = arith.addf %407, %411 : vector<16x16xf32>
    %c34 = arith.constant 34 : index
    %413 = memref.load %arg4[%c34] : memref<98xf32, #tpu.memory_space<smem>>
    %414 = vector.extract_strided_slice %392 {offsets = [4, 0], sizes = [16, 16], strides = [1, 1]} : vector<22x16xf32> to vector<16x16xf32>
    %415 = vector.broadcast %413 : f32 to vector<16x16xf32>
    %416 = arith.mulf %415, %414 : vector<16x16xf32>
    %417 = arith.addf %412, %416 : vector<16x16xf32>
    %c41 = arith.constant 41 : index
    %418 = memref.load %arg4[%c41] : memref<98xf32, #tpu.memory_space<smem>>
    %419 = vector.extract_strided_slice %392 {offsets = [5, 0], sizes = [16, 16], strides = [1, 1]} : vector<22x16xf32> to vector<16x16xf32>
    %420 = vector.broadcast %418 : f32 to vector<16x16xf32>
    %421 = arith.mulf %420, %419 : vector<16x16xf32>
    %422 = arith.addf %417, %421 : vector<16x16xf32>
    %c48 = arith.constant 48 : index
    %423 = memref.load %arg4[%c48] : memref<98xf32, #tpu.memory_space<smem>>
    %424 = vector.extract_strided_slice %392 {offsets = [6, 0], sizes = [16, 16], strides = [1, 1]} : vector<22x16xf32> to vector<16x16xf32>
    %425 = vector.broadcast %423 : f32 to vector<16x16xf32>
    %426 = arith.mulf %425, %424 : vector<16x16xf32>
    %427 = arith.addf %422, %426 : vector<16x16xf32>
    %c1_138 = arith.constant 1 : index
    %c0_139 = arith.constant 0 : index
    %c0_140 = arith.constant 0 : index
    %428 = vector.load %arg6[%c1_138, %c0_139, %c0_140] : memref<2x22x22xf32, #tpu.memory_space<vmem>>, vector<1x22x16xf32>
    %429 = vector.shape_cast %428 : vector<1x22x16xf32> to vector<22x16xf32>
    %c49 = arith.constant 49 : index
    %430 = memref.load %arg4[%c49] : memref<98xf32, #tpu.memory_space<smem>>
    %431 = vector.extract_strided_slice %429 {offsets = [0, 0], sizes = [16, 16], strides = [1, 1]} : vector<22x16xf32> to vector<16x16xf32>
    %432 = vector.broadcast %430 : f32 to vector<16x16xf32>
    %433 = arith.mulf %432, %431 : vector<16x16xf32>
    %434 = arith.addf %427, %433 : vector<16x16xf32>
    %c56 = arith.constant 56 : index
    %435 = memref.load %arg4[%c56] : memref<98xf32, #tpu.memory_space<smem>>
    %436 = vector.extract_strided_slice %429 {offsets = [1, 0], sizes = [16, 16], strides = [1, 1]} : vector<22x16xf32> to vector<16x16xf32>
    %437 = vector.broadcast %435 : f32 to vector<16x16xf32>
    %438 = arith.mulf %437, %436 : vector<16x16xf32>
    %439 = arith.addf %434, %438 : vector<16x16xf32>
    %c63 = arith.constant 63 : index
    %440 = memref.load %arg4[%c63] : memref<98xf32, #tpu.memory_space<smem>>
    %441 = vector.extract_strided_slice %429 {offsets = [2, 0], sizes = [16, 16], strides = [1, 1]} : vector<22x16xf32> to vector<16x16xf32>
    %442 = vector.broadcast %440 : f32 to vector<16x16xf32>
    %443 = arith.mulf %442, %441 : vector<16x16xf32>
    %444 = arith.addf %439, %443 : vector<16x16xf32>
    %c70 = arith.constant 70 : index
    %445 = memref.load %arg4[%c70] : memref<98xf32, #tpu.memory_space<smem>>
    %446 = vector.extract_strided_slice %429 {offsets = [3, 0], sizes = [16, 16], strides = [1, 1]} : vector<22x16xf32> to vector<16x16xf32>
    %447 = vector.broadcast %445 : f32 to vector<16x16xf32>
    %448 = arith.mulf %447, %446 : vector<16x16xf32>
    %449 = arith.addf %444, %448 : vector<16x16xf32>
    %c77 = arith.constant 77 : index
    %450 = memref.load %arg4[%c77] : memref<98xf32, #tpu.memory_space<smem>>
    %451 = vector.extract_strided_slice %429 {offsets = [4, 0], sizes = [16, 16], strides = [1, 1]} : vector<22x16xf32> to vector<16x16xf32>
    %452 = vector.broadcast %450 : f32 to vector<16x16xf32>
    %453 = arith.mulf %452, %451 : vector<16x16xf32>
    %454 = arith.addf %449, %453 : vector<16x16xf32>
    %c84 = arith.constant 84 : index
    %455 = memref.load %arg4[%c84] : memref<98xf32, #tpu.memory_space<smem>>
    %456 = vector.extract_strided_slice %429 {offsets = [5, 0], sizes = [16, 16], strides = [1, 1]} : vector<22x16xf32> to vector<16x16xf32>
    %457 = vector.broadcast %455 : f32 to vector<16x16xf32>
    %458 = arith.mulf %457, %456 : vector<16x16xf32>
    %459 = arith.addf %454, %458 : vector<16x16xf32>
    %c91 = arith.constant 91 : index
    %460 = memref.load %arg4[%c91] : memref<98xf32, #tpu.memory_space<smem>>
    %461 = vector.extract_strided_slice %429 {offsets = [6, 0], sizes = [16, 16], strides = [1, 1]} : vector<22x16xf32> to vector<16x16xf32>
    %462 = vector.broadcast %460 : f32 to vector<16x16xf32>
    %463 = arith.mulf %462, %461 : vector<16x16xf32>
    %464 = arith.addf %459, %463 : vector<16x16xf32>
    %c1_141 = arith.constant 1 : index
    %c0_142 = arith.constant 0 : index
    %c1_143 = arith.constant 1 : index
    %465 = vector.load %arg6[%c1_141, %c0_142, %c1_143] : memref<2x22x22xf32, #tpu.memory_space<vmem>>, vector<1x22x16xf32>
    %466 = vector.shape_cast %465 : vector<1x22x16xf32> to vector<22x16xf32>
    %c50 = arith.constant 50 : index
    %467 = memref.load %arg4[%c50] : memref<98xf32, #tpu.memory_space<smem>>
    %468 = vector.extract_strided_slice %466 {offsets = [0, 0], sizes = [16, 16], strides = [1, 1]} : vector<22x16xf32> to vector<16x16xf32>
    %469 = vector.broadcast %467 : f32 to vector<16x16xf32>
    %470 = arith.mulf %469, %468 : vector<16x16xf32>
    %471 = arith.addf %464, %470 : vector<16x16xf32>
    %c57 = arith.constant 57 : index
    %472 = memref.load %arg4[%c57] : memref<98xf32, #tpu.memory_space<smem>>
    %473 = vector.extract_strided_slice %466 {offsets = [1, 0], sizes = [16, 16], strides = [1, 1]} : vector<22x16xf32> to vector<16x16xf32>
    %474 = vector.broadcast %472 : f32 to vector<16x16xf32>
    %475 = arith.mulf %474, %473 : vector<16x16xf32>
    %476 = arith.addf %471, %475 : vector<16x16xf32>
    %c64 = arith.constant 64 : index
    %477 = memref.load %arg4[%c64] : memref<98xf32, #tpu.memory_space<smem>>
    %478 = vector.extract_strided_slice %466 {offsets = [2, 0], sizes = [16, 16], strides = [1, 1]} : vector<22x16xf32> to vector<16x16xf32>
    %479 = vector.broadcast %477 : f32 to vector<16x16xf32>
    %480 = arith.mulf %479, %478 : vector<16x16xf32>
    %481 = arith.addf %476, %480 : vector<16x16xf32>
    %c71 = arith.constant 71 : index
    %482 = memref.load %arg4[%c71] : memref<98xf32, #tpu.memory_space<smem>>
    %483 = vector.extract_strided_slice %466 {offsets = [3, 0], sizes = [16, 16], strides = [1, 1]} : vector<22x16xf32> to vector<16x16xf32>
    %484 = vector.broadcast %482 : f32 to vector<16x16xf32>
    %485 = arith.mulf %484, %483 : vector<16x16xf32>
    %486 = arith.addf %481, %485 : vector<16x16xf32>
    %c78 = arith.constant 78 : index
    %487 = memref.load %arg4[%c78] : memref<98xf32, #tpu.memory_space<smem>>
    %488 = vector.extract_strided_slice %466 {offsets = [4, 0], sizes = [16, 16], strides = [1, 1]} : vector<22x16xf32> to vector<16x16xf32>
    %489 = vector.broadcast %487 : f32 to vector<16x16xf32>
    %490 = arith.mulf %489, %488 : vector<16x16xf32>
    %491 = arith.addf %486, %490 : vector<16x16xf32>
    %c85 = arith.constant 85 : index
    %492 = memref.load %arg4[%c85] : memref<98xf32, #tpu.memory_space<smem>>
    %493 = vector.extract_strided_slice %466 {offsets = [5, 0], sizes = [16, 16], strides = [1, 1]} : vector<22x16xf32> to vector<16x16xf32>
    %494 = vector.broadcast %492 : f32 to vector<16x16xf32>
    %495 = arith.mulf %494, %493 : vector<16x16xf32>
    %496 = arith.addf %491, %495 : vector<16x16xf32>
    %c92 = arith.constant 92 : index
    %497 = memref.load %arg4[%c92] : memref<98xf32, #tpu.memory_space<smem>>
    %498 = vector.extract_strided_slice %466 {offsets = [6, 0], sizes = [16, 16], strides = [1, 1]} : vector<22x16xf32> to vector<16x16xf32>
    %499 = vector.broadcast %497 : f32 to vector<16x16xf32>
    %500 = arith.mulf %499, %498 : vector<16x16xf32>
    %501 = arith.addf %496, %500 : vector<16x16xf32>
    %c1_144 = arith.constant 1 : index
    %c0_145 = arith.constant 0 : index
    %c2_146 = arith.constant 2 : index
    %502 = vector.load %arg6[%c1_144, %c0_145, %c2_146] : memref<2x22x22xf32, #tpu.memory_space<vmem>>, vector<1x22x16xf32>
    %503 = vector.shape_cast %502 : vector<1x22x16xf32> to vector<22x16xf32>
    %c51 = arith.constant 51 : index
    %504 = memref.load %arg4[%c51] : memref<98xf32, #tpu.memory_space<smem>>
    %505 = vector.extract_strided_slice %503 {offsets = [0, 0], sizes = [16, 16], strides = [1, 1]} : vector<22x16xf32> to vector<16x16xf32>
    %506 = vector.broadcast %504 : f32 to vector<16x16xf32>
    %507 = arith.mulf %506, %505 : vector<16x16xf32>
    %508 = arith.addf %501, %507 : vector<16x16xf32>
    %c58 = arith.constant 58 : index
    %509 = memref.load %arg4[%c58] : memref<98xf32, #tpu.memory_space<smem>>
    %510 = vector.extract_strided_slice %503 {offsets = [1, 0], sizes = [16, 16], strides = [1, 1]} : vector<22x16xf32> to vector<16x16xf32>
    %511 = vector.broadcast %509 : f32 to vector<16x16xf32>
    %512 = arith.mulf %511, %510 : vector<16x16xf32>
    %513 = arith.addf %508, %512 : vector<16x16xf32>
    %c65 = arith.constant 65 : index
    %514 = memref.load %arg4[%c65] : memref<98xf32, #tpu.memory_space<smem>>
    %515 = vector.extract_strided_slice %503 {offsets = [2, 0], sizes = [16, 16], strides = [1, 1]} : vector<22x16xf32> to vector<16x16xf32>
    %516 = vector.broadcast %514 : f32 to vector<16x16xf32>
    %517 = arith.mulf %516, %515 : vector<16x16xf32>
    %518 = arith.addf %513, %517 : vector<16x16xf32>
    %c72 = arith.constant 72 : index
    %519 = memref.load %arg4[%c72] : memref<98xf32, #tpu.memory_space<smem>>
    %520 = vector.extract_strided_slice %503 {offsets = [3, 0], sizes = [16, 16], strides = [1, 1]} : vector<22x16xf32> to vector<16x16xf32>
    %521 = vector.broadcast %519 : f32 to vector<16x16xf32>
    %522 = arith.mulf %521, %520 : vector<16x16xf32>
    %523 = arith.addf %518, %522 : vector<16x16xf32>
    %c79 = arith.constant 79 : index
    %524 = memref.load %arg4[%c79] : memref<98xf32, #tpu.memory_space<smem>>
    %525 = vector.extract_strided_slice %503 {offsets = [4, 0], sizes = [16, 16], strides = [1, 1]} : vector<22x16xf32> to vector<16x16xf32>
    %526 = vector.broadcast %524 : f32 to vector<16x16xf32>
    %527 = arith.mulf %526, %525 : vector<16x16xf32>
    %528 = arith.addf %523, %527 : vector<16x16xf32>
    %c86 = arith.constant 86 : index
    %529 = memref.load %arg4[%c86] : memref<98xf32, #tpu.memory_space<smem>>
    %530 = vector.extract_strided_slice %503 {offsets = [5, 0], sizes = [16, 16], strides = [1, 1]} : vector<22x16xf32> to vector<16x16xf32>
    %531 = vector.broadcast %529 : f32 to vector<16x16xf32>
    %532 = arith.mulf %531, %530 : vector<16x16xf32>
    %533 = arith.addf %528, %532 : vector<16x16xf32>
    %c93 = arith.constant 93 : index
    %534 = memref.load %arg4[%c93] : memref<98xf32, #tpu.memory_space<smem>>
    %535 = vector.extract_strided_slice %503 {offsets = [6, 0], sizes = [16, 16], strides = [1, 1]} : vector<22x16xf32> to vector<16x16xf32>
    %536 = vector.broadcast %534 : f32 to vector<16x16xf32>
    %537 = arith.mulf %536, %535 : vector<16x16xf32>
    %538 = arith.addf %533, %537 : vector<16x16xf32>
    %c1_147 = arith.constant 1 : index
    %c0_148 = arith.constant 0 : index
    %c3_149 = arith.constant 3 : index
    %539 = vector.load %arg6[%c1_147, %c0_148, %c3_149] : memref<2x22x22xf32, #tpu.memory_space<vmem>>, vector<1x22x16xf32>
    %540 = vector.shape_cast %539 : vector<1x22x16xf32> to vector<22x16xf32>
    %c52 = arith.constant 52 : index
    %541 = memref.load %arg4[%c52] : memref<98xf32, #tpu.memory_space<smem>>
    %542 = vector.extract_strided_slice %540 {offsets = [0, 0], sizes = [16, 16], strides = [1, 1]} : vector<22x16xf32> to vector<16x16xf32>
    %543 = vector.broadcast %541 : f32 to vector<16x16xf32>
    %544 = arith.mulf %543, %542 : vector<16x16xf32>
    %545 = arith.addf %538, %544 : vector<16x16xf32>
    %c59 = arith.constant 59 : index
    %546 = memref.load %arg4[%c59] : memref<98xf32, #tpu.memory_space<smem>>
    %547 = vector.extract_strided_slice %540 {offsets = [1, 0], sizes = [16, 16], strides = [1, 1]} : vector<22x16xf32> to vector<16x16xf32>
    %548 = vector.broadcast %546 : f32 to vector<16x16xf32>
    %549 = arith.mulf %548, %547 : vector<16x16xf32>
    %550 = arith.addf %545, %549 : vector<16x16xf32>
    %c66 = arith.constant 66 : index
    %551 = memref.load %arg4[%c66] : memref<98xf32, #tpu.memory_space<smem>>
    %552 = vector.extract_strided_slice %540 {offsets = [2, 0], sizes = [16, 16], strides = [1, 1]} : vector<22x16xf32> to vector<16x16xf32>
    %553 = vector.broadcast %551 : f32 to vector<16x16xf32>
    %554 = arith.mulf %553, %552 : vector<16x16xf32>
    %555 = arith.addf %550, %554 : vector<16x16xf32>
    %c73 = arith.constant 73 : index
    %556 = memref.load %arg4[%c73] : memref<98xf32, #tpu.memory_space<smem>>
    %557 = vector.extract_strided_slice %540 {offsets = [3, 0], sizes = [16, 16], strides = [1, 1]} : vector<22x16xf32> to vector<16x16xf32>
    %558 = vector.broadcast %556 : f32 to vector<16x16xf32>
    %559 = arith.mulf %558, %557 : vector<16x16xf32>
    %560 = arith.addf %555, %559 : vector<16x16xf32>
    %c80 = arith.constant 80 : index
    %561 = memref.load %arg4[%c80] : memref<98xf32, #tpu.memory_space<smem>>
    %562 = vector.extract_strided_slice %540 {offsets = [4, 0], sizes = [16, 16], strides = [1, 1]} : vector<22x16xf32> to vector<16x16xf32>
    %563 = vector.broadcast %561 : f32 to vector<16x16xf32>
    %564 = arith.mulf %563, %562 : vector<16x16xf32>
    %565 = arith.addf %560, %564 : vector<16x16xf32>
    %c87 = arith.constant 87 : index
    %566 = memref.load %arg4[%c87] : memref<98xf32, #tpu.memory_space<smem>>
    %567 = vector.extract_strided_slice %540 {offsets = [5, 0], sizes = [16, 16], strides = [1, 1]} : vector<22x16xf32> to vector<16x16xf32>
    %568 = vector.broadcast %566 : f32 to vector<16x16xf32>
    %569 = arith.mulf %568, %567 : vector<16x16xf32>
    %570 = arith.addf %565, %569 : vector<16x16xf32>
    %c94 = arith.constant 94 : index
    %571 = memref.load %arg4[%c94] : memref<98xf32, #tpu.memory_space<smem>>
    %572 = vector.extract_strided_slice %540 {offsets = [6, 0], sizes = [16, 16], strides = [1, 1]} : vector<22x16xf32> to vector<16x16xf32>
    %573 = vector.broadcast %571 : f32 to vector<16x16xf32>
    %574 = arith.mulf %573, %572 : vector<16x16xf32>
    %575 = arith.addf %570, %574 : vector<16x16xf32>
    %c1_150 = arith.constant 1 : index
    %c0_151 = arith.constant 0 : index
    %c4_152 = arith.constant 4 : index
    %576 = vector.load %arg6[%c1_150, %c0_151, %c4_152] : memref<2x22x22xf32, #tpu.memory_space<vmem>>, vector<1x22x16xf32>
    %577 = vector.shape_cast %576 : vector<1x22x16xf32> to vector<22x16xf32>
    %c53 = arith.constant 53 : index
    %578 = memref.load %arg4[%c53] : memref<98xf32, #tpu.memory_space<smem>>
    %579 = vector.extract_strided_slice %577 {offsets = [0, 0], sizes = [16, 16], strides = [1, 1]} : vector<22x16xf32> to vector<16x16xf32>
    %580 = vector.broadcast %578 : f32 to vector<16x16xf32>
    %581 = arith.mulf %580, %579 : vector<16x16xf32>
    %582 = arith.addf %575, %581 : vector<16x16xf32>
    %c60 = arith.constant 60 : index
    %583 = memref.load %arg4[%c60] : memref<98xf32, #tpu.memory_space<smem>>
    %584 = vector.extract_strided_slice %577 {offsets = [1, 0], sizes = [16, 16], strides = [1, 1]} : vector<22x16xf32> to vector<16x16xf32>
    %585 = vector.broadcast %583 : f32 to vector<16x16xf32>
    %586 = arith.mulf %585, %584 : vector<16x16xf32>
    %587 = arith.addf %582, %586 : vector<16x16xf32>
    %c67 = arith.constant 67 : index
    %588 = memref.load %arg4[%c67] : memref<98xf32, #tpu.memory_space<smem>>
    %589 = vector.extract_strided_slice %577 {offsets = [2, 0], sizes = [16, 16], strides = [1, 1]} : vector<22x16xf32> to vector<16x16xf32>
    %590 = vector.broadcast %588 : f32 to vector<16x16xf32>
    %591 = arith.mulf %590, %589 : vector<16x16xf32>
    %592 = arith.addf %587, %591 : vector<16x16xf32>
    %c74 = arith.constant 74 : index
    %593 = memref.load %arg4[%c74] : memref<98xf32, #tpu.memory_space<smem>>
    %594 = vector.extract_strided_slice %577 {offsets = [3, 0], sizes = [16, 16], strides = [1, 1]} : vector<22x16xf32> to vector<16x16xf32>
    %595 = vector.broadcast %593 : f32 to vector<16x16xf32>
    %596 = arith.mulf %595, %594 : vector<16x16xf32>
    %597 = arith.addf %592, %596 : vector<16x16xf32>
    %c81 = arith.constant 81 : index
    %598 = memref.load %arg4[%c81] : memref<98xf32, #tpu.memory_space<smem>>
    %599 = vector.extract_strided_slice %577 {offsets = [4, 0], sizes = [16, 16], strides = [1, 1]} : vector<22x16xf32> to vector<16x16xf32>
    %600 = vector.broadcast %598 : f32 to vector<16x16xf32>
    %601 = arith.mulf %600, %599 : vector<16x16xf32>
    %602 = arith.addf %597, %601 : vector<16x16xf32>
    %c88 = arith.constant 88 : index
    %603 = memref.load %arg4[%c88] : memref<98xf32, #tpu.memory_space<smem>>
    %604 = vector.extract_strided_slice %577 {offsets = [5, 0], sizes = [16, 16], strides = [1, 1]} : vector<22x16xf32> to vector<16x16xf32>
    %605 = vector.broadcast %603 : f32 to vector<16x16xf32>
    %606 = arith.mulf %605, %604 : vector<16x16xf32>
    %607 = arith.addf %602, %606 : vector<16x16xf32>
    %c95 = arith.constant 95 : index
    %608 = memref.load %arg4[%c95] : memref<98xf32, #tpu.memory_space<smem>>
    %609 = vector.extract_strided_slice %577 {offsets = [6, 0], sizes = [16, 16], strides = [1, 1]} : vector<22x16xf32> to vector<16x16xf32>
    %610 = vector.broadcast %608 : f32 to vector<16x16xf32>
    %611 = arith.mulf %610, %609 : vector<16x16xf32>
    %612 = arith.addf %607, %611 : vector<16x16xf32>
    %c1_153 = arith.constant 1 : index
    %c0_154 = arith.constant 0 : index
    %c5_155 = arith.constant 5 : index
    %613 = vector.load %arg6[%c1_153, %c0_154, %c5_155] : memref<2x22x22xf32, #tpu.memory_space<vmem>>, vector<1x22x16xf32>
    %614 = vector.shape_cast %613 : vector<1x22x16xf32> to vector<22x16xf32>
    %c54 = arith.constant 54 : index
    %615 = memref.load %arg4[%c54] : memref<98xf32, #tpu.memory_space<smem>>
    %616 = vector.extract_strided_slice %614 {offsets = [0, 0], sizes = [16, 16], strides = [1, 1]} : vector<22x16xf32> to vector<16x16xf32>
    %617 = vector.broadcast %615 : f32 to vector<16x16xf32>
    %618 = arith.mulf %617, %616 : vector<16x16xf32>
    %619 = arith.addf %612, %618 : vector<16x16xf32>
    %c61 = arith.constant 61 : index
    %620 = memref.load %arg4[%c61] : memref<98xf32, #tpu.memory_space<smem>>
    %621 = vector.extract_strided_slice %614 {offsets = [1, 0], sizes = [16, 16], strides = [1, 1]} : vector<22x16xf32> to vector<16x16xf32>
    %622 = vector.broadcast %620 : f32 to vector<16x16xf32>
    %623 = arith.mulf %622, %621 : vector<16x16xf32>
    %624 = arith.addf %619, %623 : vector<16x16xf32>
    %c68 = arith.constant 68 : index
    %625 = memref.load %arg4[%c68] : memref<98xf32, #tpu.memory_space<smem>>
    %626 = vector.extract_strided_slice %614 {offsets = [2, 0], sizes = [16, 16], strides = [1, 1]} : vector<22x16xf32> to vector<16x16xf32>
    %627 = vector.broadcast %625 : f32 to vector<16x16xf32>
    %628 = arith.mulf %627, %626 : vector<16x16xf32>
    %629 = arith.addf %624, %628 : vector<16x16xf32>
    %c75 = arith.constant 75 : index
    %630 = memref.load %arg4[%c75] : memref<98xf32, #tpu.memory_space<smem>>
    %631 = vector.extract_strided_slice %614 {offsets = [3, 0], sizes = [16, 16], strides = [1, 1]} : vector<22x16xf32> to vector<16x16xf32>
    %632 = vector.broadcast %630 : f32 to vector<16x16xf32>
    %633 = arith.mulf %632, %631 : vector<16x16xf32>
    %634 = arith.addf %629, %633 : vector<16x16xf32>
    %c82 = arith.constant 82 : index
    %635 = memref.load %arg4[%c82] : memref<98xf32, #tpu.memory_space<smem>>
    %636 = vector.extract_strided_slice %614 {offsets = [4, 0], sizes = [16, 16], strides = [1, 1]} : vector<22x16xf32> to vector<16x16xf32>
    %637 = vector.broadcast %635 : f32 to vector<16x16xf32>
    %638 = arith.mulf %637, %636 : vector<16x16xf32>
    %639 = arith.addf %634, %638 : vector<16x16xf32>
    %c89 = arith.constant 89 : index
    %640 = memref.load %arg4[%c89] : memref<98xf32, #tpu.memory_space<smem>>
    %641 = vector.extract_strided_slice %614 {offsets = [5, 0], sizes = [16, 16], strides = [1, 1]} : vector<22x16xf32> to vector<16x16xf32>
    %642 = vector.broadcast %640 : f32 to vector<16x16xf32>
    %643 = arith.mulf %642, %641 : vector<16x16xf32>
    %644 = arith.addf %639, %643 : vector<16x16xf32>
    %c96 = arith.constant 96 : index
    %645 = memref.load %arg4[%c96] : memref<98xf32, #tpu.memory_space<smem>>
    %646 = vector.extract_strided_slice %614 {offsets = [6, 0], sizes = [16, 16], strides = [1, 1]} : vector<22x16xf32> to vector<16x16xf32>
    %647 = vector.broadcast %645 : f32 to vector<16x16xf32>
    %648 = arith.mulf %647, %646 : vector<16x16xf32>
    %649 = arith.addf %644, %648 : vector<16x16xf32>
    %c1_156 = arith.constant 1 : index
    %c0_157 = arith.constant 0 : index
    %c6_158 = arith.constant 6 : index
    %650 = vector.load %arg6[%c1_156, %c0_157, %c6_158] : memref<2x22x22xf32, #tpu.memory_space<vmem>>, vector<1x22x16xf32>
    %651 = vector.shape_cast %650 : vector<1x22x16xf32> to vector<22x16xf32>
    %c55 = arith.constant 55 : index
    %652 = memref.load %arg4[%c55] : memref<98xf32, #tpu.memory_space<smem>>
    %653 = vector.extract_strided_slice %651 {offsets = [0, 0], sizes = [16, 16], strides = [1, 1]} : vector<22x16xf32> to vector<16x16xf32>
    %654 = vector.broadcast %652 : f32 to vector<16x16xf32>
    %655 = arith.mulf %654, %653 : vector<16x16xf32>
    %656 = arith.addf %649, %655 : vector<16x16xf32>
    %c62 = arith.constant 62 : index
    %657 = memref.load %arg4[%c62] : memref<98xf32, #tpu.memory_space<smem>>
    %658 = vector.extract_strided_slice %651 {offsets = [1, 0], sizes = [16, 16], strides = [1, 1]} : vector<22x16xf32> to vector<16x16xf32>
    %659 = vector.broadcast %657 : f32 to vector<16x16xf32>
    %660 = arith.mulf %659, %658 : vector<16x16xf32>
    %661 = arith.addf %656, %660 : vector<16x16xf32>
    %c69 = arith.constant 69 : index
    %662 = memref.load %arg4[%c69] : memref<98xf32, #tpu.memory_space<smem>>
    %663 = vector.extract_strided_slice %651 {offsets = [2, 0], sizes = [16, 16], strides = [1, 1]} : vector<22x16xf32> to vector<16x16xf32>
    %664 = vector.broadcast %662 : f32 to vector<16x16xf32>
    %665 = arith.mulf %664, %663 : vector<16x16xf32>
    %666 = arith.addf %661, %665 : vector<16x16xf32>
    %c76 = arith.constant 76 : index
    %667 = memref.load %arg4[%c76] : memref<98xf32, #tpu.memory_space<smem>>
    %668 = vector.extract_strided_slice %651 {offsets = [3, 0], sizes = [16, 16], strides = [1, 1]} : vector<22x16xf32> to vector<16x16xf32>
    %669 = vector.broadcast %667 : f32 to vector<16x16xf32>
    %670 = arith.mulf %669, %668 : vector<16x16xf32>
    %671 = arith.addf %666, %670 : vector<16x16xf32>
    %c83 = arith.constant 83 : index
    %672 = memref.load %arg4[%c83] : memref<98xf32, #tpu.memory_space<smem>>
    %673 = vector.extract_strided_slice %651 {offsets = [4, 0], sizes = [16, 16], strides = [1, 1]} : vector<22x16xf32> to vector<16x16xf32>
    %674 = vector.broadcast %672 : f32 to vector<16x16xf32>
    %675 = arith.mulf %674, %673 : vector<16x16xf32>
    %676 = arith.addf %671, %675 : vector<16x16xf32>
    %c90 = arith.constant 90 : index
    %677 = memref.load %arg4[%c90] : memref<98xf32, #tpu.memory_space<smem>>
    %678 = vector.extract_strided_slice %651 {offsets = [5, 0], sizes = [16, 16], strides = [1, 1]} : vector<22x16xf32> to vector<16x16xf32>
    %679 = vector.broadcast %677 : f32 to vector<16x16xf32>
    %680 = arith.mulf %679, %678 : vector<16x16xf32>
    %681 = arith.addf %676, %680 : vector<16x16xf32>
    %c97 = arith.constant 97 : index
    %682 = memref.load %arg4[%c97] : memref<98xf32, #tpu.memory_space<smem>>
    %683 = vector.extract_strided_slice %651 {offsets = [6, 0], sizes = [16, 16], strides = [1, 1]} : vector<22x16xf32> to vector<16x16xf32>
    %684 = vector.broadcast %682 : f32 to vector<16x16xf32>
    %685 = arith.mulf %684, %683 : vector<16x16xf32>
    %686 = arith.addf %681, %685 : vector<16x16xf32>
    %687 = arith.negf %686 : vector<16x16xf32>
    %688 = math.exp %687 : vector<16x16xf32>
    %cst_159 = arith.constant 1.000000e+00 : f32
    %689 = vector.broadcast %cst_159 : f32 to vector<16x16xf32>
    %690 = arith.addf %689, %688 : vector<16x16xf32>
    %691 = arith.divf %689, %690 : vector<16x16xf32>
    %692 = vector.extract_strided_slice %691 {offsets = [0, 0], sizes = [1, 16], strides = [1, 1]} : vector<16x16xf32> to vector<1x16xf32>
    %c0_160 = arith.constant 0 : index
    %c0_161 = arith.constant 0 : index
    %693 = vector.load %arg7[%c0_160, %c0_161] : memref<1x256xf32, #tpu.memory_space<vmem>>, vector<1x16xf32>
    tpu.vector_store %arg7[%c0_160, %c0_161], %692 {strides = array<i32>} : memref<1x256xf32, #tpu.memory_space<vmem>>, vector<1x16xf32>,
    %694 = vector.extract_strided_slice %691 {offsets = [1, 0], sizes = [1, 16], strides = [1, 1]} : vector<16x16xf32> to vector<1x16xf32>
    %c0_162 = arith.constant 0 : index
    %c16_163 = arith.constant 16 : index
    %695 = vector.load %arg7[%c0_162, %c16_163] : memref<1x256xf32, #tpu.memory_space<vmem>>, vector<1x16xf32>
    tpu.vector_store %arg7[%c0_162, %c16_163], %694 {strides = array<i32>} : memref<1x256xf32, #tpu.memory_space<vmem>>, vector<1x16xf32>,
    %696 = vector.extract_strided_slice %691 {offsets = [2, 0], sizes = [1, 16], strides = [1, 1]} : vector<16x16xf32> to vector<1x16xf32>
    %c0_164 = arith.constant 0 : index
    %c32_165 = arith.constant 32 : index
    %697 = vector.load %arg7[%c0_164, %c32_165] : memref<1x256xf32, #tpu.memory_space<vmem>>, vector<1x16xf32>
    tpu.vector_store %arg7[%c0_164, %c32_165], %696 {strides = array<i32>} : memref<1x256xf32, #tpu.memory_space<vmem>>, vector<1x16xf32>,
    %698 = vector.extract_strided_slice %691 {offsets = [3, 0], sizes = [1, 16], strides = [1, 1]} : vector<16x16xf32> to vector<1x16xf32>
    %c0_166 = arith.constant 0 : index
    %c48_167 = arith.constant 48 : index
    %699 = vector.load %arg7[%c0_166, %c48_167] : memref<1x256xf32, #tpu.memory_space<vmem>>, vector<1x16xf32>
    tpu.vector_store %arg7[%c0_166, %c48_167], %698 {strides = array<i32>} : memref<1x256xf32, #tpu.memory_space<vmem>>, vector<1x16xf32>,
    %700 = vector.extract_strided_slice %691 {offsets = [4, 0], sizes = [1, 16], strides = [1, 1]} : vector<16x16xf32> to vector<1x16xf32>
    %c0_168 = arith.constant 0 : index
    %c64_169 = arith.constant 64 : index
    %701 = vector.load %arg7[%c0_168, %c64_169] : memref<1x256xf32, #tpu.memory_space<vmem>>, vector<1x16xf32>
    tpu.vector_store %arg7[%c0_168, %c64_169], %700 {strides = array<i32>} : memref<1x256xf32, #tpu.memory_space<vmem>>, vector<1x16xf32>,
    %702 = vector.extract_strided_slice %691 {offsets = [5, 0], sizes = [1, 16], strides = [1, 1]} : vector<16x16xf32> to vector<1x16xf32>
    %c0_170 = arith.constant 0 : index
    %c80_171 = arith.constant 80 : index
    %703 = vector.load %arg7[%c0_170, %c80_171] : memref<1x256xf32, #tpu.memory_space<vmem>>, vector<1x16xf32>
    tpu.vector_store %arg7[%c0_170, %c80_171], %702 {strides = array<i32>} : memref<1x256xf32, #tpu.memory_space<vmem>>, vector<1x16xf32>,
    %704 = vector.extract_strided_slice %691 {offsets = [6, 0], sizes = [1, 16], strides = [1, 1]} : vector<16x16xf32> to vector<1x16xf32>
    %c0_172 = arith.constant 0 : index
    %c96_173 = arith.constant 96 : index
    %705 = vector.load %arg7[%c0_172, %c96_173] : memref<1x256xf32, #tpu.memory_space<vmem>>, vector<1x16xf32>
    tpu.vector_store %arg7[%c0_172, %c96_173], %704 {strides = array<i32>} : memref<1x256xf32, #tpu.memory_space<vmem>>, vector<1x16xf32>,
    %706 = vector.extract_strided_slice %691 {offsets = [7, 0], sizes = [1, 16], strides = [1, 1]} : vector<16x16xf32> to vector<1x16xf32>
    %c0_174 = arith.constant 0 : index
    %c112 = arith.constant 112 : index
    %707 = vector.load %arg7[%c0_174, %c112] : memref<1x256xf32, #tpu.memory_space<vmem>>, vector<1x16xf32>
    tpu.vector_store %arg7[%c0_174, %c112], %706 {strides = array<i32>} : memref<1x256xf32, #tpu.memory_space<vmem>>, vector<1x16xf32>,
    %708 = vector.extract_strided_slice %691 {offsets = [8, 0], sizes = [1, 16], strides = [1, 1]} : vector<16x16xf32> to vector<1x16xf32>
    %c0_175 = arith.constant 0 : index
    %c128 = arith.constant 128 : index
    %709 = vector.load %arg7[%c0_175, %c128] : memref<1x256xf32, #tpu.memory_space<vmem>>, vector<1x16xf32>
    tpu.vector_store %arg7[%c0_175, %c128], %708 {strides = array<i32>} : memref<1x256xf32, #tpu.memory_space<vmem>>, vector<1x16xf32>,
    %710 = vector.extract_strided_slice %691 {offsets = [9, 0], sizes = [1, 16], strides = [1, 1]} : vector<16x16xf32> to vector<1x16xf32>
    %c0_176 = arith.constant 0 : index
    %c144 = arith.constant 144 : index
    %711 = vector.load %arg7[%c0_176, %c144] : memref<1x256xf32, #tpu.memory_space<vmem>>, vector<1x16xf32>
    tpu.vector_store %arg7[%c0_176, %c144], %710 {strides = array<i32>} : memref<1x256xf32, #tpu.memory_space<vmem>>, vector<1x16xf32>,
    %712 = vector.extract_strided_slice %691 {offsets = [10, 0], sizes = [1, 16], strides = [1, 1]} : vector<16x16xf32> to vector<1x16xf32>
    %c0_177 = arith.constant 0 : index
    %c160 = arith.constant 160 : index
    %713 = vector.load %arg7[%c0_177, %c160] : memref<1x256xf32, #tpu.memory_space<vmem>>, vector<1x16xf32>
    tpu.vector_store %arg7[%c0_177, %c160], %712 {strides = array<i32>} : memref<1x256xf32, #tpu.memory_space<vmem>>, vector<1x16xf32>,
    %714 = vector.extract_strided_slice %691 {offsets = [11, 0], sizes = [1, 16], strides = [1, 1]} : vector<16x16xf32> to vector<1x16xf32>
    %c0_178 = arith.constant 0 : index
    %c176 = arith.constant 176 : index
    %715 = vector.load %arg7[%c0_178, %c176] : memref<1x256xf32, #tpu.memory_space<vmem>>, vector<1x16xf32>
    tpu.vector_store %arg7[%c0_178, %c176], %714 {strides = array<i32>} : memref<1x256xf32, #tpu.memory_space<vmem>>, vector<1x16xf32>,
    %716 = vector.extract_strided_slice %691 {offsets = [12, 0], sizes = [1, 16], strides = [1, 1]} : vector<16x16xf32> to vector<1x16xf32>
    %c0_179 = arith.constant 0 : index
    %c192 = arith.constant 192 : index
    %717 = vector.load %arg7[%c0_179, %c192] : memref<1x256xf32, #tpu.memory_space<vmem>>, vector<1x16xf32>
    tpu.vector_store %arg7[%c0_179, %c192], %716 {strides = array<i32>} : memref<1x256xf32, #tpu.memory_space<vmem>>, vector<1x16xf32>,
    %718 = vector.extract_strided_slice %691 {offsets = [13, 0], sizes = [1, 16], strides = [1, 1]} : vector<16x16xf32> to vector<1x16xf32>
    %c0_180 = arith.constant 0 : index
    %c208 = arith.constant 208 : index
    %719 = vector.load %arg7[%c0_180, %c208] : memref<1x256xf32, #tpu.memory_space<vmem>>, vector<1x16xf32>
    tpu.vector_store %arg7[%c0_180, %c208], %718 {strides = array<i32>} : memref<1x256xf32, #tpu.memory_space<vmem>>, vector<1x16xf32>,
    %720 = vector.extract_strided_slice %691 {offsets = [14, 0], sizes = [1, 16], strides = [1, 1]} : vector<16x16xf32> to vector<1x16xf32>
    %c0_181 = arith.constant 0 : index
    %c224 = arith.constant 224 : index
    %721 = vector.load %arg7[%c0_181, %c224] : memref<1x256xf32, #tpu.memory_space<vmem>>, vector<1x16xf32>
    tpu.vector_store %arg7[%c0_181, %c224], %720 {strides = array<i32>} : memref<1x256xf32, #tpu.memory_space<vmem>>, vector<1x16xf32>,
    %722 = vector.extract_strided_slice %691 {offsets = [15, 0], sizes = [1, 16], strides = [1, 1]} : vector<16x16xf32> to vector<1x16xf32>
    %c0_182 = arith.constant 0 : index
    %c240 = arith.constant 240 : index
    %723 = vector.load %arg7[%c0_182, %c240] : memref<1x256xf32, #tpu.memory_space<vmem>>, vector<1x16xf32>
    tpu.vector_store %arg7[%c0_182, %c240], %722 {strides = array<i32>} : memref<1x256xf32, #tpu.memory_space<vmem>>, vector<1x16xf32>,
    %c0_183 = arith.constant 0 : index
    %c0_184 = arith.constant 0 : index
    %724 = vector.load %arg7[%c0_183, %c0_184] : memref<1x256xf32, #tpu.memory_space<vmem>>, vector<1x256xf32>
    %725 = vector.broadcast %724 : vector<1x256xf32> to vector<16x256xf32>
    %726 = arith.mulf %31, %725 : vector<16x256xf32>
    %c0_185 = arith.constant 0 : index
    %c0_186 = arith.constant 0 : index
    %c0_187 = arith.constant 0 : index
    %727 = vector.load %arg5[%c0_185, %c0_186, %c0_187] : memref<1x16x256xf32, #tpu.memory_space<vmem>>, vector<1x16x256xf32>
    %728 = vector.shape_cast %727 : vector<1x16x256xf32> to vector<16x256xf32>
    %729 = vector.shape_cast %726 : vector<16x256xf32> to vector<1x16x256xf32>
    tpu.vector_store %arg5[%c0_185, %c0_186, %c0_187], %729 {strides = array<i32>} : memref<1x16x256xf32, #tpu.memory_space<vmem>>, vector<1x16x256xf32>,
    return
  }
  func.func @transform_0(%arg0: i32) -> (i32, i32, i32) {
    %c0_i32 = arith.constant 0 : i32
    %c0_i32_0 = arith.constant 0 : i32
    %c0_i32_1 = arith.constant 0 : i32
    return %arg0, %c0_i32, %c0_i32_0 : i32, i32, i32
  }
  func.func @transform_1(%arg0: i32) -> (i32, i32) {
    %c0_i32 = arith.constant 0 : i32
    %c0_i32_0 = arith.constant 0 : i32
    %c0_i32_1 = arith.constant 0 : i32
    return %c0_i32, %c0_i32_0 : i32, i32
  }
  func.func @transform_2(%arg0: i32) -> (i32, i32) {
    %c0_i32 = arith.constant 0 : i32
    %c0_i32_0 = arith.constant 0 : i32
    %c0_i32_1 = arith.constant 0 : i32
    return %c0_i32, %c0_i32_0 : i32, i32
  }
  func.func @transform_3(%arg0: i32) -> i32 {
    %c0_i32 = arith.constant 0 : i32
    %c0_i32_0 = arith.constant 0 : i32
    return %c0_i32 : i32
  }
  func.func @transform_4(%arg0: i32) -> (i32, i32, i32) {
    %c0_i32 = arith.constant 0 : i32
    %c0_i32_0 = arith.constant 0 : i32
    %c0_i32_1 = arith.constant 0 : i32
    return %arg0, %c0_i32, %c0_i32_0 : i32, i32, i32
  }
}

</mosaic_0001>

<bundles_post_ra>
// kernel: tpu_custom_call.1
= control target key start
LH: loop header
LB: loop body
LE: loop exit
PB: predicated region body
PF: predicated region fallthrough
CT: control target
= control target key end

     0   :  { %s5444_s0 = inlined_call_operand.hbm [shape: f32[2,16,256], index: 0, kind: input, shape index: {}]   ;;  %s5445_s1 = inlined_call_operand.vmem [shape: f32[2,16], index: 1, kind: input, shape index: {}]   ;;  %s5446_s2 = inlined_call_operand.vmem [shape: f32[16,2], index: 2, kind: input, shape index: {}]   ;;  %s5447_s3 = inlined_call_operand.vmem [shape: f32[98], index: 3, kind: input, shape index: {}]   ;;  %s5448_s4 = inlined_call_operand.hbm [shape: f32[2,16,256], index: 4, kind: output, shape index: {}]  }
   0x1   :  { %5578 = sst [smem:[#allocation134_spill]] %s5444_s0 }
   0x2   :  { %5579 = sst [smem:[#allocation135_spill]] %s5445_s1 }
   0x3   :  { %5580 = sst [smem:[#allocation136_spill]] %s5446_s2 }
   0x4   :  { %5581 = sst [smem:[#allocation137_spill]] %s5447_s3 }
   0x5   :  { %9 = vsyncpa [#allocation5], 0 }
   0x6   :  { %11 = vsyncpa [#allocation5 + $0x1], 0 }
   0x7   :  { %12 = vsyncpa [#allocation7], 0 }
   0x8   :  { %13 = vsyncpa [#allocation6], 0 }
   0x9   :  { %15 = vsyncpa [#allocation6 + $0x1], 0  ;;  %s3162_s15 = smov 0   ;;  %s3164_s16 = smov 0  }
   0xa   :  { %s3166_s17 = smov 0   ;;  %s3168_s18 = smov 0  }
   0xb LB: > { %s3183_s19 = sadd.s32 4294967295, %s3106_s18   ;;  %s2752_s20 = sadd.s32 4294967294, %s3106_s18   ;;  %s3106_s18 = sphi %s3168_s18, %s5953_s18   ;;  %s3102_s17 = sphi %s3166_s17, %s5952_s17   ;;  %s3098_s16 = sphi %s3164_s16, %s5951_s16   ;;  %s3094_s15 = sphi %s3162_s15, %s5950_s15  }
   0xc   : > { %s3187_s21 = sadd.s32 1, %s3106_s18   ;;  %s28_s22 = sadd.s32 1, %s3102_s17 }
   0xd   : > { %s25_s23 = ssub.s32 %s3106_s18, %s3187_s21  ;;  %p35_p0 = scmp.ne.s32.totalorder %s3102_s17, %s3098_s16 }
   0xe   : > { %p26_p1 = scmp.eq.s32.totalorder %s25_s23, 0  ;;  %p36_p2 = scmp.eq.s32.totalorder %s3106_s18, 0 }
   0xf   : > { %p41_p3 = scmp.ne.s32.totalorder %s3098_s16, %s3094_s15  ;;  %p42_p4 = scmp.eq.s32.totalorder %s3183_s19, 0 }
  0x10   : > { %s3199_s24 = scalar_select %p26_p1, %s3102_s17, %s28_s22  }
  0x11   : > { %p3201_p5 = por %p36_p2, %p35_p0  ;;  %p3207_p6 = por %p42_p4, %p41_p3 }
  0x12   : > { %p128_p7 = scmp.eq.s32.totalorder %s3183_s19, 1  ;;  %p134_p8 = scmp.eq.s32.totalorder %s2752_s20, 1 }
  0x13   : > { %p2753_p9 = scmp.ge.s32.totalorder %s3106_s18, 1  ;;  %p141_p10 = scmp.lt.s32.totalorder %s3106_s18, 3 }
  0x14   : > { %p3214_p11 = por %p128_p7, %p35_p0  ;;  %p3218_p12 = por %p134_p8, %p41_p3 }
  0x15   : > { %p3222_p13 = pnand %p2753_p9, %p141_p10  ;;  %s5587_s3 = sld [smem:[#allocation137_spill]] }
  0x16   : > { %p2897_p2 = scmp.lt.s32.totalorder %s3106_s18, 2  ;;  %s170_s7 = sand.u32 1, %s3102_s17  }
  0x17   : > { %p2884_p1 = pneg %p3222_p13  ;;  %s2756_s9 = sshll.u32 %s170_s7, 5 }
  0x18   : > { %p3238_p3 = pnand %p2897_p2, %p3201_p5  ;;  %s3108_s10 = smov [#allocation8]  }
  0x19   : > { %p2885_p7 = pnand %p2884_p1, %p42_p4  ;;  %s2873_s11 = sshll.u32 %s3106_s18, 5 }
  0x1a   : > { %s174_s12 = scalar_lea.vmem [#allocation4], %s2756_s9  ;;  %s5589_s0 = sld [smem:[#allocation134_spill]] }
  0x1b   : > { %s159_s6 = sshll.u32 %s5587_s3, 4  ;;  %s182_s13 = sshll.u32 %s174_s12, 4  ;;  %s160_s6 = int_to_ptr.vmem [resolvable:$true] %s159_s6  ;;  %s183_s13 = int_to_ptr.vmem [resolvable:$true] %s182_s13 }
  0x1c   : > { %2887 = dma.vmem_to_smem (!%p2885_p7), %s160_s6, 16, %s3108_s10, [#allocation7]  }
  0x1d   : > { %s171_s30 = scalar_lea.sflag [#allocation5], %s170_s7  ;;  %p3010_p8 = pneg %p3238_p3 }
  0x20   : > { %s179_s22 = scalar_lea.hbm %s5589_s0, %s2873_s11  ;;  %s3013_s9 = scalar_lea.hbm %s5589_s0, 64 }
  0x21   : > { %s180_s23 = sshll.u32 %s179_s22, 4  ;;  %s181_s23 = int_to_ptr.hbm [resolvable:$true] %s180_s23 }
  0x22   : > { %s3006_s25 = sshra.s32 %s181_s23, 4  ;;  %s3007_s25 = int_to_ptr.hbm [resolvable:$true] %s3006_s25 }
  0x23   : > { %s3008_s5 = scalar_lea.hbm %s3007_s25, 32  ;;  %p3014_p1 = scmp.lt.s32.totalorder %s3007_s25, %s5589_s0 }
  0x24   : > { %p3009_p5 = scmp.ne.s32.totalorder %s3007_s25, %s3008_s5  ;;  %p3015_p2 = scmp.lt.s32.totalorder %s3013_s9, %s3008_s5 }
  0x26   : > { %p3011_p9 = pnand %p3010_p8, %p3009_p5  ;;  %p3016_p7 = por %p3015_p2, %p3014_p1 }
  0x28   : > { %p3012_p10 = pneg %p3011_p9 }
  0x2a   : > { %p3017_p0 = pnand %p3016_p7, %p3012_p10 }
  0x2c   : > { %3020 = shalt.err (!%p3017_p0)
}
  0x2d   : > { %s3109_s7 = smov 256   ;;  %s3110_s11 = smov 16  }
  0x2e   : > { %2891 = dma.hbm_to_vmem [thread:$0]  (!%p3238_p3), %s181_s23, 512, %s183_s13, %s171_s30, %s3109_s7, %s3109_s7, %s3110_s11  }
  0x2f   : > { %194 = sbr.rel (%p3222_p13) target bundleno = 1682 (0x692), region = 36 }
  0x34   : > { %s3259_s14 = sand.u32 1, %s3098_s16  }
  0x35   : > { %s5449_s3 = sshll.u32 %s3259_s14, 5  ;;  %s197_s20 = scalar_lea.sflag [#allocation5], %s3259_s14 }
  0x36   : > { %s200_s22 = scalar_lea.vmem [#allocation4], %s5449_s3 }
  0x37   : > { %3081 = dma.done.wait (%p3207_p6), %s197_s20, 512  }
  0x38   : > { %3083 = vsyncadd (%p3207_p6), %s197_s20, 4294966784 }
  0x39   : > { %3085 = dma.done.wait (%p42_p4), [#allocation7], 16  }
  0x3a   : > { %3087 = vsyncadd (%p42_p4), [#allocation7], 4294967280 }
  0x3b   : > { %211 = sfence }
  0x3c   : > { %v3273_v0 = vld [vmem:[%s200_s22 + $0x10] sm:$0xff]  ;;  %v3275_v1 = vld [vmem:[%s200_s22 + $0x18] sm:$0xff]  ;;  %v3281_v4 = vld [vmem:[%s200_s22] sm:$0xff]  ;;  %v3111_v8 = vmov 256.0   ;;  %v5454_v13 = vlaneseq  ;;  %s5590_s1 = sld [smem:[#allocation135_spill]]  ;;  %vm263_vm2 = vcmask 130048  }
  0x3d   : > { %v239_v2 = vadd.f32 %v3275_v1, %v3273_v0  ;;  %v254_v3 = vmax.f32 %v3273_v0, %v3275_v1  ;;  %v3283_v5 = vld [vmem:[%s200_s22 + $0x8] sm:$0xff]  ;;  %2963 = vrcp.f32 %v3111_v8  ;;  %vm297_vm3 = vcmask 1041408   ;;  %s5591_s2 = sld [smem:[#allocation136_spill]]  ;;  %s3112_s25 = smov 127  }
  0x3e   : > { %v236_v6 = vadd.f32 %v3283_v5, %v3281_v4  ;;  %v251_v7 = vmax.f32 %v3281_v4, %v3283_v5  ;;  %v258_v15 = vand.u32 127, %v5454_v13  ;;  %vm290_vm4 = vcmask 15360   ;;  %s3114_s5 = smov 67   ;;  %s3115_s6 = smov 83  }
  0x3f   : > { %240 = vadd.xlane.f32.xlu0 %v239_v2  ;;  %255 = vmax.xlane.f32.xlu1 %v254_v3  ;;  %v3113_v32 = vmov 0   ;;  %s3116_s10 = smov 3   ;;  %s3118_s9 = smov 19   ;;  %vm423_vm14 = vcmask 179200   ;;  %vm435_vm15 = vcmask 147480  }
  0x40   : > { %vm259_vm1 = vcmp.eq.s32.totalorder %v258_v15, 0  ;;  %2961 = vset.pattern.permute.xlu0 %v3113_v32  ;;  %2962 = vset.pattern.permute.xlu1 %v3113_v32  ;;  %s3119_s12 = smov 35   ;;  %s3120_s7 = smov 115  }
  0x41   : > { %s3121_s11 = smov 99   ;;  %s3122_s20 = smov 51  }
  0x42   : > { %v262_v24 = vld [vmem:[%s5590_s1] sm:$0x3]  ;;  %s3358_s22 = sld [smem:[#allocation8 + $0x32]]  ;;  %s5538_s13 = smov 126  }
  0x43   : > { %v2964_v9 = vpop.eup %2963  ;;  %v288_v28 = vld [vmem:[%s5591_s2] sm:$0xff]  ;;  %v289_v29 = vld [vmem:[%s5591_s2 + $0x8] sm:$0xff]  ;;  %s3360_s26 = sld [smem:[#allocation8 + $0x33]]  ;;  %s5514_s30 = smov 125  }
  0x44   : > { %v243_v10 = vmul.f32 256.0, %v2964_v9  ;;  %vm247_vm0 = vweird.f32 %v2964_v9  ;;  %s3365_s29 = sld [smem:[#allocation8 + $0x34]] }
  0x45   : > { %s3369_s8 = sld [smem:[#allocation8 + $0x35]] }
  0x46   : > { %v244_v11 = vsub.f32 1.0, %v243_v10  ;;  %s3384_s23 = sld [smem:[#allocation8 + $0x36]] }
  0x47   : > { %237 = vadd.xlane.f32.xlu0 %v236_v6  ;;  %252 = vmax.xlane.f32.xlu1 %v251_v7  ;;  %s2770_s3 = sld [smem:[#allocation8 + $0xe]] }
  0x48   : > { %v245_v12 = vmul.f32 %v2964_v9, %v244_v11  ;;  %s2773_s0 = sld [smem:[#allocation8 + $0x23]] }
  0x49   : > { %s3473_s1 = sld [smem:[#allocation8 + $0x2a]] }
  0x4a   : > { %v246_v14 = vadd.f32 %v2964_v9, %v245_v12  ;;  %s4088_s2 = sld [smem:[#allocation8 + $0x3f]] }
  0x4c   : > { %v248_v16 = vsel %vm247_vm0, %v2964_v9, %v246_v14  ;;  %vm426_vm0 = vcmask 177152  }
  0xb2   : > { %v241_v17 = vpop.xlane.xlu0 %240  ;;  %v256_v18 = vpop.xlane.xlu1 %255 }
  0xb3   : > { %v250_v19 = vmul.f32 %v248_v16, %v241_v17 }
  0xb5   : > { %v261_v20 = vsel %vm259_vm1, %v250_v19, %v256_v18 }
  0xb6   : > { %281 = vmatpush.msra.mxu0 %v261_v20 }
  0xba   : > { %v238_v21 = vpop.xlane.xlu0 %237  ;;  %v253_v22 = vpop.xlane.xlu1 %252 }
  0xbb   : > { %v249_v23 = vmul.f32 %v248_v16, %v238_v21 }
  0xbd   : > { %v260_v25 = vsel %vm259_vm1, %v249_v23, %v253_v22  ;;  %vm582_vm1 = vcmask 1046528  }
  0xbe   : > { %282 = vmatpush.msra.mxu0 %v260_v25 }
  0xbf   : > { %2763 = vmatmul.msk.f32.vlgmr.msra.gmra.mxu0 %vm263_vm2, %v262_v24  ;;  %vm618_vm2 = vcmask 1044480  }
 0x13c   : > { %v284_v26 = vpop.f32.mrf.mxu0 }
 0x13d   : > { %v287_v27 = vmax.f32 %v284_v26, 0.0 }
 0x13f   : > { %2764 = vmatpush.msk.msra.mxu1 %vm297_vm3, %v287_v27  ;;  %2875 = vmatpush.msk.msra.mxu2 %vm297_vm3, %v287_v27 }
 0x140   : > { %2765 = vmatmul.msk.f32.vlgmr.msra.gmra.mxu1 %vm290_vm4, %v288_v28  ;;  %2766 = vmatmul.msk.f32.vlgmr.msra.gmra.mxu2 %vm290_vm4, %v289_v29  ;;  %vm600_vm4 = vcmask 1045504  }
 0x1bd   : > { %v318_v30 = vpop.f32.mrf.mxu1 }
 0x1be   : > { %326 = vrot.lane.b32.xlu2 %v318_v30, %s3112_s25 }
 0x1c3   : > { %v321_v31 = vpop.f32.mrf.mxu2 }
 0x1c6   : > { %328 = vrot.lane.b32.xlu2 %v321_v31, %s3112_s25 }
 0x218   : > { %v327_v33 = vpop.permute.xlu2 %326 }
 0x219   : > { %v332_v34 = vadd.f32 %v327_v33, %v318_v30 }
 0x21b   : > { %v2767_v35 = vmul.f32 -1.442695, %v332_v34 }
 0x21d   : > { %2965 = vpow2.f32 %v2767_v35 }
 0x220   : > { %v329_v36 = vpop.permute.xlu2 %328 }
 0x221   : > { %v333_v37 = vadd.f32 %v329_v36, %v321_v31 }
 0x223   : > { %v2966_v38 = vpop.eup %2965  ;;  %v2768_v39 = vmul.f32 -1.442695, %v333_v37 }
 0x224   : > { %v340_v40 = vadd.f32 1.0, %v2966_v38 }
 0x225   : > { %2967 = vpow2.f32 %v2768_v39 }
 0x226   : > { %2969 = vrcp.f32 %v340_v40  ;;  %v353_v46 = vand.u32 2147483648, %v340_v40  ;;  %v351_v48 = vand.u32 2147483647, %v340_v40  ;;  %vm347_vm6 = vweird.f32 %v340_v40 }
 0x228   : > { %v354_v51 = vor.u32 1.1754944e-38, %v353_v46  ;;  %vm352_vm8 = vcmp.eq.f32.partialorder %v351_v48, 8.507059e+37 }
 0x22b   : > { %v2968_v41 = vpop.eup %2967 }
 0x22c   : > { %v2970_v42 = vpop.eup %2969  ;;  %v341_v43 = vadd.f32 1.0, %v2968_v41 }
 0x22d   : > { %v343_v44 = vmul.f32 %v2970_v42, %v340_v40  ;;  %vm348_vm5 = vweird.f32 %v2970_v42 }
 0x22e   : > { %2971 = vrcp.f32 %v341_v43  ;;  %vm349_vm7 = vmor %vm347_vm6, %vm348_vm5  ;;  %v368_v56 = vand.u32 2147483648, %v341_v43  ;;  %v366_v58 = vand.u32 2147483647, %v341_v43  ;;  %vm362_vm10 = vweird.f32 %v341_v43 }
 0x22f   : > { %v344_v45 = vsub.f32 1.0, %v343_v44  ;;  %vm636_vm5 = vcmask 1043456   ;;  %vm654_vm6 = vcmask 1042432  }
 0x230   : > { %v369_v60 = vor.u32 1.1754944e-38, %v368_v56  ;;  %vm367_vm12 = vcmp.eq.f32.partialorder %v366_v58, 8.507059e+37  ;;  %v5458_v58 = vstv %s3365_s29 }
 0x231   : > { %v345_v47 = vmul.f32 %v2970_v42, %v344_v45 }
 0x233   : > { %v346_v49 = vadd.f32 %v2970_v42, %v345_v47 }
 0x234   : > { %v2972_v50 = vpop.eup %2971 }
 0x235   : > { %v350_v52 = vsel %vm349_vm7, %v2970_v42, %v346_v49  ;;  %v358_v53 = vmul.f32 %v2972_v50, %v341_v43  ;;  %vm363_vm9 = vweird.f32 %v2972_v50  ;;  %v3123_v43 = vmov 0.0  }
 0x236   : > { %v355_v54 = vsel %vm352_vm8, %v354_v51, %v350_v52  ;;  %vm364_vm11 = vmor %vm362_vm10, %vm363_vm9  ;;  %428 = vst.msk [vmem:[#allocation2 + $0x18] sm:$0xff] %vm423_vm14, %v3123_v43  ;;  %v5462_v51 = vstv %s3360_s26 }
 0x237   : > { %374 = vperm.xlu0 %2961, %v355_v54   ;;  %v359_v55 = vsub.f32 1.0, %v358_v53  ;;  %424 = vst.msk [vmem:[#allocation2] sm:$0xff] %vm423_vm14, %v3123_v43 }
 0x238   : > { %425 = vst.msk [vmem:[#allocation2 + $0x8] sm:$0xff] %vm423_vm14, %v3123_v43 }
 0x239   : > { %v360_v57 = vmul.f32 %v2972_v50, %v359_v55  ;;  %429 = vst.msk [vmem:[#allocation2 + $0x20] sm:$0xff] %vm423_vm14, %v3123_v43 }
 0x23a   : > { %430 = vst.msk [vmem:[#allocation2 + $0x28] sm:$0x3f] %vm426_vm0, %v3123_v43 }
 0x23b   : > { %v361_v59 = vadd.f32 %v2972_v50, %v360_v57  ;;  %427 = vst.msk [vmem:[#allocation2 + $0x10] sm:$0x3f] %vm426_vm0, %v3123_v43 }
 0x23d   : > { %v365_v61 = vsel %vm364_vm11, %v2972_v50, %v361_v59  ;;  %v1633_v50 = vstv %s3358_s22  ;;  %v5457_v59 = vstv %s3369_s8  ;;  %s3456_s22 = sld [smem:[#allocation8 + $0x4]] }
 0x23e   : > { %v370_v62 = vsel %vm367_vm12, %v369_v60, %v365_v61 }
 0x23f   : > { %379 = vperm.xlu1 %2962, %v370_v62  }
 0x2a9   : > { %v375_v63 = vpop.permute.xlu0 %374 }
 0x2aa   : > { %v3304_v3 = vmul.f32 %v375_v63, %v3281_v4  ;;  %v3315_v9 = vmul.f32 %v375_v63, %v3283_v5 }
 0x2ac   : > { %5592 = vst [vmem:[#allocation13_spill] sm:$0xff] %v3304_v3 }
 0x2ad   : > { %5595 = vst [vmem:[#allocation16_spill] sm:$0xff] %v3315_v9 }
 0x2b1   : > { %v380_v2 = vpop.permute.xlu1 %379 }
 0x2b2   : > { %v3307_v6 = vmul.f32 %v380_v2, %v3273_v0  ;;  %v3310_v7 = vmul.f32 %v380_v2, %v3275_v1  ;;  %v3117_v1 = vmov 16.0  }
 0x2b3   : > { %2973 = vrcp.f32 %v3117_v1 }
 0x2b4   : > { %5593 = vst [vmem:[#allocation14_spill] sm:$0xff] %v3307_v6  ;;  %v409_v8 = vmax.f32 %v3304_v3, %v3307_v6  ;;  %v416_v12 = vmax.f32 %v3315_v9, %v3310_v7  ;;  %v386_v5 = vadd.f32 %v3307_v6, %v3304_v3  ;;  %v393_v29 = vadd.f32 %v3310_v7, %v3315_v9 }
 0x2b5   : > { %5594 = vst [vmem:[#allocation15_spill] sm:$0xff] %v3310_v7 }
 0x2b6   : > { %v410_v10 = vrot.slane %v409_v8, 4  ;;  %v417_v15 = vrot.slane %v416_v12, 4  ;;  %v387_v19 = vrot.slane %v386_v5, 4  ;;  %v394_v32 = vrot.slane %v393_v29, 4 }
 0x2b8   : > { %v411_v11 = vmax.f32 %v409_v8, %v410_v10  ;;  %v418_v17 = vmax.f32 %v416_v12, %v417_v15  ;;  %v388_v22 = vadd.f32 %v387_v19, %v386_v5  ;;  %v395_v35 = vadd.f32 %v394_v32, %v393_v29 }
 0x2b9   : > { %v2974_v21 = vpop.eup %2973  ;;  %v5456_v8 = vstv %s3384_s23 }
 0x2ba   : > { %v412_v14 = vrot.slane %v411_v11, 2  ;;  %v419_v18 = vrot.slane %v418_v17, 2  ;;  %v401_v24 = vmul.f32 16.0, %v2974_v21  ;;  %v389_v25 = vrot.slane %v388_v22, 2 }
 0x2bb   : > { %vm405_vm13 = vweird.f32 %v2974_v21  ;;  %v396_v37 = vrot.slane %v395_v35, 2 }
 0x2bc   : > { %v413_v4 = vmax.f32 %v411_v11, %v412_v14  ;;  %v420_v20 = vmax.f32 %v418_v17, %v419_v18  ;;  %v402_v27 = vsub.f32 1.0, %v401_v24  ;;  %v390_v28 = vadd.f32 %v389_v25, %v388_v22 }
 0x2bd   : > { %v397_v39 = vadd.f32 %v396_v37, %v395_v35 }
 0x2be   : > { %v414_v16 = vrot.slane %v413_v4, 1  ;;  %v421_v23 = vrot.slane %v420_v20, 1  ;;  %v403_v30 = vmul.f32 %v2974_v21, %v402_v27  ;;  %v391_v31 = vrot.slane %v390_v28, 1 }
 0x2bf   : > { %v398_v40 = vrot.slane %v397_v39, 1 }
 0x2c0   : > { %v415_v0 = vmax.f32 %v413_v4, %v414_v16  ;;  %v422_v26 = vmax.f32 %v420_v20, %v421_v23  ;;  %v404_v33 = vadd.f32 %v2974_v21, %v403_v30  ;;  %v392_v34 = vadd.f32 %v391_v31, %v390_v28 }
 0x2c1   : > { %v399_v41 = vadd.f32 %v398_v40, %v397_v39 }
 0x2c2   : > { %471 = vrot.lane.b32.xlu1 %v415_v0, %s3114_s5  ;;  %463 = vrot.lane.b32.xlu0 %v415_v0, %s3115_s6  ;;  %v406_v36 = vsel %vm405_vm13, %v2974_v21, %v404_v33 }
 0x2c3   : > { %438 = vrot.lane.b32.xlu2 %v415_v0, %s3116_s10  ;;  %v407_v38 = vmul.f32 %v406_v36, %v392_v34  ;;  %v408_v42 = vmul.f32 %v406_v36, %v399_v41 }
 0x2ca   : > { %495 = vrot.lane.b32.xlu1 %v415_v0, %s3118_s9  ;;  %487 = vrot.lane.b32.xlu0 %v415_v0, %s3119_s12 }
 0x2cb   : > { %447 = vrot.lane.b32.xlu2 %v415_v0, %s3120_s7 }
 0x2d2   : > { %521 = vrot.lane.b32.xlu1 %v422_v26, %s3121_s11  ;;  %513 = vrot.lane.b32.xlu0 %v422_v26, %s3120_s7 }
 0x2d3   : > { %455 = vrot.lane.b32.xlu2 %v415_v0, %s3121_s11 }
 0x2da   : > { %545 = vrot.lane.b32.xlu1 %v422_v26, %s3122_s20  ;;  %537 = vrot.lane.b32.xlu0 %v422_v26, %s3114_s5 }
 0x2db   : > { %479 = vrot.lane.b32.xlu2 %v415_v0, %s3122_s20 }
 0x2e2   : > { %561 = vrot.lane.b32.xlu0 %v422_v26, %s3118_s9  ;;  %451 = vrot.lane.b32.xlu1 %v407_v38, %s3121_s11 }
 0x2e3   : > { %505 = vrot.lane.b32.xlu2 %v422_v26, %s3116_s10 }
 0x2ea   : > { %475 = vrot.lane.b32.xlu0 %v407_v38, %s3122_s20  ;;  %459 = vrot.lane.b32.xlu1 %v407_v38, %s3115_s6 }
 0x2eb   : > { %529 = vrot.lane.b32.xlu2 %v422_v26, %s3115_s6 }
 0x2f2   : > { %500 = vrot.lane.b32.xlu0 %v408_v42, %s3116_s10  ;;  %483 = vrot.lane.b32.xlu1 %v407_v38, %s3119_s12 }
 0x2f3   : > { %553 = vrot.lane.b32.xlu2 %v422_v26, %s3119_s12 }
 0x2fa   : > { %525 = vrot.lane.b32.xlu0 %v408_v42, %s3115_s6  ;;  %509 = vrot.lane.b32.xlu1 %v408_v42, %s3120_s7  ;;  %s5452_s6 = smov 123  }
 0x2fb   : > { %432 = vrot.lane.b32.xlu2 %v407_v38, %s3116_s10  ;;  %s2825_s10 = sld [smem:[#allocation8 + $0x39]] }
 0x301   : > { %v3422_v23 = vstv %s2825_s10  ;;  %s3458_s10 = sld [smem:[#allocation8 + $0x6]] }
 0x302   : > { %549 = vrot.lane.b32.xlu0 %v408_v42, %s3119_s12  ;;  %533 = vrot.lane.b32.xlu1 %v408_v42, %s3114_s5  ;;  %s3417_s12 = sld [smem:[#allocation8 + $0x1]] }
 0x303   : > { %443 = vrot.lane.b32.xlu2 %v407_v38, %s3120_s7  ;;  %s3451_s7 = sld [smem:[#allocation8 + $0x3]] }
 0x308   : > { %v682_v31 = vstv %s3417_s12  ;;  %s2769_s12 = sld [smem:[#allocation8 + $0x7]] }
 0x309   : > { %v962_v43 = vstv %s3451_s7  ;;  %s5597_s7 = smov 123  }
 0x30a   : > { %557 = vrot.lane.b32.xlu1 %v408_v42, %s3118_s9 }
 0x30b   : > { %467 = vrot.lane.b32.xlu2 %v407_v38, %s3114_s5  ;;  %s5450_s5 = smov 124  }
 0x313   : > { %491 = vrot.lane.b32.xlu2 %v407_v38, %s3118_s9  ;;  %s3415_s9 = sld [smem:[#allocation8 + $0x2]] }
 0x319   : > { %v822_v30 = vstv %s3415_s9  ;;  %s3461_s9 = sld [smem:[#allocation8]] }
 0x31b   : > { %517 = vrot.lane.b32.xlu2 %v408_v42, %s3121_s11  ;;  %s2827_s11 = sld [smem:[#allocation8 + $0x47]] }
 0x31d   : > { %v439_v44 = vpop.permute.xlu2 %438 }
 0x31e   : > { %442 = vst.msk [vmem:[#allocation2 + $0x1b] sm:$0x1] %vm435_vm15, %v439_v44 }
 0x323   : > { %541 = vrot.lane.b32.xlu2 %v408_v42, %s3122_s20  ;;  %s3454_s20 = sld [smem:[#allocation8 + $0x5]] }
 0x325   : > { %v448_v45 = vpop.permute.xlu2 %447 }
 0x326   : > { %450 = vst.msk [vmem:[#allocation2 + $0x1c] sm:$0x1] %vm435_vm15, %v448_v45 }
 0x32d   : > { %v456_v46 = vpop.permute.xlu2 %455 }
 0x32e   : > { %458 = vst.msk [vmem:[#allocation2 + $0x1d] sm:$0x1] %vm435_vm15, %v456_v46 }
 0x334   : > { %v472_v47 = vpop.permute.xlu1 %471  ;;  %v464_v48 = vpop.permute.xlu0 %463 }
 0x335   : > { %474 = vst.msk [vmem:[#allocation2 + $0x1f] sm:$0x1] %vm435_vm15, %v472_v47  ;;  %v480_v49 = vpop.permute.xlu2 %479  ;;  %v1242_v47 = vstv %s3454_s20  ;;  %s2834_s20 = sld [smem:[#allocation8 + $0x48]] }
 0x336   : > { %466 = vst.msk [vmem:[#allocation2 + $0x1e] sm:$0x1] %vm435_vm15, %v464_v48  ;;  %v1102_v48 = vstv %s3456_s22  ;;  %s2829_s22 = sld [smem:[#allocation8 + $0x55]] }
 0x337   : > { %482 = vst.msk [vmem:[#allocation2 + $0x20] sm:$0x1] %vm435_vm15, %v480_v49  ;;  %v3477_v49 = vstv %s2827_s11  ;;  %s5598_s11 = smov 124  }
 0x338   : > { %5596 = vst [vmem:[#allocation17_spill] sm:$0xff] %v3477_v49 }
 0x33c   : > { %v496_v52 = vpop.permute.xlu1 %495  ;;  %v488_v53 = vpop.permute.xlu0 %487 }
 0x33d   : > { %v3371_v54 = vld [vmem:[#allocation2 + $0x18] sm:$0xff]  ;;  %498 = vst.msk [vmem:[#allocation2 + $0x22] sm:$0x1] %vm435_vm15, %v496_v52  ;;  %v506_v55 = vpop.permute.xlu2 %505 }
 0x33e   : > { %490 = vst.msk [vmem:[#allocation2 + $0x21] sm:$0x1] %vm435_vm15, %v488_v53  ;;  %v1634_v56 = vmul.f32 %v1633_v50, %v3371_v54  ;;  %v1774_v57 = vmul.f32 %v5462_v51, %v3371_v54  ;;  %v1914_v63 = vmul.f32 %v5458_v58, %v3371_v54  ;;  %v2054_v2 = vmul.f32 %v5457_v59, %v3371_v54 }
 0x33f   : > { %508 = vst.msk [vmem:[#allocation2 + $0x23] sm:$0x1] %vm435_vm15, %v506_v55  ;;  %v2194_v14 = vmul.f32 %v5456_v8, %v3371_v54  ;;  %v3481_v53 = vstv %s2769_s12  ;;  %v3483_v55 = vstv %s2770_s3  ;;  %s3561_s3 = sld [smem:[#allocation8 + $0x40]] }
 0x340   : > { %1638 = vrot.lane.b32.xlu0 %v1634_v56, %s3112_s25  ;;  %1778 = vrot.lane.b32.xlu2 %v1774_v57, %s5538_s13  ;;  %v1382_v57 = vstv %s3458_s10  ;;  %s2836_s10 = sld [smem:[#allocation8 + $0x56]] }
 0x341   : > { %s2837_s12 = sld [smem:[#allocation8 + $0x5d]] }
 0x344   : > { %v522_v60 = vpop.permute.xlu1 %521  ;;  %v514_v61 = vpop.permute.xlu0 %513 }
 0x345   : > { %524 = vst.msk [vmem:[#allocation2 + $0x25] sm:$0x1] %vm435_vm15, %v522_v60  ;;  %v530_v62 = vpop.permute.xlu2 %529 }
 0x346   : > { %516 = vst.msk [vmem:[#allocation2 + $0x24] sm:$0x1] %vm435_vm15, %v514_v61 }
 0x347   : > { %532 = vst.msk [vmem:[#allocation2 + $0x26] sm:$0x1] %vm435_vm15, %v530_v62  ;;  %v3499_v62 = vmul.f32 %v3477_v49, %v3371_v54  ;;  %v3682_v13 = vstv %s2837_s12  ;;  %s2847_s12 = sld [smem:[#allocation8 + $0x43]] }
 0x348   : > { %1918 = vrot.lane.b32.xlu0 %v1914_v63, %s5514_s30  ;;  %2058 = vrot.lane.b32.xlu2 %v2054_v2, %s5450_s5  ;;  %s2771_s5 = sld [smem:[#allocation8 + $0x15]]  ;;  %v3503_v63 = vmul.f32 %v3422_v23, %v3371_v54  ;;  %5613 = vst [vmem:[#allocation32_spill] sm:$0xff] %v3682_v13 }
 0x34c   : > { %v546_v10 = vpop.permute.xlu1 %545  ;;  %v538_v11 = vpop.permute.xlu0 %537 }
 0x34d   : > { %548 = vst.msk [vmem:[#allocation2 + $0x28] sm:$0x1] %vm435_vm15, %v546_v10  ;;  %v554_v12 = vpop.permute.xlu2 %553  ;;  %v3797_v6 = vstv %s2847_s12  ;;  %s2777_s12 = sld [smem:[#allocation8 + $0xf]] }
 0x34e   : > { %540 = vst.msk [vmem:[#allocation2 + $0x27] sm:$0x1] %vm435_vm15, %v538_v11  ;;  %v3505_v2 = vstv %s2771_s5  ;;  %s5509_s5 = smov 122  }
 0x34f   : > { %556 = vst.msk [vmem:[#allocation2 + $0x29] sm:$0x1] %vm435_vm15, %v554_v12 }
 0x350   : > { %2198 = vrot.lane.b32.xlu0 %v2194_v14, %s5452_s6  ;;  %s2772_s6 = sld [smem:[#allocation8 + $0x1c]]  ;;  %5630 = vst [vmem:[#allocation49_spill] sm:$0xff] %v3797_v6 }
 0x354   : > { %v562_v4 = vpop.permute.xlu0 %561  ;;  %v452_v15 = vpop.permute.xlu1 %451 }
 0x355   : > { %v3405_v16 = vld [vmem:[#allocation2 + $0x20] sm:$0xff]  ;;  %564 = vst.msk [vmem:[#allocation2 + $0x2a] sm:$0x1] %vm435_vm15, %v562_v4  ;;  %v433_v0 = vpop.permute.xlu2 %432 }
 0x356   : > { %454 = vst.msk [vmem:[#allocation2 + $0x5] sm:$0x1] %vm435_vm15, %v452_v15  ;;  %v1635_v17 = vmul.f32 %v1633_v50, %v3405_v16  ;;  %v3427_v24 = vmul.f32 %v3422_v23, %v3405_v16  ;;  %v3507_v10 = vstv %s2772_s6  ;;  %v3514_v12 = vmul.f32 %v3477_v49, %v3405_v16  ;;  %s3595_s6 = sld [smem:[#allocation8 + $0x41]] }
 0x357   : > { %436 = vst.msk [vmem:[#allocation2 + $0x3] sm:$0x1] %vm435_vm15, %v433_v0  ;;  %v3524_v15 = vstv %s2773_s0  ;;  %s3541_s0 = sld [smem:[#allocation8 + $0x5c]] }
 0x358   : > { %1640 = vrot.lane.b32.xlu1 %v1635_v17, %s3112_s25  ;;  %v1655_v26 = vrot.slane %v3427_v24, 1  ;;  %5599 = vst [vmem:[#allocation18_spill] sm:$0xff] %v3514_v12  ;;  %v5475_v17 = vstv %s3461_s9 }
 0x35c   : > { %v476_v1 = vpop.permute.xlu0 %475  ;;  %v460_v5 = vpop.permute.xlu1 %459  ;;  %v3419_v21 = vld [vmem:[#allocation2 + $0x28] sm:$0x3f] }
 0x35d   : > { %478 = vst.msk [vmem:[#allocation2 + $0x8] sm:$0x1] %vm435_vm15, %v476_v1  ;;  %v444_v18 = vpop.permute.xlu2 %443  ;;  %v1650_v25 = vmul.f32 %v3422_v23, %v3419_v21 }
 0x35e   : > { %462 = vst.msk [vmem:[#allocation2 + $0x6] sm:$0x1] %vm435_vm15, %v460_v5  ;;  %v3535_v5 = vstv %s3473_s1  ;;  %s3553_s1 = sld [smem:[#allocation8 + $0x4e]] }
 0x35f   : > { %446 = vst.msk [vmem:[#allocation2 + $0x4] sm:$0x1] %vm435_vm15, %v444_v18  ;;  %v1657_v27 = vrot.slane %v1650_v25, 1 }
 0x361   : > { %v3438_v32 = vsel %vm582_vm1, %v1655_v26, %v1657_v27 }
 0x364   : > { %v501_v19 = vpop.permute.xlu0 %500  ;;  %v484_v20 = vpop.permute.xlu1 %483 }
 0x365   : > { %503 = vst.msk [vmem:[#allocation2 + $0xb] sm:$0x1] %vm435_vm15, %v501_v19  ;;  %v468_v22 = vpop.permute.xlu2 %467 }
 0x366   : > { %486 = vst.msk [vmem:[#allocation2 + $0x9] sm:$0x1] %vm435_vm15, %v484_v20 }
 0x367   : > { %470 = vst.msk [vmem:[#allocation2 + $0x7] sm:$0x1] %vm435_vm15, %v468_v22 }
 0x36c   : > { %v526_v28 = vpop.permute.xlu0 %525  ;;  %v510_v29 = vpop.permute.xlu1 %509 }
 0x36d   : > { %528 = vst.msk [vmem:[#allocation2 + $0xe] sm:$0x1] %vm435_vm15, %v526_v28  ;;  %v492_v33 = vpop.permute.xlu2 %491 }
 0x36e   : > { %v3441_v34 = vld [vmem:[#allocation2] sm:$0xff]  ;;  %512 = vst.msk [vmem:[#allocation2 + $0xc] sm:$0x1] %vm435_vm15, %v510_v29 }
 0x36f   : > { %494 = vst.msk [vmem:[#allocation2 + $0xa] sm:$0x1] %vm435_vm15, %v492_v33  ;;  %v823_v35 = vmul.f32 %v822_v30, %v3441_v34  ;;  %v683_v36 = vmul.f32 %v682_v31, %v3441_v34  ;;  %v1243_v50 = vmul.f32 %v1242_v47, %v3441_v34  ;;  %v1103_v52 = vmul.f32 %v1102_v48, %v3441_v34 }
 0x370   : > { %v963_v56 = vmul.f32 %v962_v43, %v3441_v34  ;;  %v1383_v0 = vmul.f32 %v1382_v57, %v3441_v34 }
 0x371   : > { %827 = vrot.lane.b32.xlu0 %v823_v35, %s5538_s13  ;;  %687 = vrot.lane.b32.xlu2 %v683_v36, %s3112_s25 }
 0x374   : > { %v550_v37 = vpop.permute.xlu0 %549  ;;  %v534_v38 = vpop.permute.xlu1 %533 }
 0x375   : > { %552 = vst.msk [vmem:[#allocation2 + $0x11] sm:$0x1] %vm435_vm15, %v550_v37  ;;  %v518_v39 = vpop.permute.xlu2 %517 }
 0x376   : > { %536 = vst.msk [vmem:[#allocation2 + $0xf] sm:$0x1] %vm435_vm15, %v534_v38 }
 0x377   : > { %520 = vst.msk [vmem:[#allocation2 + $0xd] sm:$0x1] %vm435_vm15, %v518_v39 }
 0x37c   : > { %v558_v40 = vpop.permute.xlu1 %557 }
 0x37d   : > { %560 = vst.msk [vmem:[#allocation2 + $0x12] sm:$0x1] %vm435_vm15, %v558_v40  ;;  %v542_v41 = vpop.permute.xlu2 %541 }
 0x37e   : > { %v3463_v42 = vld [vmem:[#allocation2 + $0x8] sm:$0xff]  ;;  %544 = vst.msk [vmem:[#allocation2 + $0x10] sm:$0x1] %vm435_vm15, %v542_v41 }
 0x37f   : > { %v964_v44 = vmul.f32 %v962_v43, %v3463_v42  ;;  %v824_v45 = vmul.f32 %v822_v30, %v3463_v42  ;;  %v684_v46 = vmul.f32 %v682_v31, %v3463_v42  ;;  %v3489_v60 = vmul.f32 %v3481_v53, %v3463_v42 }
 0x380   : > { %v3493_v61 = vmul.f32 %v3483_v55, %v3463_v42  ;;  %v3518_v14 = vmul.f32 %v3505_v2, %v3463_v42  ;;  %v3522_v4 = vmul.f32 %v3507_v10, %v3463_v42  ;;  %v3532_v1 = vmul.f32 %v3524_v15, %v3463_v42 }
 0x381   : > { %969 = vrot.lane.b32.xlu0 %v964_v44, %s5514_s30  ;;  %829 = vrot.lane.b32.xlu2 %v824_v45, %s5538_s13  ;;  %v1244_v18 = vmul.f32 %v1242_v47, %v3463_v42  ;;  %v1104_v19 = vmul.f32 %v1102_v48, %v3463_v42  ;;  %v5476_v20 = vrot.slane %v3489_v60, 1  ;;  %v3545_v23 = vmul.f32 %v3535_v5, %v3463_v42 }
 0x382   : > { %689 = vrot.lane.b32.xlu1 %v684_v46, %s3112_s25  ;;  %v5474_v22 = vrot.slane %v3493_v61, 2  ;;  %v5473_v29 = vrot.slane %v3518_v14, 3  ;;  %v5472_v30 = vrot.slane %v3522_v4, 4  ;;  %v5471_v35 = vrot.slane %v3532_v1, 5 }
 0x383   : > { %v571_v39 = vmul.f32 %v5475_v17, %v3463_v42  ;;  %v5467_v44 = vrot.slane %v3545_v23, 6 }
 0x385   : > { %v3509_v11 = vld [vmem:[#allocation2 + $0x10] sm:$0x3f] }
 0x386   : > { %v578_v25 = vmul.f32 %v3481_v53, %v3509_v11  ;;  %v596_v27 = vmul.f32 %v3483_v55, %v3509_v11  ;;  %v614_v28 = vmul.f32 %v3505_v2, %v3509_v11  ;;  %v632_v31 = vmul.f32 %v3507_v10, %v3509_v11 }
 0x387   : > { %v650_v33 = vmul.f32 %v3524_v15, %v3509_v11  ;;  %v668_v43 = vmul.f32 %v3535_v5, %v3509_v11 }
 0x388   : > { %v586_v36 = vrot.slane %v578_v25, 1  ;;  %v604_v37 = vrot.slane %v596_v27, 2  ;;  %v622_v38 = vrot.slane %v614_v28, 3  ;;  %v640_v40 = vrot.slane %v632_v31, 4 }
 0x389   : > { %1247 = vrot.lane.b32.xlu0 %v1243_v50, %s5597_s7  ;;  %1107 = vrot.lane.b32.xlu2 %v1103_v52, %s5598_s11  ;;  %v658_v41 = vrot.slane %v650_v33, 5  ;;  %v1696_v27 = vrot.slane %v3499_v62, 3  ;;  %v1654_v28 = vrot.slane %v3503_v63, 1  ;;  %v3600_v31 = vstv %s3553_s1  ;;  %s2841_s1 = sld [smem:[#allocation8 + $0x49]] }
 0x38a   : > { %967 = vrot.lane.b32.xlu1 %v963_v56, %s5514_s30  ;;  %v587_v45 = vsel %vm582_vm1, %v5476_v20, %v586_v36  ;;  %v605_v46 = vsel %vm600_vm4, %v5474_v22, %v604_v37  ;;  %v623_v47 = vsel %vm618_vm2, %v5473_v29, %v622_v38  ;;  %v641_v50 = vsel %vm636_vm5, %v5472_v30, %v640_v40 }
 0x38b   : > { %v591_v48 = vadd.f32 %v587_v45, %v571_v39  ;;  %v659_v52 = vsel %vm654_vm6, %v5471_v35, %v658_v41  ;;  %v675_v56 = vrot.slane %v668_v43, 6  ;;  %5601 = vst [vmem:[#allocation20_spill] sm:$0xff] %v3600_v31  ;;  %v3608_v37 = vmul.f32 %v3600_v31, %v3405_v16 }
 0x38c   : > { %v3611_v38 = vstv %s3561_s3  ;;  %v1656_v63 = vsel %vm582_vm1, %v1654_v28, %v1655_v26  ;;  %v1384_v39 = vmul.f32 %v1382_v57, %v3463_v42  ;;  %v1711_v26 = vmul.f32 %v3600_v31, %v3371_v54  ;;  %s2840_s3 = sld [smem:[#allocation8 + $0x42]] }
 0x38d   : > { %v676_v25 = vsel %vm297_vm3, %v5467_v44, %v675_v56  ;;  %5603 = vst [vmem:[#allocation22_spill] sm:$0xff] %v3608_v37  ;;  %v3626_v41 = vmul.f32 %v3611_v38, %v3405_v16  ;;  %v1669_v57 = vmul.f32 %v3611_v38, %v3371_v54  ;;  %v3643_v28 = vstv %s2834_s20  ;;  %s2844_s20 = sld [smem:[#allocation8 + $0x5e]] }
 0x38e   : > { %5604 = vst [vmem:[#allocation23_spill] sm:$0xff] %v3611_v38  ;;  %v1717_v56 = vrot.slane %v1711_v26, 4  ;;  %v1830_v26 = vmul.f32 %v3643_v28, %v3371_v54 }
 0x38f   : > { %5605 = vst [vmem:[#allocation24_spill] sm:$0xff] %v3626_v41 }
 0x390   : > { %5607 = vst [vmem:[#allocation26_spill] sm:$0xff] %v3643_v28 }
 0x391   : > { %1387 = vrot.lane.b32.xlu0 %v1383_v0, %s5509_s5  ;;  %1249 = vrot.lane.b32.xlu2 %v1244_v18, %s5597_s7  ;;  %v5463_v0 = vrot.slane %v3514_v12, 3  ;;  %v609_v18 = vadd.f32 %v605_v46, %v591_v48  ;;  %v5464_v46 = vrot.slane %v3608_v37, 4  ;;  %v5466_v48 = vrot.slane %v3626_v41, 2  ;;  %v4223_v41 = vld [vmem:[#allocation2 + $0x20] sm:$0xff] }
 0x392   : > { %1109 = vrot.lane.b32.xlu1 %v1104_v19, %s5598_s11  ;;  %v3593_v19 = vstv %s3541_s0  ;;  %s2832_s0 = sld [smem:[#allocation8 + $0x3a]]  ;;  %5683 = vst [vmem:[#allocation95_spill] sm:$0xff] %v4223_v41 }
 0x393   : > { %5600 = vst [vmem:[#allocation19_spill] sm:$0xff] %v3593_v19  ;;  %v627_v33 = vadd.f32 %v623_v47, %v609_v18  ;;  %v3604_v36 = vmul.f32 %v3593_v19, %v3405_v16  ;;  %v1698_v62 = vsel %vm618_vm2, %v1696_v27, %v5463_v0  ;;  %v1753_v24 = vmul.f32 %v3593_v19, %v3371_v54 }
 0x394   : > { %v1675_v18 = vrot.slane %v1669_v57, 2  ;;  %v3641_v27 = vstv %s3595_s6  ;;  %s2835_s6 = sld [smem:[#allocation8 + $0x4f]]  ;;  %v3719_v0 = vstv %s2841_s1  ;;  %v3758_v30 = vstv %s2844_s20 }
 0x395   : > { %5602 = vst [vmem:[#allocation21_spill] sm:$0xff] %v3604_v36  ;;  %v645_v40 = vadd.f32 %v641_v50, %v627_v33  ;;  %v5461_v45 = vrot.slane %v3604_v36, 6  ;;  %v1759_v50 = vrot.slane %v1753_v24, 6  ;;  %v1809_v24 = vmul.f32 %v3641_v27, %v3371_v54  ;;  %s2842_s1 = sld [smem:[#allocation8 + $0x50]] }
 0x396   : > { %5606 = vst [vmem:[#allocation25_spill] sm:$0xff] %v3641_v27  ;;  %s2846_s20 = sld [smem:[#allocation8 + $0x3c]] }
 0x397   : > { %v663_v43 = vadd.f32 %v659_v52, %v645_v40  ;;  %v3645_v52 = vstv %s2829_s22  ;;  %v1761_v33 = vsel %vm297_vm3, %v1759_v50, %v5461_v45  ;;  %s2843_s22 = sld [smem:[#allocation8 + $0x57]]  ;;  %5618 = vst [vmem:[#allocation37_spill] sm:$0xff] %v3719_v0 }
 0x398   : > { %5608 = vst [vmem:[#allocation27_spill] sm:$0xff] %v3645_v52  ;;  %v3668_v40 = vmul.f32 %v3645_v52, %v3405_v16  ;;  %v3684_v8 = vstv %s2832_s0  ;;  %s2848_s0 = sld [smem:[#allocation8 + $0x4a]] }
 0x399   : > { %1701 = vrot.lane.b32.xlu0 %v1698_v62, %s3112_s25  ;;  %1659 = vrot.lane.b32.xlu2 %v1656_v63, %s3112_s25  ;;  %v3637_v47 = vadd.f32 %v676_v25, %v663_v43  ;;  %v1719_v25 = vsel %vm636_vm5, %v1717_v56, %v5464_v46  ;;  %v3655_v62 = vmul.f32 %v3641_v27, %v3405_v16  ;;  %v3721_v46 = vstv %s2840_s3  ;;  %s2850_s3 = sld [smem:[#allocation8 + $0x58]] }
 0x39a   : > { %1389 = vrot.lane.b32.xlu1 %v1384_v39, %s5509_s5  ;;  %v3659_v63 = vmul.f32 %v3643_v28, %v3405_v16  ;;  %v1677_v39 = vsel %vm600_vm4, %v1675_v18, %v5466_v48  ;;  %5611 = vst [vmem:[#allocation30_spill] sm:$0xff] %v3668_v40  ;;  %v1732_v43 = vmul.f32 %v3645_v52, %v3371_v54  ;;  %v5465_v56 = vrot.slane %v3668_v40, 5  ;;  %s3934_s5 = sld [smem:[#allocation8 + $0x2c]] }
 0x39b   : > { %5609 = vst [vmem:[#allocation28_spill] sm:$0xff] %v3655_v62  ;;  %v5459_v57 = vrot.slane %v3655_v62, 2  ;;  %v1815_v18 = vrot.slane %v1809_v24, 2  ;;  %v3801_v3 = vstv %s2842_s1  ;;  %s2779_s1 = sld [smem:[#allocation8 + $0x1d]] }
 0x39c   : > { %5610 = vst [vmem:[#allocation29_spill] sm:$0xff] %v3659_v63  ;;  %v5460_v50 = vrot.slane %v3659_v63, 3 }
 0x39d   : > { %5614 = vst [vmem:[#allocation33_spill] sm:$0xff] %v3684_v8  ;;  %v1817_v59 = vsel %vm600_vm4, %v1815_v18, %v5459_v57  ;;  %v3707_v18 = vmul.f32 %v3684_v8, %v3405_v16  ;;  %v1893_v57 = vmul.f32 %v3682_v13, %v3371_v54  ;;  %v3760_v29 = vstv %s2843_s22  ;;  %s2776_s22 = sld [smem:[#allocation8 + $0x8]] }
 0x39e   : > { %5619 = vst [vmem:[#allocation38_spill] sm:$0xff] %v3721_v46  ;;  %v3799_v9 = vstv %s2848_s0  ;;  %s2853_s0 = sld [smem:[#allocation8 + $0x3d]] }
 0x39f   : > { %5617 = vst [vmem:[#allocation36_spill] sm:$0xff] %v3707_v18  ;;  %v1899_v51 = vrot.slane %v1893_v57, 6  ;;  %v3733_v57 = vmul.f32 %v3719_v0, %v3405_v16 }
 0x3a0   : > { %5624 = vst [vmem:[#allocation43_spill] sm:$0xff] %v3758_v30 }
 0x3a1   : > { %1764 = vrot.lane.b32.xlu0 %v1761_v33, %s3112_s25  ;;  %1722 = vrot.lane.b32.xlu2 %v1719_v25, %s3112_s25  ;;  %v1836_v33 = vrot.slane %v1830_v26, 3  ;;  %v1738_v25 = vrot.slane %v1732_v43, 5  ;;  %v3698_v26 = vmul.f32 %v3682_v13, %v3405_v16  ;;  %5621 = vst [vmem:[#allocation40_spill] sm:$0xff] %v3733_v57 }
 0x3a2   : > { %1680 = vrot.lane.b32.xlu1 %v1677_v39, %s3112_s25  ;;  %v3680_v39 = vstv %s2836_s10  ;;  %s2839_s10 = sld [smem:[#allocation8 + $0x3b]]  ;;  %5625 = vst [vmem:[#allocation44_spill] sm:$0xff] %v3760_v29 }
 0x3a3   : > { %5612 = vst [vmem:[#allocation31_spill] sm:$0xff] %v3680_v39  ;;  %v1838_v58 = vsel %vm618_vm2, %v1836_v33, %v5460_v50  ;;  %v3694_v24 = vmul.f32 %v3680_v39, %v3405_v16  ;;  %v1740_v43 = vsel %vm654_vm6, %v1738_v25, %v5465_v56  ;;  %v1872_v33 = vmul.f32 %v3680_v39, %v3371_v54 }
 0x3a4   : > { %5616 = vst [vmem:[#allocation35_spill] sm:$0xff] %v3698_v26  ;;  %v5469_v50 = vrot.slane %v3698_v26, 6  ;;  %v5470_v25 = vrot.slane %v3707_v18, 1  ;;  %v3723_v56 = vstv %s2835_s6  ;;  %s2851_s6 = sld [smem:[#allocation8 + $0x5f]]  ;;  %v3974_v26 = vstv %s3934_s5 }
 0x3a5   : > { %5615 = vst [vmem:[#allocation34_spill] sm:$0xff] %v3694_v24  ;;  %v1878_v45 = vrot.slane %v1872_v33, 5  ;;  %v3737_v33 = vmul.f32 %v3721_v46, %v3405_v16  ;;  %v4002_v27 = vmul.f32 %v3974_v26, %v3441_v34  ;;  %s4004_s5 = sld [smem:[#allocation8 + $0x4b]] }
 0x3a6   : > { %5620 = vst [vmem:[#allocation39_spill] sm:$0xff] %v3723_v56  ;;  %v1901_v44 = vsel %vm297_vm3, %v1899_v51, %v5469_v50  ;;  %v1970_v51 = vmul.f32 %v3719_v0, %v3371_v54 }
 0x3a7   : > { %5622 = vst [vmem:[#allocation41_spill] sm:$0xff] %v3737_v33  ;;  %v5477_v50 = vrot.slane %v3737_v33, 2 }
 0x3a8   : > { %v3762_v22 = vstv %s2839_s10  ;;  %5631 = vst [vmem:[#allocation50_spill] sm:$0xff] %v3799_v9  ;;  %s2849_s10 = sld [smem:[#allocation8 + $0x51]] }
 0x3a9   : > { %1820 = vrot.lane.b32.xlu0 %v1817_v59, %s5538_s13  ;;  %1841 = vrot.lane.b32.xlu2 %v1838_v58, %s5538_s13  ;;  %v1788_v59 = vmul.f32 %v3684_v8, %v3371_v54  ;;  %v5468_v58 = vrot.slane %v3694_v24, 5  ;;  %5626 = vst [vmem:[#allocation45_spill] sm:$0xff] %v3762_v22  ;;  %v3838_v24 = vstv %s2850_s3  ;;  %s2778_s3 = sld [smem:[#allocation8 + $0x16]] }
 0x3aa   : > { %1743 = vrot.lane.b32.xlu1 %v1740_v43, %s3112_s25  ;;  %5632 = vst [vmem:[#allocation51_spill] sm:$0xff] %v3801_v3 }
 0x3ab   : > { %v1794_v43 = vrot.slane %v1788_v59, 1  ;;  %v1880_v48 = vsel %vm654_vm6, %v1878_v45, %v5468_v58  ;;  %v3746_v59 = vmul.f32 %v3723_v56, %v3405_v16  ;;  %v1949_v58 = vmul.f32 %v3721_v46, %v3371_v54  ;;  %5638 = vst [vmem:[#allocation56_spill] sm:$0xff] %v3838_v24 }
 0x3ad   : > { %v1796_v45 = vsel %vm582_vm1, %v1794_v43, %v5470_v25  ;;  %5623 = vst [vmem:[#allocation42_spill] sm:$0xff] %v3746_v59  ;;  %v5479_v43 = vrot.slane %v3746_v59, 4  ;;  %v1976_v25 = vrot.slane %v1970_v51, 3  ;;  %v1955_v35 = vrot.slane %v1949_v58, 2 }
 0x3ae   : > { %v3772_v58 = vmul.f32 %v3758_v30, %v3405_v16  ;;  %v3776_v51 = vmul.f32 %v3760_v29, %v3405_v16 }
 0x3af   : > { %v1957_v20 = vsel %vm600_vm4, %v1955_v35, %v5477_v50  ;;  %v2033_v35 = vmul.f32 %v3758_v30, %v3371_v54  ;;  %v2012_v50 = vmul.f32 %v3760_v29, %v3371_v54 }
 0x3b0   : > { %5627 = vst [vmem:[#allocation46_spill] sm:$0xff] %v3772_v58 }
 0x3b1   : > { %1883 = vrot.lane.b32.xlu0 %v1880_v48, %s5538_s13  ;;  %1904 = vrot.lane.b32.xlu2 %v1901_v44, %s5538_s13  ;;  %v1851_v48 = vmul.f32 %v3723_v56, %v3371_v54  ;;  %v5478_v44 = vrot.slane %v3733_v57, 3  ;;  %5628 = vst [vmem:[#allocation47_spill] sm:$0xff] %v3776_v51  ;;  %v2018_v7 = vrot.slane %v2012_v50, 5  ;;  %v3811_v50 = vmul.f32 %v3797_v6, %v3405_v16 }
 0x3b2   : > { %1799 = vrot.lane.b32.xlu1 %v1796_v45, %s5538_s13 }
 0x3b3   : > { %v1857_v45 = vrot.slane %v1851_v48, 4  ;;  %v1978_v17 = vsel %vm618_vm2, %v1976_v25, %v5478_v44  ;;  %v3785_v48 = vmul.f32 %v3762_v22, %v3405_v16  ;;  %v5486_v44 = vrot.slane %v3776_v51, 5  ;;  %5633 = vst [vmem:[#allocation52_spill] sm:$0xff] %v3811_v50 }
 0x3b5   : > { %v1859_v25 = vsel %vm636_vm5, %v1857_v45, %v5479_v43  ;;  %5629 = vst [vmem:[#allocation48_spill] sm:$0xff] %v3785_v48  ;;  %v2039_v43 = vrot.slane %v2033_v35, 6  ;;  %v2020_v45 = vsel %vm654_vm6, %v2018_v7, %v5486_v44  ;;  %v3815_v35 = vmul.f32 %v3799_v9, %v3405_v16 }
 0x3b6   : > { %v3826_v7 = vmul.f32 %v3801_v3, %v3405_v16  ;;  %v2089_v44 = vmul.f32 %v3797_v6, %v3371_v54  ;;  %v3842_v6 = vstv %s2846_s20  ;;  %s3911_s20 = sld [smem:[#allocation8 + $0x9]] }
 0x3b7   : > { %5634 = vst [vmem:[#allocation53_spill] sm:$0xff] %v3815_v35  ;;  %v5494_v51 = vrot.slane %v3815_v35, 3 }
 0x3b8   : > { %5637 = vst [vmem:[#allocation55_spill] sm:$0xff] %v3826_v7 }
 0x3b9   : > { %1981 = vrot.lane.b32.xlu0 %v1978_v17, %s5514_s30  ;;  %1960 = vrot.lane.b32.xlu2 %v1957_v20, %s5514_s30  ;;  %v1928_v17 = vmul.f32 %v3762_v22, %v3371_v54  ;;  %v5485_v20 = vrot.slane %v3772_v58, 6  ;;  %5640 = vst [vmem:[#allocation58_spill] sm:$0xff] %v3842_v6 }
 0x3ba   : > { %1862 = vrot.lane.b32.xlu1 %v1859_v25, %s5538_s13  ;;  %s4080_s13 = sld [smem:[#allocation8 + $0x38]] }
 0x3bb   : > { %v1934_v25 = vrot.slane %v1928_v17, 1  ;;  %v2041_v29 = vsel %vm297_vm3, %v2039_v43, %v5485_v20  ;;  %v3817_v17 = vpop.permute.xlu2 %1778  ;;  %v5636_v43 = vrot.slane %v3785_v48, 1  ;;  %v3888_v48 = vstv %s2849_s10  ;;  %s3927_s10 = sld [smem:[#allocation8 + $0x17]] }
 0x3bc   : > { %5635 = vst [vmem:[#allocation54_spill] sm:$0xff] %v3817_v17  ;;  %v2110_v17 = vmul.f32 %v3799_v9, %v3371_v54 }
 0x3bd   : > { %v1936_v20 = vsel %vm582_vm1, %v1934_v25, %v5636_v43  ;;  %v5496_v25 = vrot.slane %v3826_v7, 4  ;;  %v2095_v43 = vrot.slane %v2089_v44, 2  ;;  %v3852_v44 = vmul.f32 %v3838_v24, %v3405_v16  ;;  %5646 = vst [vmem:[#allocation64_spill] sm:$0xff] %v3888_v48 }
 0x3be   : > { %v2116_v33 = vrot.slane %v2110_v17, 3 }
 0x3bf   : > { %5641 = vst [vmem:[#allocation59_spill] sm:$0xff] %v3852_v44 }
 0x3c1   : > { %2044 = vrot.lane.b32.xlu0 %v2041_v29, %s5514_s30  ;;  %2023 = vrot.lane.b32.xlu2 %v2020_v45, %s5514_s30  ;;  %v1991_v29 = vmul.f32 %v3801_v3, %v3371_v54  ;;  %v5495_v45 = vrot.slane %v3811_v50, 2  ;;  %v2118_v3 = vsel %vm618_vm2, %v2116_v33, %v5494_v51  ;;  %v3865_v33 = vmul.f32 %v3842_v6, %v3405_v16 }
 0x3c2   : > { %1939 = vrot.lane.b32.xlu1 %v1936_v20, %s5514_s30  ;;  %v3840_v20 = vstv %s2851_s6  ;;  %s2780_s6 = sld [smem:[#allocation8 + $0x24]] }
 0x3c3   : > { %v1997_v46 = vrot.slane %v1991_v29, 4  ;;  %5639 = vst [vmem:[#allocation57_spill] sm:$0xff] %v3840_v20  ;;  %v2097_v9 = vsel %vm600_vm4, %v2095_v43, %v5495_v45  ;;  %v3856_v17 = vmul.f32 %v3840_v20, %v3405_v16  ;;  %v2152_v43 = vmul.f32 %v3838_v24, %v3371_v54  ;;  %v3872_v45 = vpop.permute.xlu2 %2058 }
 0x3c4   : > { %5643 = vst [vmem:[#allocation61_spill] sm:$0xff] %v3865_v33  ;;  %v2173_v51 = vmul.f32 %v3840_v20, %v3371_v54  ;;  %v696_v24 = vstv %s2776_s22  ;;  %s2781_s22 = sld [smem:[#allocation8 + $0x2b]] }
 0x3c5   : > { %5642 = vst [vmem:[#allocation60_spill] sm:$0xff] %v3856_v17  ;;  %v1999_v29 = vsel %vm636_vm5, %v1997_v46, %v5496_v25  ;;  %v5504_v46 = vrot.slane %v3856_v17, 6  ;;  %v5505_v25 = vrot.slane %v3865_v33, 1  ;;  %v2158_v35 = vrot.slane %v2152_v43, 5 }
 0x3c6   : > { %5644 = vst [vmem:[#allocation62_spill] sm:$0xff] %v3872_v45  ;;  %v2179_v7 = vrot.slane %v2173_v51, 6  ;;  %v698_v20 = vmul.f32 %v696_v24, %v3463_v42  ;;  %v699_v33 = vmul.f32 %v696_v24, %v3509_v11 }
 0x3c8   : > { %v780_v17 = vstv %s2780_s6  ;;  %s4032_s6 = sld [smem:[#allocation8 + $0x60]] }
 0x3c9   : > { %2100 = vrot.lane.b32.xlu0 %v2097_v9, %s5598_s11  ;;  %2121 = vrot.lane.b32.xlu2 %v2118_v3, %s5598_s11  ;;  %v2068_v3 = vmul.f32 %v3842_v6, %v3371_v54  ;;  %v5506_v9 = vrot.slane %v3852_v44, 5  ;;  %v2181_v6 = vsel %vm297_vm3, %v2179_v7, %v5504_v46  ;;  %v697_v7 = vmul.f32 %v696_v24, %v3441_v34 }
 0x3ca   : > { %2002 = vrot.lane.b32.xlu1 %v1999_v29, %s5514_s30  ;;  %v3879_v29 = vpop.permute.xlu0 %1638  ;;  %s3936_s30 = sld [smem:[#allocation8 + $0x52]]  ;;  %v4034_v28 = vpop.permute.xlu1 %1640 }
 0x3cb   : > { %5645 = vst [vmem:[#allocation63_spill] sm:$0xff] %v3879_v29  ;;  %v2074_v50 = vrot.slane %v2068_v3, 1  ;;  %v2160_v45 = vsel %vm654_vm6, %v2158_v35, %v5506_v9  ;;  %v3897_v35 = vmul.f32 %v3888_v48, %v3405_v16  ;;  %v3901_v43 = vpop.permute.xlu2 %687  ;;  %v2131_v3 = vmul.f32 %v3888_v48, %v3371_v54 }
 0x3cc   : > { %v703_v46 = vrot.slane %v697_v7, 1  ;;  %v3907_v29 = vstv %s2853_s0  ;;  %s2786_s0 = sld [smem:[#allocation8 + $0x1e]]  ;;  %5660 = vst [vmem:[#allocation76_spill] sm:$0xff] %v4034_v28 }
 0x3cd   : > { %v2076_v51 = vsel %vm582_vm1, %v2074_v50, %v5505_v25  ;;  %5647 = vst [vmem:[#allocation65_spill] sm:$0xff] %v3897_v35  ;;  %v2137_v50 = vrot.slane %v2131_v3, 4  ;;  %v717_v25 = vstv %s2777_s12  ;;  %s2784_s12 = sld [smem:[#allocation8 + $0x10]]  ;;  %v706_v3 = vrot.slane %v699_v33, 1 }
 0x3ce   : > { %5648 = vst [vmem:[#allocation66_spill] sm:$0xff] %v3907_v29  ;;  %v719_v24 = vmul.f32 %v717_v25, %v3463_v42 }
 0x3d0   : > { %v3992_v0 = vstv %s3936_s30  ;;  %s4016_s30 = sld [smem:[#allocation8 + $0x1b]] }
 0x3d1   : > { %2163 = vrot.lane.b32.xlu0 %v2160_v45, %s5598_s11  ;;  %2184 = vrot.lane.b32.xlu2 %v2181_v6, %s5598_s11  ;;  %v704_v45 = vrot.slane %v698_v20, 1  ;;  %v5511_v6 = vrot.slane %v3897_v35, 4  ;;  %v738_v35 = vstv %s2778_s3  ;;  %5654 = vst [vmem:[#allocation72_spill] sm:$0xff] %v3992_v0  ;;  %s4022_s3 = sld [smem:[#allocation8 + $0x44]] }
 0x3d2   : > { %2079 = vrot.lane.b32.xlu1 %v2076_v51, %s5598_s11  ;;  %v720_v51 = vmul.f32 %v717_v25, %v3509_v11  ;;  %v3913_v48 = vpop.permute.xlu0 %1918 }
 0x3d3   : > { %v705_v9 = vsel %vm582_vm1, %v703_v46, %v704_v45  ;;  %5649 = vst [vmem:[#allocation67_spill] sm:$0xff] %v3913_v48  ;;  %v2139_v20 = vsel %vm636_vm5, %v2137_v50, %v5511_v6  ;;  %v3923_v46 = vmul.f32 %v3907_v29, %v3405_v16  ;;  %v725_v6 = vrot.slane %v719_v24, 2 }
 0x3d4   : > { %v759_v48 = vstv %s2779_s1  ;;  %s3989_s1 = sld [smem:[#allocation8 + $0x25]] }
 0x3d5   : > { %5650 = vst [vmem:[#allocation68_spill] sm:$0xff] %v3923_v46  ;;  %v5519_v50 = vrot.slane %v3923_v46, 1  ;;  %v3941_v33 = vmul.f32 %v759_v48, %v3463_v42  ;;  %v783_v46 = vmul.f32 %v780_v17, %v3509_v11 }
 0x3d9   : > { %1661 = vrot.lane.b32.xlu2 %v3438_v32, %s3112_s25  ;;  %708 = vrot.lane.b32.xlu0 %v705_v9, %s3112_s25  ;;  %v2208_v32 = vmul.f32 %v3907_v29, %v3371_v54  ;;  %v727_v9 = vrot.slane %v720_v51, 2  ;;  %v707_v54 = vsel %vm582_vm1, %v704_v45, %v706_v3  ;;  %v3944_v51 = vmul.f32 %v738_v35, %v3463_v42 }
 0x3da   : > { %2142 = vrot.lane.b32.xlu1 %v2139_v20, %s5598_s11  ;;  %v739_v45 = vmul.f32 %v738_v35, %v3441_v34  ;;  %v801_v3 = vstv %s2781_s22  ;;  %v3955_v29 = vpop.permute.xlu0 %2198  ;;  %s4047_s22 = sld [smem:[#allocation8 + $0x45]] }
 0x3db   : > { %v3929_v7 = vpop.permute.xlu2 %829  ;;  %v2214_v20 = vrot.slane %v2208_v32, 1  ;;  %v728_v44 = vsel %vm600_vm4, %v725_v6, %v727_v9  ;;  %v718_v32 = vmul.f32 %v717_v25, %v3441_v34  ;;  %v760_v9 = vmul.f32 %v759_v48, %v3441_v34  ;;  %5652 = vst [vmem:[#allocation70_spill] sm:$0xff] %v3955_v29 }
 0x3dc   : > { %5651 = vst [vmem:[#allocation69_spill] sm:$0xff] %v3929_v7  ;;  %v3971_v29 = vmul.f32 %v801_v3, %v3441_v34  ;;  %v745_v57 = vrot.slane %v739_v45, 3  ;;  %v5655_v45 = vrot.slane %v3941_v33, 4  ;;  %v5656_v62 = vrot.slane %v3944_v51, 3 }
 0x3dd   : > { %v2216_v24 = vsel %vm582_vm1, %v2214_v20, %v5519_v50  ;;  %v3960_v20 = vmul.f32 %v780_v17, %v3441_v34  ;;  %v878_v50 = vstv %s3927_s10  ;;  %v724_v22 = vrot.slane %v718_v32, 2  ;;  %s4050_s10 = sld [smem:[#allocation8 + $0x3e]] }
 0x3de   : > { %v766_v30 = vrot.slane %v760_v9, 4  ;;  %v3977_v39 = vmul.f32 %v878_v50, %v3441_v34  ;;  %v762_v32 = vmul.f32 %v759_v48, %v3509_v11  ;;  %v747_v63 = vsel %vm618_vm2, %v745_v57, %v5656_v62 }
 0x3df   : > { %v787_v9 = vrot.slane %v3960_v20, 5  ;;  %v4008_v48 = vmul.f32 %v3992_v0, %v3405_v16  ;;  %v726_v20 = vsel %vm600_vm4, %v724_v22, %v725_v6  ;;  %v782_v62 = vmul.f32 %v780_v17, %v3463_v42 }
 0x3e0   : > { %v808_v57 = vrot.slane %v3971_v29, 6  ;;  %v885_v22 = vrot.slane %v3977_v39, 3  ;;  %v790_v29 = vrot.slane %v783_v46, 5  ;;  %v880_v39 = vmul.f32 %v878_v50, %v3463_v42 }
 0x3e1   : > { %731 = vrot.lane.b32.xlu0 %v728_v44, %s3112_s25  ;;  %710 = vrot.lane.b32.xlu2 %v707_v54, %s3112_s25  ;;  %v836_v44 = vstv %s3911_s20  ;;  %v3964_v54 = vstv %s2784_s12  ;;  %5657 = vst [vmem:[#allocation73_spill] sm:$0xff] %v4008_v48  ;;  %s4041_s20 = sld [smem:[#allocation8 + $0x59]]  ;;  %v788_v56 = vrot.slane %v782_v62, 5  ;;  %v881_v19 = vmul.f32 %v878_v50, %v3509_v11 }
 0x3e2   : > { %2219 = vrot.lane.b32.xlu1 %v2216_v24, %s5597_s7  ;;  %v3968_v24 = vstv %s2786_s0  ;;  %v3981_v13 = vmul.f32 %v3964_v54, %v3441_v34  ;;  %v3984_v25 = vmul.f32 %v836_v44, %v3441_v34  ;;  %v839_v34 = vmul.f32 %v836_v44, %v3509_v11  ;;  %s4062_s12 = sld [smem:[#allocation8 + $0x5a]] }
 0x3e3   : > { %v3957_v58 = vpop.permute.xlu2 %1107  ;;  %v838_v6 = vmul.f32 %v836_v44, %v3463_v42  ;;  %v4039_v59 = vmul.f32 %v3964_v54, %v3463_v42  ;;  %v791_v50 = vsel %vm654_vm6, %v788_v56, %v790_v29  ;;  %s4069_s0 = sld [smem:[#allocation8 + $0x53]]  ;;  %v789_v29 = vsel %vm654_vm6, %v787_v9, %v788_v56 }
 0x3e4   : > { %5653 = vst [vmem:[#allocation71_spill] sm:$0xff] %v3957_v58  ;;  %v768_v58 = vsel %vm636_vm5, %v766_v30, %v5655_v45  ;;  %v741_v30 = vmul.f32 %v738_v35, %v3509_v11  ;;  %v803_v45 = vmul.f32 %v801_v3, %v3463_v42  ;;  %v769_v35 = vrot.slane %v762_v32, 4 }
 0x3e5   : > { %v864_v44 = vrot.slane %v3981_v13, 2  ;;  %v846_v28 = vrot.slane %v839_v34, 1  ;;  %v843_v13 = vrot.slane %v3984_v25, 1  ;;  %v5662_v34 = vrot.slane %v3941_v33, 4 }
 0x3e6   : > { %v748_v32 = vrot.slane %v741_v30, 3  ;;  %v809_v36 = vrot.slane %v803_v45, 6  ;;  %v844_v30 = vrot.slane %v838_v6, 1  ;;  %v5663_v25 = vrot.slane %v3944_v51, 3 }
 0x3e7   : > { %v770_v45 = vsel %vm636_vm5, %v5662_v34, %v769_v35  ;;  %v4078_v33 = vstv %s3989_s1  ;;  %v888_v51 = vrot.slane %v881_v19, 3  ;;  %v4086_v34 = vstv %s4022_s3  ;;  %s4105_s1 = sld [smem:[#allocation8 + $0x46]] }
 0x3e8   : > { %v749_v6 = vsel %vm618_vm2, %v5663_v25, %v748_v32  ;;  %v847_v35 = vsel %vm582_vm1, %v844_v30, %v846_v28  ;;  %5664 = vst [vmem:[#allocation78_spill] sm:$0xff] %v4086_v34  ;;  %v4103_v19 = vmul.f32 %v4086_v34, %v3405_v16  ;;  %s4202_s3 = sld [smem:[#allocation8 + $0x54]] }
 0x3e9   : > { %771 = vrot.lane.b32.xlu0 %v768_v58, %s3112_s25  ;;  %750 = vrot.lane.b32.xlu2 %v747_v63, %s3112_s25  ;;  %v2273_v63 = vmul.f32 %v3992_v0, %v3419_v21  ;;  %v4026_v58 = vpop.permute.xlu0 %827  ;;  %v4181_v0 = vstv %s4062_s12  ;;  %s2795_s12 = sld [smem:[#allocation8 + $0x2d]] }
 0x3ea   : > { %729 = vrot.lane.b32.xlu1 %v726_v20, %s3112_s25  ;;  %5658 = vst [vmem:[#allocation74_spill] sm:$0xff] %v4026_v58  ;;  %v804_v20 = vmul.f32 %v801_v3, %v3509_v11  ;;  %v902_v3 = vmul.f32 %v3968_v24, %v3509_v11  ;;  %v5680_v40 = vrot.slane %v4103_v19, 2 }
 0x3eb   : > { %v4028_v17 = vpop.permute.xlu2 %1249  ;;  %v2280_v46 = vrot.slane %v2273_v63, 4  ;;  %v4060_v63 = vmul.f32 %v3968_v24, %v3463_v42  ;;  %5667 = vst [vmem:[#allocation81_spill] sm:$0xff] %v4103_v19 }
 0x3ec   : > { %5659 = vst [vmem:[#allocation75_spill] sm:$0xff] %v4028_v17  ;;  %v5537_v17 = vrot.slane %v4008_v48, 4  ;;  %v811_v62 = vrot.slane %v804_v20, 6  ;;  %v909_v20 = vrot.slane %v902_v3, 4  ;;  %v4098_v3 = vsel %vm582_vm1, %v843_v13, %v844_v30 }
 0x3ed   : > { %v5540_v28 = vrot.slane %v4060_v63, 4  ;;  %v4115_v30 = vmul.f32 %v3964_v54, %v3509_v11  ;;  %5674 = vst [vmem:[#allocation87_spill] sm:$0xff] %v4181_v0  ;;  %v4212_v37 = vstv %s4105_s1  ;;  %s2797_s1 = sld [smem:[#allocation8 + $0xb]] }
 0x3ee   : > { %v4055_v18 = vsel %vm636_vm5, %v5537_v17, %v2280_v46  ;;  %v886_v46 = vrot.slane %v880_v39, 3  ;;  %v5541_v17 = vrot.slane %v4039_v59, 2  ;;  %v810_v39 = vsel %vm297_vm3, %v808_v57, %v809_v36 }
 0x3ef   : > { %5661 = vst [vmem:[#allocation77_spill] sm:$0xff] %v4055_v18  ;;  %v4095_v9 = vsel %vm297_vm3, %v809_v36, %v811_v62  ;;  %v4119_v62 = vmul.f32 %v3974_v26, %v3463_v42  ;;  %v4124_v13 = vsel %vm636_vm5, %v5540_v28, %v909_v20  ;;  %v4148_v20 = vstv %s4032_s6  ;;  %s2792_s6 = sld [smem:[#allocation8 + $0x18]] }
 0x3f0   : > { %v866_v36 = vsel %vm600_vm4, %v864_v44, %v5541_v17  ;;  %v4131_v44 = vstv %s4016_s30  ;;  %v4137_v54 = vsel %vm618_vm2, %v886_v46, %v888_v51  ;;  %v4153_v17 = vmul.f32 %v4148_v20, %v3405_v16  ;;  %s5673_s30 = smov 126  }
 0x3f1   : > { %794 = vrot.lane.b32.xlu0 %v791_v50, %s3112_s25  ;;  %773 = vrot.lane.b32.xlu2 %v770_v45, %s3112_s25  ;;  %v887_v50 = vsel %vm618_vm2, %v885_v22, %v886_v46  ;;  %v4128_v22 = vmul.f32 %v4078_v33, %v3463_v42  ;;  %5668 = vst [vmem:[#allocation82_spill] sm:$0xff] %v4131_v44  ;;  %v4134_v45 = vstv %s4004_s5  ;;  %v4156_v46 = vstv %s4041_s20  ;;  %s4158_s5 = sld [smem:[#allocation8 + $0x4d]] }
 0x3f2   : > { %752 = vrot.lane.b32.xlu1 %v749_v6, %s3112_s25  ;;  %5669 = vst [vmem:[#allocation83_spill] sm:$0xff] %v4134_v45  ;;  %v4141_v25 = vmul.f32 %v4131_v44, %v3463_v42  ;;  %v4145_v6 = vmul.f32 %v4134_v45, %v3405_v16  ;;  %v2231_v42 = vmul.f32 %v4086_v34, %v3419_v21  ;;  %v4170_v18 = vstv %s4050_s10  ;;  %s2790_s20 = sld [smem:[#allocation8 + $0xa]]  ;;  %s5719_s10 = smov 125  }
 0x3f3   : > { %v4090_v32 = vpop.permute.xlu0 %969  ;;  %v4092_v56 = vpop.permute.xlu2 %1659  ;;  %5670 = vst [vmem:[#allocation84_spill] sm:$0xff] %v4156_v46  ;;  %v4164_v51 = vmul.f32 %v4156_v46, %v3405_v16  ;;  %v2294_v28 = vmul.f32 %v4156_v46, %v3419_v21  ;;  %v4189_v8 = vmul.f32 %v4170_v18, %v3405_v16  ;;  %v4200_v46 = vstv %s4080_s13  ;;  %s4334_s13 = sld [smem:[#allocation8 + $0x11]] }
 0x3f4   : > { %5665 = vst [vmem:[#allocation79_spill] sm:$0xff] %v4090_v32  ;;  %v4107_v57 = vpop.permute.xlu1 %689  ;;  %v4184_v32 = vstv %s4069_s0  ;;  %v2238_v12 = vrot.slane %v2231_v42, 2  ;;  %v1441_v34 = vmul.f32 %v4131_v44, %v3509_v11  ;;  %s2793_s0 = sld [smem:[#allocation8 + $0x1f]] }
 0x3f5   : > { %5666 = vst [vmem:[#allocation80_spill] sm:$0xff] %v4092_v56  ;;  %v4167_v56 = vstv %s4047_s22  ;;  %v2301_v52 = vrot.slane %v2294_v28, 5  ;;  %s2794_s22 = sld [smem:[#allocation8 + $0x26]] }
 0x3f6   : > { %5671 = vst [vmem:[#allocation85_spill] sm:$0xff] %v4167_v56  ;;  %v4178_v48 = vmul.f32 %v4167_v56, %v3405_v16  ;;  %v4217_v31 = vsel %vm600_vm4, %v5680_v40, %v2238_v12  ;;  %v2252_v12 = vmul.f32 %v4134_v45, %v3419_v21  ;;  %v1448_v38 = vrot.slane %v1441_v34, 3 }
 0x3f7   : > { %5672 = vst [vmem:[#allocation86_spill] sm:$0xff] %v4170_v18  ;;  %v4250_v40 = vstv %s4158_s5  ;;  %v5685_v45 = vrot.slane %v4141_v25, 3  ;;  %s2798_s5 = sld [smem:[#allocation8 + $0x12]] }
 0x3f8   : > { %5675 = vst [vmem:[#allocation88_spill] sm:$0xff] %v4184_v32  ;;  %v2259_v44 = vrot.slane %v2252_v12, 3 }
 0x3f9   : > { %850 = vrot.lane.b32.xlu0 %v847_v35, %s5673_s30  ;;  %813 = vrot.lane.b32.xlu2 %v810_v39, %s3112_s25  ;;  %5676 = vst [vmem:[#allocation89_spill] sm:$0xff] %v4189_v8  ;;  %v4193_v35 = vmul.f32 %v4181_v0, %v3405_v16  ;;  %v4197_v39 = vmul.f32 %v4184_v32, %v3405_v16 }
 0x3fa   : > { %792 = vrot.lane.b32.xlu1 %v789_v29, %s3112_s25  ;;  %5677 = vst [vmem:[#allocation90_spill] sm:$0xff] %v4200_v46  ;;  %v4209_v29 = vstv %s4088_s2  ;;  %s4233_s2 = sld [smem:[#allocation8 + $0x5b]]  ;;  %v4260_v19 = vsel %vm618_vm2, %v5685_v45, %v1448_v38 }
 0x3fb   : > { %v4204_v49 = vpop.permute.xlu0 %1247  ;;  %v4206_v42 = vpop.permute.xlu2 %1722  ;;  %5681 = vst [vmem:[#allocation93_spill] sm:$0xff] %v4217_v31  ;;  %v5558_v31 = vrot.slane %v4164_v51, 5 }
 0x3fc   : > { %5678 = vst [vmem:[#allocation91_spill] sm:$0xff] %v4204_v49  ;;  %v4219_v16 = vpop.permute.xlu1 %967  ;;  %v4231_v49 = vmul.f32 %v4223_v41, %v4209_v29 }
 0x3fd   : > { %5679 = vst [vmem:[#allocation92_spill] sm:$0xff] %v4206_v42  ;;  %v4227_v42 = vmul.f32 %v4223_v41, %v4200_v46  ;;  %v4255_v28 = vsel %vm654_vm6, %v5558_v31, %v2301_v52  ;;  %v4269_v52 = vmul.f32 %v4223_v41, %v4250_v40  ;;  %v4271_v31 = vld [vmem:[#allocation2 + $0x28] sm:$0x3f] }
 0x3fe   : > { %5682 = vst [vmem:[#allocation94_spill] sm:$0xff] %v4219_v16  ;;  %v4242_v16 = vmul.f32 %v4223_v41, %v4212_v37  ;;  %v2350_v38 = vmul.f32 %v4271_v31, %v4170_v18  ;;  %v2315_v45 = vmul.f32 %v4271_v31, %v4148_v20  ;;  %v2413_v21 = vmul.f32 %v4271_v31, %v4184_v32 }
 0x3ff   : > { %5684 = vst [vmem:[#allocation96_spill] sm:$0xff] %v4255_v28  ;;  %v2371_v58 = vmul.f32 %v4271_v31, %v4167_v56  ;;  %v5692_v56 = vrot.slane %v4189_v8, 1 }
 0x400   : > { %5686 = vst [vmem:[#allocation97_spill] sm:$0xff] %v4260_v19  ;;  %v2357_v28 = vrot.slane %v2350_v38, 1  ;;  %v2322_v19 = vrot.slane %v2315_v45, 6  ;;  %v2420_v32 = vrot.slane %v2413_v21, 4  ;;  %v5693_v45 = vrot.slane %v4153_v17, 6 }
 0x401   : > { %890 = vrot.lane.b32.xlu0 %v887_v50, %s5673_s30  ;;  %869 = vrot.lane.b32.xlu2 %v866_v36, %s5673_s30  ;;  %v4280_v50 = vstv %s4202_s3  ;;  %v5687_v36 = vrot.slane %v4145_v6, 3  ;;  %v2378_v18 = vrot.slane %v2371_v58, 2  ;;  %v5695_v58 = vrot.slane %v4197_v39, 4  ;;  %s2800_s3 = sld [smem:[#allocation8 + $0x20]] }
 0x402   : > { %815 = vrot.lane.b32.xlu1 %v4095_v9, %s3112_s25  ;;  %v4297_v9 = vmul.f32 %v4223_v41, %v4280_v50  ;;  %v4315_v38 = vsel %vm582_vm1, %v5692_v56, %v2357_v28  ;;  %v1551_v56 = vmul.f32 %v4271_v31, %v4209_v29 }
 0x403   : > { %v4285_v12 = vsel %vm618_vm2, %v5687_v36, %v2259_v44  ;;  %v4291_v34 = vpop.permute.xlu0 %1387  ;;  %v4293_v7 = vpop.permute.xlu2 %1841  ;;  %v2434_v44 = vmul.f32 %v4271_v31, %v4181_v0  ;;  %v4320_v0 = vsel %vm297_vm3, %v5693_v45, %v2322_v19  ;;  %v4325_v21 = vsel %vm636_vm5, %v5695_v58, %v2420_v32 }
 0x404   : > { %5688 = vst [vmem:[#allocation98_spill] sm:$0xff] %v4285_v12  ;;  %v4301_v36 = vpop.permute.xlu1 %1109  ;;  %v4304_v12 = vstv %s4233_s2  ;;  %v5699_v19 = vrot.slane %v4193_v35, 5  ;;  %v1568_v32 = vmul.f32 %v4271_v31, %v4212_v37  ;;  %v1558_v58 = vrot.slane %v1551_v56, 2  ;;  %s2799_s2 = sld [smem:[#allocation8 + $0x19]] }
 0x405   : > { %5689 = vst [vmem:[#allocation99_spill] sm:$0xff] %v4291_v34  ;;  %v1534_v34 = vmul.f32 %v4271_v31, %v4200_v46  ;;  %v5697_v46 = vrot.slane %v4178_v48, 2 }
 0x406   : > { %5690 = vst [vmem:[#allocation100_spill] sm:$0xff] %v4293_v7  ;;  %v4310_v7 = vmul.f32 %v4223_v41, %v4304_v12 }
 0x407   : > { %5691 = vst [vmem:[#allocation101_spill] sm:$0xff] %v4301_v36  ;;  %v2441_v36 = vrot.slane %v2434_v44, 5  ;;  %v4330_v41 = vsel %vm600_vm4, %v5697_v46, %v2378_v18  ;;  %v1541_v8 = vrot.slane %v1534_v34, 1  ;;  %v1585_v44 = vmul.f32 %v4271_v31, %v4250_v40 }
 0x408   : > { %5694 = vst [vmem:[#allocation102_spill] sm:$0xff] %v4320_v0  ;;  %v1602_v18 = vmul.f32 %v4271_v31, %v4280_v50  ;;  %v5701_v34 = vrot.slane %v4227_v42, 1  ;;  %v5710_v0 = vrot.slane %v4297_v9, 5 }
 0x409   : > { %5696 = vst [vmem:[#allocation103_spill] sm:$0xff] %v4325_v21  ;;  %v4339_v28 = vsel %vm654_vm6, %v5699_v19, %v2441_v36  ;;  %v1619_v36 = vmul.f32 %v4271_v31, %v4304_v12  ;;  %913 = vrot.lane.b32.xlu0 %v4124_v13, %s5673_s30  ;;  %892 = vrot.lane.b32.xlu2 %v4137_v54, %s5673_s30  ;;  %v5703_v13 = vrot.slane %v4231_v49, 2 }
 0x40a   : > { %5698 = vst [vmem:[#allocation104_spill] sm:$0xff] %v4330_v41  ;;  %v4351_v45 = vsel %vm582_vm1, %v5701_v34, %v1541_v8  ;;  %v1592_v41 = vrot.slane %v1585_v44, 4  ;;  %v1609_v46 = vrot.slane %v1602_v18, 5  ;;  %848 = vrot.lane.b32.xlu1 %v4098_v3, %s5673_s30  ;;  %v4362_v8 = vld [vmem:[#allocation2] sm:$0xff]  ;;  %v5706_v3 = vrot.slane %v4242_v16, 3 }
 0x40b   : > { %5700 = vst [vmem:[#allocation105_spill] sm:$0xff] %v4339_v28  ;;  %v1575_v28 = vrot.slane %v1568_v32, 3  ;;  %v921_v56 = vmul.f32 %v4362_v8, %v4078_v33  ;;  %v4370_v54 = vsel %vm600_vm4, %v5703_v13, %v1558_v58  ;;  %v1626_v19 = vrot.slane %v1619_v36, 6  ;;  %v4372_v32 = vpop.permute.xlu0 %1701  ;;  %v4374_v44 = vpop.permute.xlu2 %1904 }
 0x40c   : > { %5702 = vst [vmem:[#allocation106_spill] sm:$0xff] %v4351_v45  ;;  %v5708_v45 = vrot.slane %v4269_v52, 4  ;;  %v4389_v58 = vsel %vm654_vm6, %v5710_v0, %v1609_v46  ;;  %v4391_v36 = vpop.permute.xlu1 %1389  ;;  %v949_v13 = vrot.slane %v4119_v62, 6  ;;  %v4405_v62 = vld [vmem:[#allocation2 + $0x8] sm:$0xff] }
 0x40d   : > { %5704 = vst [vmem:[#allocation107_spill] sm:$0xff] %v4370_v54  ;;  %v4379_v18 = vsel %vm618_vm2, %v5706_v3, %v1575_v28  ;;  %v928_v54 = vrot.slane %v4128_v22, 5  ;;  %v867_v3 = vrot.slane %v4115_v30, 2  ;;  %v5715_v30 = vrot.slane %v4039_v59, 2 }
 0x40e   : > { %5705 = vst [vmem:[#allocation108_spill] sm:$0xff] %v4374_v44  ;;  %v4384_v34 = vsel %vm636_vm5, %v5708_v45, %v1592_v41  ;;  %v5713_v44 = vrot.slane %v4310_v7, 6  ;;  %v948_v41 = vrot.slane %v4002_v27, 6  ;;  %v927_v45 = vrot.slane %v921_v56, 5 }
 0x40f   : > { %5707 = vst [vmem:[#allocation109_spill] sm:$0xff] %v4379_v18  ;;  %v868_v27 = vsel %vm600_vm4, %v5715_v30, %v867_v3  ;;  %v1018_v30 = vstv %s2792_s6  ;;  %s2802_s6 = sld [smem:[#allocation8 + $0x2e]] }
 0x410   : > { %5709 = vst [vmem:[#allocation110_spill] sm:$0xff] %v4384_v34  ;;  %v4398_v28 = vsel %vm297_vm3, %v5713_v44, %v1626_v19  ;;  %v997_v34 = vstv %s4334_s13  ;;  %v950_v0 = vsel %vm297_vm3, %v948_v41, %v949_v13  ;;  %v929_v46 = vsel %vm654_vm6, %v927_v45, %v928_v54  ;;  %s2801_s13 = sld [smem:[#allocation8 + $0x27]] }
 0x411   : > { %5711 = vst [vmem:[#allocation111_spill] sm:$0xff] %v4389_v58  ;;  %v4408_v22 = vmul.f32 %v4405_v62, %v997_v34  ;;  %v944_v19 = vmul.f32 %v3974_v26, %v3509_v11  ;;  %953 = vrot.lane.b32.xlu0 %v950_v0, %s5673_s30  ;;  %932 = vrot.lane.b32.xlu2 %v929_v46, %s5673_s30  ;;  %v976_v46 = vstv %s2790_s20  ;;  %v4430_v58 = vld [vmem:[#allocation2 + $0x10] sm:$0x3f]  ;;  %s2806_s20 = sld [smem:[#allocation8 + $0x1a]] }
 0x412   : > { %5712 = vst [vmem:[#allocation112_spill] sm:$0xff] %v4391_v36  ;;  %871 = vrot.lane.b32.xlu1 %v868_v27, %s5673_s30  ;;  %v998_v56 = vmul.f32 %v4362_v8, %v997_v34  ;;  %v900_v45 = vmul.f32 %v4362_v8, %v3968_v24  ;;  %v1021_v18 = vmul.f32 %v4430_v58, %v1018_v30  ;;  %v5718_v36 = vrot.slane %v4060_v63, 4 }
 0x413   : > { %5714 = vst [vmem:[#allocation113_spill] sm:$0xff] %v4398_v28  ;;  %v4419_v44 = vpop.permute.xlu0 %1764  ;;  %v4421_v41 = vpop.permute.xlu2 %1960  ;;  %v1005_v26 = vrot.slane %v4408_v22, 2  ;;  %v951_v59 = vrot.slane %v944_v19, 6  ;;  %v978_v24 = vmul.f32 %v4405_v62, %v976_v46  ;;  %v923_v19 = vmul.f32 %v4430_v58, %v4078_v33 }
 0x414   : > { %5716 = vst [vmem:[#allocation114_spill] sm:$0xff] %v4419_v44  ;;  %v4425_v11 = vpop.permute.xlu1 %1680  ;;  %v1004_v3 = vrot.slane %v998_v56, 2  ;;  %v906_v0 = vrot.slane %v900_v45, 4  ;;  %v977_v56 = vmul.f32 %v4362_v8, %v976_v46 }
 0x415   : > { %5717 = vst [vmem:[#allocation115_spill] sm:$0xff] %v4421_v41  ;;  %v952_v28 = vsel %vm297_vm3, %v949_v13, %v951_v59  ;;  %v1020_v13 = vmul.f32 %v4405_v62, %v1018_v30  ;;  %v1060_v41 = vstv %s2794_s22  ;;  %s2805_s22 = sld [smem:[#allocation8 + $0x13]] }
 0x416   : > { %v1006_v27 = vsel %vm600_vm4, %v1004_v3, %v1005_v26  ;;  %v908_v22 = vsel %vm636_vm5, %v906_v0, %v5718_v36  ;;  %v1028_v36 = vrot.slane %v1021_v18, 3  ;;  %v984_v3 = vrot.slane %v978_v24, 1 }
 0x417   : > { %v930_v0 = vrot.slane %v923_v19, 5  ;;  %v1062_v44 = vmul.f32 %v4405_v62, %v1060_v41  ;;  %v979_v18 = vmul.f32 %v4430_v58, %v976_v46  ;;  %v1061_v24 = vmul.f32 %v4362_v8, %v1060_v41 }
 0x419   : > { %1009 = vrot.lane.b32.xlu0 %v1006_v27, %s5719_s10  ;;  %955 = vrot.lane.b32.xlu2 %v952_v28, %s5673_s30  ;;  %v1026_v27 = vrot.slane %v1020_v13, 3  ;;  %v983_v28 = vrot.slane %v977_v56, 1 }
 0x41a   : > { %911 = vrot.lane.b32.xlu1 %v908_v22, %s5673_s30 }
 0x41b   : > { %v4444_v45 = vpop.permute.xlu0 %1820  ;;  %v4446_v59 = vpop.permute.xlu2 %2023  ;;  %v1029_v33 = vsel %vm618_vm2, %v1026_v27, %v1028_v36  ;;  %v985_v22 = vsel %vm582_vm1, %v983_v28, %v984_v3  ;;  %v1068_v36 = vrot.slane %v1062_v44, 5  ;;  %v986_v28 = vrot.slane %v979_v18, 1 }
 0x41c   : > { %5720 = vst [vmem:[#allocation116_spill] sm:$0xff] %v4444_v45  ;;  %v4448_v63 = vpop.permute.xlu1 %1743  ;;  %v1000_v45 = vmul.f32 %v4430_v58, %v997_v34 }
 0x41d   : > { %5721 = vst [vmem:[#allocation117_spill] sm:$0xff] %v4446_v59  ;;  %v931_v59 = vsel %vm654_vm6, %v928_v54, %v930_v0  ;;  %v1067_v54 = vrot.slane %v1061_v24, 5  ;;  %v1081_v0 = vstv %s2795_s12  ;;  %v1019_v24 = vmul.f32 %v4362_v8, %v1018_v30  ;;  %s2807_s12 = sld [smem:[#allocation8 + $0x21]] }
 0x41e   : > { %5722 = vst [vmem:[#allocation118_spill] sm:$0xff] %v4448_v63  ;;  %v1007_v34 = vrot.slane %v1000_v45, 2  ;;  %v4475_v44 = vmul.f32 %v4405_v62, %v1081_v0 }
 0x420   : > { %v1008_v46 = vsel %vm600_vm4, %v1005_v26, %v1007_v34 }
 0x421   : > { %1032 = vrot.lane.b32.xlu0 %v1029_v33, %s5719_s10  ;;  %988 = vrot.lane.b32.xlu2 %v985_v22, %s5719_s10  ;;  %v1039_v33 = vstv %s2793_s0  ;;  %v1069_v22 = vsel %vm654_vm6, %v1067_v54, %v1068_v36  ;;  %v1089_v54 = vrot.slane %v4475_v44, 6  ;;  %s2808_s0 = sld [smem:[#allocation8 + $0x28]] }
 0x422   : > { %934 = vrot.lane.b32.xlu1 %v931_v59, %s5673_s30  ;;  %v1084_v59 = vmul.f32 %v4430_v58, %v1081_v0  ;;  %v1041_v21 = vmul.f32 %v4405_v62, %v1039_v33  ;;  %v1040_v45 = vmul.f32 %v4362_v8, %v1039_v33 }
 0x423   : > { %v4460_v19 = vpop.permute.xlu0 %1883  ;;  %v4462_v13 = vpop.permute.xlu2 %2121 }
 0x424   : > { %5723 = vst [vmem:[#allocation119_spill] sm:$0xff] %v4460_v19  ;;  %v4464_v56 = vpop.permute.xlu1 %1799  ;;  %v987_v19 = vsel %vm582_vm1, %v984_v3, %v986_v28  ;;  %v1091_v3 = vrot.slane %v1084_v59, 6  ;;  %v1047_v28 = vrot.slane %v1041_v21, 4  ;;  %v1042_v21 = vmul.f32 %v4430_v58, %v1039_v33 }
 0x425   : > { %5724 = vst [vmem:[#allocation120_spill] sm:$0xff] %v4462_v13 }
 0x426   : > { %5725 = vst [vmem:[#allocation121_spill] sm:$0xff] %v4464_v56  ;;  %v1092_v13 = vsel %vm297_vm3, %v1089_v54, %v1091_v3 }
 0x429   : > { %1072 = vrot.lane.b32.xlu0 %v1069_v22, %s5719_s10  ;;  %1011 = vrot.lane.b32.xlu2 %v1008_v46, %s5719_s10  ;;  %v1046_v22 = vrot.slane %v1040_v45, 4  ;;  %v1025_v46 = vrot.slane %v1019_v24, 3 }
 0x42a   : > { %990 = vrot.lane.b32.xlu1 %v987_v19, %s5719_s10  ;;  %v1116_v19 = vstv %s2797_s1  ;;  %s2816_s1 = sld [smem:[#allocation8 + $0x30]] }
 0x42b   : > { %v4478_v18 = vpop.permute.xlu0 %1981  ;;  %v4480_v26 = vpop.permute.xlu2 %2184  ;;  %v1048_v56 = vsel %vm636_vm5, %v1046_v22, %v1047_v28  ;;  %v1027_v30 = vsel %vm618_vm2, %v1025_v46, %v1026_v27  ;;  %v1117_v59 = vmul.f32 %v4362_v8, %v1116_v19  ;;  %v1049_v22 = vrot.slane %v1042_v21, 4 }
 0x42c   : > { %5726 = vst [vmem:[#allocation122_spill] sm:$0xff] %v4478_v18  ;;  %v4483_v34 = vpop.permute.xlu1 %1862  ;;  %v1118_v18 = vmul.f32 %v4405_v62, %v1116_v19 }
 0x42d   : > { %5727 = vst [vmem:[#allocation123_spill] sm:$0xff] %v4480_v26  ;;  %v1063_v26 = vmul.f32 %v4430_v58, %v1060_v41  ;;  %v1123_v27 = vrot.slane %v1117_v59, 1 }
 0x42e   : > { %5728 = vst [vmem:[#allocation124_spill] sm:$0xff] %v4483_v34  ;;  %v1124_v3 = vrot.slane %v1118_v18, 1  ;;  %v694_v18 = vadd.f32 %v4107_v57, %v3637_v47  ;;  %v594_v47 = vmul.f32 %v4362_v8, %v3483_v55 }
 0x42f   : > { %v1070_v41 = vrot.slane %v1063_v26, 5 }
 0x431   : > { %1095 = vrot.lane.b32.xlu0 %v1092_v13, %s5719_s10  ;;  %1051 = vrot.lane.b32.xlu2 %v1048_v56, %s5719_s10  ;;  %v1137_v13 = vstv %s2798_s5  ;;  %v1125_v56 = vsel %vm582_vm1, %v1123_v27, %v1124_v3  ;;  %v1071_v33 = vsel %vm654_vm6, %v1068_v36, %v1070_v41  ;;  %s2811_s5 = sld [smem:[#allocation8 + $0xd]] }
 0x432   : > { %1030 = vrot.lane.b32.xlu1 %v1027_v30, %s5719_s10  ;;  %v1140_v46 = vmul.f32 %v4430_v58, %v1137_v13  ;;  %v1119_v30 = vmul.f32 %v4430_v58, %v1116_v19  ;;  %v1139_v36 = vmul.f32 %v4405_v62, %v1137_v13  ;;  %v1082_v19 = vmul.f32 %v4362_v8, %v1081_v0 }
 0x433   : > { %v4496_v44 = vpop.permute.xlu0 %2044  ;;  %v4498_v45 = vpop.permute.xlu2 %1661 }
 0x434   : > { %5729 = vst [vmem:[#allocation125_spill] sm:$0xff] %v4496_v44  ;;  %v4500_v24 = vpop.permute.xlu1 %1939  ;;  %v1050_v44 = vsel %vm636_vm5, %v1047_v28, %v1049_v22  ;;  %v1147_v28 = vrot.slane %v1140_v46, 2  ;;  %v1126_v41 = vrot.slane %v1119_v30, 1  ;;  %v1145_v57 = vrot.slane %v1139_v36, 2 }
 0x435   : > { %5730 = vst [vmem:[#allocation126_spill] sm:$0xff] %v4498_v45  ;;  %v576_v45 = vmul.f32 %v4362_v8, %v3481_v53  ;;  %v5735_v30 = vstv %s3461_s9  ;;  %s4554_s9 = sld [smem:[#allocation8 + $0xc]] }
 0x436   : > { %5731 = vst [vmem:[#allocation127_spill] sm:$0xff] %v4500_v24  ;;  %v1148_v0 = vsel %vm600_vm4, %v1145_v57, %v1147_v28  ;;  %v570_v55 = vmul.f32 %v4362_v8, %v5735_v30 }
 0x437   : > { %v583_v22 = vrot.slane %v576_v45, 1 }
 0x439   : > { %1128 = vrot.lane.b32.xlu0 %v1125_v56, %s5598_s11  ;;  %1074 = vrot.lane.b32.xlu2 %v1071_v33, %s5719_s10  ;;  %v1088_v56 = vrot.slane %v1082_v19, 6  ;;  %v1179_v33 = vstv %s2800_s3  ;;  %v612_v19 = vmul.f32 %v4362_v8, %v3505_v2  ;;  %s2809_s3 = sld [smem:[#allocation8 + $0x2f]] }
 0x43a   : > { %1053 = vrot.lane.b32.xlu1 %v1050_v44, %s5719_s10  ;;  %v5734_v44 = vrot.slane %v3489_v60, 1  ;;  %v1181_v46 = vmul.f32 %v4405_v62, %v1179_v33  ;;  %v1180_v60 = vmul.f32 %v4362_v8, %v1179_v33 }
 0x43b   : > { %v4515_v26 = vpop.permute.xlu0 %2100  ;;  %v711_v21 = vpop.permute.xlu2 %710  ;;  %v1090_v36 = vsel %vm297_vm3, %v1088_v56, %v1089_v54 }
 0x43c   : > { %5732 = vst [vmem:[#allocation128_spill] sm:$0xff] %v4515_v26  ;;  %v4518_v59 = vpop.permute.xlu1 %2002  ;;  %v4520_v53 = vadd.f32 %v711_v21, %v694_v18  ;;  %v585_v27 = vsel %vm582_vm1, %v583_v22, %v5734_v44  ;;  %v1158_v26 = vstv %s2799_s2  ;;  %v1127_v18 = vsel %vm582_vm1, %v1124_v3, %v1126_v41  ;;  %s2814_s2 = sld [smem:[#allocation8 + $0x22]] }
 0x43d   : > { %5733 = vst [vmem:[#allocation129_spill] sm:$0xff] %v4518_v59  ;;  %v1160_v45 = vmul.f32 %v4405_v62, %v1158_v26  ;;  %v1159_v21 = vmul.f32 %v4362_v8, %v1158_v26  ;;  %v590_v3 = vadd.f32 %v585_v27, %v570_v55  ;;  %v1138_v41 = vmul.f32 %v4362_v8, %v1137_v13  ;;  %v5757_v59 = vld [vmem:[#allocation81_spill] sm:$0xff] }
 0x43e   : > { %v601_v22 = vrot.slane %v594_v47, 2  ;;  %v1187_v56 = vrot.slane %v1181_v46, 4  ;;  %v630_v27 = vmul.f32 %v4362_v8, %v3507_v10  ;;  %v1186_v55 = vrot.slane %v1180_v60, 4 }
 0x43f   : > { %v1165_v2 = vrot.slane %v1159_v21, 3  ;;  %v619_v13 = vrot.slane %v612_v19, 3  ;;  %v1144_v47 = vrot.slane %v1138_v41, 2  ;;  %v1161_v10 = vmul.f32 %v4430_v58, %v1158_v26 }
 0x440   : > { %v5739_v60 = vrot.slane %v3518_v14, 3  ;;  %v637_v41 = vrot.slane %v630_v27, 4  ;;  %v5741_v14 = vrot.slane %v3522_v4, 4  ;;  %v1221_v27 = vstv %s2802_s6  ;;  %s2815_s6 = sld [smem:[#allocation8 + $0x29]] }
 0x441   : > { %1151 = vrot.lane.b32.xlu0 %v1148_v0, %s5598_s11  ;;  %1130 = vrot.lane.b32.xlu2 %v1127_v18, %s5598_s11  ;;  %v1166_v0 = vrot.slane %v1160_v45, 3  ;;  %v5738_v18 = vrot.slane %v3493_v61, 2  ;;  %v1182_v45 = vmul.f32 %v4430_v58, %v1179_v33  ;;  %v648_v33 = vmul.f32 %v4362_v8, %v3524_v15 }
 0x442   : > { %1093 = vrot.lane.b32.xlu1 %v1090_v36, %s5719_s10  ;;  %v621_v21 = vsel %vm618_vm2, %v619_v13, %v5739_v60  ;;  %v1168_v26 = vrot.slane %v1161_v10, 3  ;;  %v5742_v10 = vrot.slane %v3532_v1, 5  ;;  %v5758_v24 = vrot.slane %v5757_v59, 2 }
 0x443   : > { %v4542_v28 = vpop.permute.xlu0 %2163  ;;  %v4547_v44 = vpop.permute.xlu2 %750  ;;  %v603_v30 = vsel %vm600_vm4, %v601_v22, %v5738_v18  ;;  %v1167_v46 = vsel %vm618_vm2, %v1165_v2, %v1166_v0  ;;  %v1146_v22 = vsel %vm600_vm4, %v1144_v47, %v1145_v57  ;;  %v666_v2 = vmul.f32 %v4362_v8, %v3535_v5 }
 0x444   : > { %5736 = vst [vmem:[#allocation130_spill] sm:$0xff] %v4542_v28  ;;  %v4545_v54 = vpop.permute.xlu1 %2079  ;;  %v608_v36 = vadd.f32 %v603_v30, %v590_v3  ;;  %v1200_v28 = vstv %s2801_s13  ;;  %v1189_v30 = vrot.slane %v1182_v45, 4  ;;  %v655_v15 = vrot.slane %v648_v33, 5  ;;  %s5747_s13 = smov 122  }
 0x445   : > { %5737 = vst [vmem:[#allocation131_spill] sm:$0xff] %v4545_v54  ;;  %v1188_v54 = vsel %vm636_vm5, %v1186_v55, %v1187_v56  ;;  %v1203_v61 = vmul.f32 %v4430_v58, %v1200_v28  ;;  %v1202_v3 = vmul.f32 %v4405_v62, %v1200_v28  ;;  %v639_v55 = vsel %vm636_vm5, %v637_v41, %v5741_v14 }
 0x446   : > { %v626_v19 = vadd.f32 %v621_v21, %v608_v36  ;;  %v1190_v45 = vsel %vm636_vm5, %v1187_v56, %v1189_v30  ;;  %v1169_v5 = vsel %vm618_vm2, %v1166_v0, %v1168_v26  ;;  %v657_v60 = vsel %vm654_vm6, %v655_v15, %v5742_v10 }
 0x447   : > { %v1210_v18 = vrot.slane %v1203_v61, 5  ;;  %v1208_v36 = vrot.slane %v1202_v3, 5  ;;  %v1222_v21 = vmul.f32 %v4362_v8, %v1221_v27  ;;  %v1201_v0 = vmul.f32 %v4362_v8, %v1200_v28 }
 0x448   : > { %v644_v47 = vadd.f32 %v639_v55, %v626_v19  ;;  %v672_v33 = vrot.slane %v666_v2, 6  ;;  %v5744_v26 = vrot.slane %v3545_v23, 6  ;;  %v4770_v63 = vstv %s2815_s6 }
 0x449   : > { %1191 = vrot.lane.b32.xlu0 %v1188_v54, %s5598_s11  ;;  %1170 = vrot.lane.b32.xlu2 %v1167_v46, %s5598_s11  ;;  %v4581_v46 = vstv %s4554_s9  ;;  %v1211_v61 = vsel %vm654_vm6, %v1208_v36, %v1210_v18  ;;  %v1228_v15 = vrot.slane %v1222_v21, 6  ;;  %s2812_s9 = sld [smem:[#allocation8 + $0x14]] }
 0x44a   : > { %1149 = vrot.lane.b32.xlu1 %v1146_v22, %s5598_s11  ;;  %v1259_v4 = vmul.f32 %v4430_v58, %v4581_v46  ;;  %v1223_v22 = vmul.f32 %v4405_v62, %v1221_v27  ;;  %v4597_v56 = vmul.f32 %v4405_v62, %v4581_v46  ;;  %v662_v3 = vadd.f32 %v657_v60, %v644_v47 }
 0x44b   : > { %v709_v57 = vpop.permute.xlu0 %708  ;;  %v4578_v13 = vpop.permute.xlu2 %773  ;;  %v674_v14 = vsel %vm297_vm3, %v672_v33, %v5744_v26  ;;  %v1298_v47 = vstv %s2806_s20  ;;  %v1224_v60 = vmul.f32 %v4430_v58, %v1221_v27  ;;  %s3134_s20 = smov 96  }
 0x44c   : > { %v4571_v54 = vpop.permute.xlu1 %2142  ;;  %v1266_v1 = vrot.slane %v1259_v4, 1  ;;  %v1229_v30 = vrot.slane %v1223_v22, 6  ;;  %v1264_v55 = vrot.slane %v4597_v56, 1  ;;  %v1300_v4 = vmul.f32 %v4405_v62, %v1298_v47 }
 0x44d   : > { %5740 = vst [vmem:[#allocation132_spill] sm:$0xff] %v4571_v54  ;;  %v1299_v56 = vmul.f32 %v4362_v8, %v1298_v47  ;;  %v5756_v54 = vrot.slane %v4145_v6, 3  ;;  %v4781_v6 = vmul.f32 %v4405_v62, %v4770_v63 }
 0x44e   : > { %v1267_v2 = vsel %vm582_vm1, %v1264_v55, %v1266_v1  ;;  %v1306_v33 = vrot.slane %v1300_v4, 3 }
 0x44f   : > { %v1305_v26 = vrot.slane %v1299_v56, 3 }
 0x451   : > { %1214 = vrot.lane.b32.xlu0 %v1211_v61, %s5598_s11  ;;  %1193 = vrot.lane.b32.xlu2 %v1190_v45, %s5598_s11  ;;  %v679_v61 = vadd.f32 %v674_v14, %v662_v3  ;;  %v1207_v45 = vrot.slane %v1201_v0, 5  ;;  %v1307_v27 = vsel %vm618_vm2, %v1305_v26, %v1306_v33 }
 0x452   : > { %1172 = vrot.lane.b32.xlu1 %v1169_v5, %s5598_s11  ;;  %v1277_v5 = vstv %s2805_s22  ;;  %s3135_s22 = smov 112  }
 0x453   : > { %v732_v19 = vpop.permute.xlu0 %731  ;;  %v4608_v28 = vpop.permute.xlu2 %813  ;;  %v4614_v23 = vmul.f32 %v4405_v62, %v1277_v5  ;;  %v693_v22 = vadd.f32 %v3901_v43, %v679_v61  ;;  %v1209_v10 = vsel %vm654_vm6, %v1207_v45, %v1208_v36  ;;  %v1278_v21 = vmul.f32 %v4362_v8, %v1277_v5 }
 0x454   : > { %v4601_v41 = vpop.permute.xlu1 %2219  ;;  %v736_v18 = vadd.f32 %v732_v19, %v4520_v53  ;;  %v1230_v53 = vsel %vm297_vm3, %v1228_v15, %v1229_v30  ;;  %v1231_v36 = vrot.slane %v1224_v60, 6  ;;  %v1319_v61 = vstv %s2807_s12  ;;  %s2874_s12 = sshll.u32 %s3183_s19, 5  ;;  %s2652_s19 = scalar_lea.sflag [#allocation6], %s3259_s14 }
 0x455   : > { %5743 = vst [vmem:[#allocation133_spill] sm:$0xff] %v4601_v41  ;;  %v714_v3 = vadd.f32 %v709_v57, %v693_v22  ;;  %v1285_v43 = vrot.slane %v4614_v23, 2  ;;  %v1284_v14 = vrot.slane %v1278_v21, 2  ;;  %v1301_v57 = vmul.f32 %v4430_v58, %v1298_v47  ;;  %v5755_v41 = vld [vmem:[#allocation27_spill] sm:$0xff] }
 0x456   : > { %v1232_v4 = vsel %vm297_vm3, %v1229_v30, %v1231_v36 }
 0x457   : > { %v1286_v45 = vsel %vm600_vm4, %v1284_v14, %v1285_v43  ;;  %v1308_v56 = vrot.slane %v1301_v57, 3  ;;  %v5745_v14 = vld [vmem:[#allocation82_spill] sm:$0xff] }
 0x459   : > { %1270 = vrot.lane.b32.xlu0 %v1267_v2, %s5597_s7  ;;  %1233 = vrot.lane.b32.xlu2 %v1230_v53, %s5598_s11  ;;  %v1322_v2 = vmul.f32 %v4430_v58, %v1319_v61  ;;  %v1309_v36 = vsel %vm618_vm2, %v1306_v33, %v1308_v56 }
 0x45a   : > { %1212 = vrot.lane.b32.xlu1 %v1209_v10, %s5598_s11  ;;  %v1257_v10 = vmul.f32 %v4362_v8, %v4581_v46 }
 0x45b   : > { %v772_v19 = vpop.permute.xlu0 %771  ;;  %v4633_v23 = vpop.permute.xlu2 %869  ;;  %v1329_v47 = vrot.slane %v1322_v2, 4 }
 0x45c   : > { %v730_v0 = vpop.permute.xlu1 %729 }
 0x45d   : > { %v735_v1 = vadd.f32 %v730_v0, %v714_v3  ;;  %v4643_v0 = vstv %s2808_s0 }
 0x45e   : > { %v4649_v46 = vmul.f32 %v4405_v62, %v4643_v0  ;;  %v1341_v33 = vmul.f32 %v4362_v8, %v4643_v0 }
 0x45f   : > { %v756_v15 = vadd.f32 %v4547_v44, %v735_v1  ;;  %v4637_v44 = vmul.f32 %v4405_v62, %v1319_v61 }
 0x461   : > { %v777_v53 = vadd.f32 %v772_v19, %v756_v15  ;;  %1310 = vrot.lane.b32.xlu0 %v1307_v27, %s5597_s7  ;;  %1289 = vrot.lane.b32.xlu2 %v1286_v45, %s5597_s7  ;;  %v1327_v30 = vrot.slane %v4637_v44, 4  ;;  %v1263_v19 = vrot.slane %v1257_v10, 1  ;;  %v1439_v15 = vmul.f32 %v4362_v8, %v5745_v14 }
 0x462   : > { %1235 = vrot.lane.b32.xlu1 %v1232_v4, %s5598_s11  ;;  %v4664_v10 = vstv %s2816_s1 }
 0x463   : > { %v795_v22 = vpop.permute.xlu0 %794  ;;  %v1330_v1 = vsel %vm636_vm5, %v1327_v30, %v1329_v47  ;;  %v4660_v45 = vpop.permute.xlu2 %892  ;;  %v1445_v44 = vrot.slane %v1439_v15, 3  ;;  %v5746_v47 = vrot.slane %v4141_v25, 3  ;;  %v1502_v25 = vmul.f32 %v4362_v8, %v4664_v10 }
 0x464   : > { %v753_v60 = vpop.permute.xlu1 %752 }
 0x465   : > { %v757_v21 = vadd.f32 %v753_v60, %v736_v18  ;;  %v1265_v18 = vsel %vm582_vm1, %v1263_v19, %v1264_v55  ;;  %v5568_v55 = vrot.slane %v4649_v46, 5  ;;  %v4666_v60 = vstv %s2811_s5  ;;  %s2663_s5 = scalar_lea.hbm %s5448_s4, %s2874_s12 }
 0x466   : > { %v1447_v56 = vsel %vm618_vm2, %v1445_v44, %v5746_v47  ;;  %v1397_v19 = vmul.f32 %v4362_v8, %v4666_v60  ;;  %v4700_v47 = vstv %s2814_s2 }
 0x467   : > { %v778_v3 = vadd.f32 %v4578_v13, %v757_v21  ;;  %v1280_v13 = vmul.f32 %v4430_v58, %v1277_v5 }
 0x469   : > { %v799_v26 = vadd.f32 %v795_v22, %v778_v3  ;;  %1333 = vrot.lane.b32.xlu0 %v1330_v1, %s5597_s7  ;;  %1312 = vrot.lane.b32.xlu2 %v1309_v36, %s5597_s7  ;;  %v1287_v4 = vrot.slane %v1280_v13, 2  ;;  %v1347_v22 = vrot.slane %v1341_v33, 5  ;;  %v1320_v36 = vmul.f32 %v4362_v8, %v1319_v61 }
 0x46a   : > { %1268 = vrot.lane.b32.xlu1 %v1265_v18, %s5597_s7  ;;  %v1508_v33 = vrot.slane %v1502_v25, 6 }
 0x46b   : > { %v851_v27 = vpop.permute.xlu0 %850  ;;  %v1349_v21 = vsel %vm654_vm6, %v1347_v22, %v5568_v55  ;;  %v1288_v3 = vsel %vm600_vm4, %v1285_v43, %v1287_v4  ;;  %v4695_v15 = vpop.permute.xlu2 %932  ;;  %v1326_v44 = vrot.slane %v1320_v36, 4  ;;  %v4698_v22 = vstv %s2809_s3  ;;  %s5944_s3 = sshll.u32 %s3259_s14, 5 }
 0x46c   : > { %v793_v2 = vpop.permute.xlu1 %792  ;;  %s231_s2 = scalar_lea.vmem [#allocation9], %s5944_s3 }
 0x46d   : > { %v798_v57 = vadd.f32 %v793_v2, %v777_v53  ;;  %v4676_v53 = vmul.f32 %v4405_v62, %v4664_v10  ;;  %v1403_v2 = vrot.slane %v1397_v19, 1  ;;  %v1328_v25 = vsel %vm636_vm5, %v1326_v44, %v1327_v30 }
 0x46e   : > { %v4719_v19 = vmul.f32 %v4405_v62, %v4698_v22  ;;  %v1362_v30 = vmul.f32 %v4362_v8, %v4698_v22 }
 0x46f   : > { %v819_v5 = vadd.f32 %v4608_v28, %v798_v57  ;;  %v4680_v28 = vmul.f32 %v4405_v62, %v4666_v60  ;;  %v5566_v13 = vrot.slane %v4676_v53, 6  ;;  %v5748_v57 = vld [vmem:[#allocation69_spill] sm:$0xff] }
 0x471   : > { %1450 = vrot.lane.b32.xlu0 %v1447_v56, %s5747_s13  ;;  %1352 = vrot.lane.b32.xlu2 %v1349_v21, %s5597_s7  ;;  %v5567_v43 = vrot.slane %v4680_v28, 1  ;;  %v1510_v61 = vsel %vm297_vm3, %v1508_v33, %v5566_v13 }
 0x472   : > { %1291 = vrot.lane.b32.xlu1 %v1288_v3, %s5597_s7  ;;  %v4712_v3 = vmul.f32 %v4405_v62, %v4700_v47 }
 0x473   : > { %v4690_v1 = vpop.permute.xlu0 %890  ;;  %v1405_v56 = vsel %vm582_vm1, %v1403_v2, %v5567_v43  ;;  %v5751_v43 = vld [vmem:[#allocation24_spill] sm:$0xff] }
 0x474   : > { %v816_v18 = vpop.permute.xlu1 %815  ;;  %v5752_v55 = vrot.slane %v5751_v43, 2 }
 0x475   : > { %v820_v14 = vadd.f32 %v816_v18, %v799_v26  ;;  %v5749_v26 = vld [vmem:[#allocation23_spill] sm:$0xff]  ;;  %v1460_v18 = vmul.f32 %v4362_v8, %v4700_v47 }
 0x476   : > { %v1671_v21 = vmul.f32 %v4271_v31, %v5749_v26  ;;  %v5569_v26 = vrot.slane %v4719_v19, 6 }
 0x477   : > { %v834_v4 = vadd.f32 %v5748_v57, %v820_v14  ;;  %v5750_v14 = vld [vmem:[#allocation74_spill] sm:$0xff]  ;;  %v1466_v13 = vrot.slane %v1460_v18, 4 }
 0x478   : > { %v833_v33 = vadd.f32 %v5750_v14, %v819_v5  ;;  %v1678_v44 = vrot.slane %v1671_v21, 2  ;;  %v4738_v21 = vstv %s2812_s9  ;;  %s2666_s9 = sshll.u32 %s2663_s5, 4  ;;  %s2667_s9 = int_to_ptr.hbm [resolvable:$true] %s2666_s9 }
 0x479   : > { %1513 = vrot.lane.b32.xlu0 %v1510_v61, %s5747_s13  ;;  %1408 = vrot.lane.b32.xlu2 %v1405_v56, %s5747_s13  ;;  %v855_v36 = vadd.f32 %v851_v27, %v834_v4  ;;  %v5570_v61 = vrot.slane %v4712_v3, 4  ;;  %v1368_v4 = vrot.slane %v1362_v30, 6  ;;  %s3050_s6 = sshra.s32 %s2667_s9, 4  ;;  %s3051_s6 = int_to_ptr.hbm [resolvable:$true] %s3050_s6 }
 0x47a   : > { %1331 = vrot.lane.b32.xlu1 %v1328_v25, %s5597_s7  ;;  %v956_v25 = vpop.permute.xlu2 %955  ;;  %v1679_v5 = vsel %vm600_vm4, %v5752_v55, %v1678_v44  ;;  %v4750_v55 = vld [vmem:[#allocation2 + $0x18] sm:$0xff]  ;;  %v1418_v44 = vmul.f32 %v4362_v8, %v4738_v21  ;;  %p3057_p0 = scmp.lt.s32.totalorder %s3051_s6, %s5448_s4 }
 0x47b   : > { %v914_v2 = vpop.permute.xlu0 %913  ;;  %v1468_v14 = vsel %vm636_vm5, %v1466_v13, %v5570_v61  ;;  %v1370_v18 = vsel %vm297_vm3, %v1368_v4, %v5569_v26  ;;  %v5753_v13 = vld [vmem:[#allocation83_spill] sm:$0xff] }
 0x47c   : > { %v849_v57 = vpop.permute.xlu1 %848  ;;  %v2250_v43 = vmul.f32 %v4750_v55, %v5753_v13  ;;  %v1424_v61 = vrot.slane %v1418_v44, 2  ;;  %v1734_v13 = vmul.f32 %v4271_v31, %v5755_v41  ;;  %v1481_v41 = vmul.f32 %v4362_v8, %v4770_v63  ;;  %v5764_v8 = vld [vmem:[#allocation17_spill] sm:$0xff] }
 0x47d   : > { %v854_v56 = vadd.f32 %v849_v57, %v833_v33  ;;  %v5754_v33 = vld [vmem:[#allocation78_spill] sm:$0xff]  ;;  %v5571_v44 = vrot.slane %v4781_v6, 5 }
 0x47e   : > { %v2229_v30 = vmul.f32 %v4750_v55, %v5754_v33 }
 0x47f   : > { %v4730_v27 = vadd.f32 %v4633_v23, %v854_v56  ;;  %v4747_v23 = vmul.f32 %v4405_v62, %v4738_v21 }
 0x480   : > { %v2235_v26 = vrot.slane %v2229_v30, 2 }
 0x481   : > { %1682 = vrot.lane.b32.xlu0 %v1679_v5, %s3112_s25  ;;  %1471 = vrot.lane.b32.xlu2 %v1468_v14, %s5747_s13  ;;  %v5572_v5 = vrot.slane %v4747_v23, 2  ;;  %v2256_v14 = vrot.slane %v2250_v43, 3 }
 0x482   : > { %1373 = vrot.lane.b32.xlu1 %v1370_v18, %s5597_s7  ;;  %v2237_v34 = vsel %vm600_vm4, %v2235_v26, %v5758_v24 }
 0x483   : > { %v4756_v57 = vpop.permute.xlu0 %953  ;;  %v2258_v33 = vsel %vm618_vm2, %v2256_v14, %v5756_v54  ;;  %v4783_v54 = vpop.permute.xlu2 %988 }
 0x484   : > { %v872_v56 = vpop.permute.xlu1 %871 }
 0x485   : > { %v876_v4 = vadd.f32 %v872_v56, %v855_v36  ;;  %v5759_v36 = vld [vmem:[#allocation20_spill] sm:$0xff]  ;;  %v5760_v56 = vld [vmem:[#allocation30_spill] sm:$0xff] }
 0x486   : > { %v1713_v43 = vmul.f32 %v4271_v31, %v5759_v36  ;;  %v2313_v36 = vmul.f32 %v4750_v55, %v4148_v20 }
 0x487   : > { %v897_v18 = vadd.f32 %v4660_v45, %v876_v4  ;;  %v1426_v45 = vsel %vm600_vm4, %v1424_v61, %v5572_v5  ;;  %v1741_v61 = vrot.slane %v1734_v13, 5  ;;  %v5761_v4 = vrot.slane %v5760_v56, 5 }
 0x488   : > { %v1720_v30 = vrot.slane %v1713_v43, 4  ;;  %v1692_v13 = vmul.f32 %v4271_v31, %v5764_v8  ;;  %v5765_v43 = vld [vmem:[#allocation84_spill] sm:$0xff]  ;;  %v5768_v8 = vld [vmem:[#allocation33_spill] sm:$0xff] }
 0x489   : > { %2261 = vrot.lane.b32.xlu0 %v2258_v33, %s5597_s7  ;;  %2240 = vrot.lane.b32.xlu2 %v2237_v34, %s5597_s7  ;;  %v918_v59 = vadd.f32 %v914_v2, %v897_v18  ;;  %v1487_v34 = vrot.slane %v1481_v41, 5  ;;  %v1742_v62 = vsel %vm654_vm6, %v5761_v4, %v1741_v61  ;;  %v5762_v2 = vld [vmem:[#allocation22_spill] sm:$0xff]  ;;  %v2319_v4 = vrot.slane %v2313_v36, 6 }
 0x48a   : > { %1429 = vrot.lane.b32.xlu1 %v1426_v45, %s5747_s13  ;;  %v5763_v14 = vrot.slane %v5762_v2, 4  ;;  %v2292_v45 = vmul.f32 %v4750_v55, %v5765_v43  ;;  %v1790_v43 = vmul.f32 %v4271_v31, %v5768_v8  ;;  %v1343_v8 = vmul.f32 %v4430_v58, %v4643_v0 }
 0x48b   : > { %v4786_v24 = vpop.permute.xlu0 %1009  ;;  %v1489_v33 = vsel %vm654_vm6, %v1487_v34, %v5571_v44  ;;  %v1012_v61 = vpop.permute.xlu2 %1011  ;;  %v1699_v34 = vrot.slane %v1692_v13, 3  ;;  %v5769_v44 = vld [vmem:[#allocation18_spill] sm:$0xff]  ;;  %v896_v0 = vadd.f32 %v4690_v1, %v4730_v27  ;;  %v1399_v1 = vmul.f32 %v4430_v58, %v4666_v60  ;;  %v5782_v27 = vld [vmem:[#allocation21_spill] sm:$0xff] }
 0x48c   : > { %v912_v26 = vpop.permute.xlu1 %911  ;;  %v1721_v18 = vsel %vm636_vm5, %v5763_v14, %v1720_v30  ;;  %v5766_v14 = vrot.slane %v4153_v17, 6  ;;  %v5770_v5 = vrot.slane %v5769_v44, 3  ;;  %v5771_v17 = vld [vmem:[#allocation79_spill] sm:$0xff]  ;;  %v5773_v44 = vstv %s3360_s26  ;;  %s4850_s26 = sld [smem:[#allocation8 + $0x37]] }
 0x491   : > { %1745 = vrot.lane.b32.xlu0 %v1742_v62, %s3112_s25  ;;  %1724 = vrot.lane.b32.xlu2 %v1721_v18, %s3112_s25  ;;  %v2298_v62 = vrot.slane %v2292_v45, 5  ;;  %v2321_v18 = vsel %vm297_vm3, %v2319_v4, %v5766_v14 }
 0x492   : > { %1492 = vrot.lane.b32.xlu1 %v1489_v33, %s5747_s13  ;;  %v5767_v33 = vrot.slane %v4164_v51, 5  ;;  %v5772_v51 = vld [vmem:[#allocation72_spill] sm:$0xff] }
 0x493   : > { %v1033_v41 = vpop.permute.xlu0 %1032  ;;  %v2271_v36 = vmul.f32 %v4750_v55, %v5772_v51  ;;  %v4828_v4 = vpop.permute.xlu2 %1051 }
 0x494   : > { %v935_v30 = vpop.permute.xlu1 %934  ;;  %v2300_v20 = vsel %vm654_vm6, %v2298_v62, %v5767_v33 }
 0x495   : > { %v939_v56 = vadd.f32 %v935_v30, %v918_v59  ;;  %v1700_v59 = vsel %vm618_vm2, %v5770_v5, %v1699_v34  ;;  %v1797_v30 = vrot.slane %v1790_v43, 1  ;;  %v5774_v5 = vld [vmem:[#allocation95_spill] sm:$0xff]  ;;  %v2277_v14 = vrot.slane %v2271_v36, 4 }
 0x496   : > { %v1775_v34 = vmul.f32 %v5774_v5, %v5773_v44  ;;  %v917_v44 = vadd.f32 %v912_v26, %v896_v0 }
 0x497   : > { %v960_v2 = vadd.f32 %v956_v25, %v939_v56 }
 0x499   : > { %2324 = vrot.lane.b32.xlu0 %v2321_v18, %s5597_s7  ;;  %2303 = vrot.lane.b32.xlu2 %v2300_v20, %s5597_s7  ;;  %v974_v25 = vadd.f32 %v5771_v17, %v960_v2  ;;  %v5775_v18 = vld [vmem:[#allocation36_spill] sm:$0xff]  ;;  %v1420_v2 = vmul.f32 %v4430_v58, %v4738_v21 }
 0x49a   : > { %1703 = vrot.lane.b32.xlu1 %v1700_v59, %s3112_s25  ;;  %v5776_v33 = vrot.slane %v5775_v18, 1  ;;  %v5777_v59 = vld [vmem:[#allocation73_spill] sm:$0xff]  ;;  %v5783_v18 = vrot.slane %v5782_v27, 6 }
 0x49b   : > { %v4824_v13 = vpop.permute.xlu0 %1072  ;;  %v5778_v43 = vrot.slane %v5777_v59, 4  ;;  %v1427_v21 = vrot.slane %v1420_v2, 2  ;;  %v1075_v5 = vpop.permute.xlu2 %1074 }
 0x49c   : > { %v991_v45 = vpop.permute.xlu1 %990  ;;  %v1798_v20 = vsel %vm582_vm1, %v5776_v33, %v1797_v30  ;;  %v1350_v30 = vrot.slane %v1343_v8, 5  ;;  %v2333_v8 = vstv %s4850_s26  ;;  %s3052_s26 = scalar_lea.hbm %s3051_s6, 32 }
 0x49d   : > { %v995_v56 = vadd.f32 %v991_v45, %v974_v25  ;;  %v2279_v17 = vsel %vm636_vm5, %v2277_v14, %v5778_v43  ;;  %v1483_v14 = vmul.f32 %v4430_v58, %v4770_v63  ;;  %v1406_v63 = vrot.slane %v1399_v1, 1  ;;  %p3053_p4 = scmp.ne.s32.totalorder %s3051_s6, %s3052_s26 }
 0x49e   : > { %v2334_v43 = vmul.f32 %v4750_v55, %v2333_v8 }
 0x49f   : > { %v1016_v62 = vadd.f32 %v1012_v61, %v995_v56  ;;  %v5779_v61 = vld [vmem:[#allocation19_spill] sm:$0xff]  ;;  %p3054_p6 = pnand %p3053_p4, %p3214_p11 }
 0x4a0   : > { %v1755_v25 = vmul.f32 %v4271_v31, %v5779_v61 }
 0x4a1   : > { %1801 = vrot.lane.b32.xlu0 %v1798_v20, %s5673_s30  ;;  %1780 = vrot.lane.b32.xlu2 %v1775_v34, %s5673_s30  ;;  %v1037_v51 = vadd.f32 %v1033_v41, %v1016_v62  ;;  %v5780_v34 = vrot.slane %v4747_v23, 2  ;;  %v5781_v41 = vrot.slane %v4649_v46, 5  ;;  %v938_v46 = vadd.f32 %v4695_v15, %v917_v44  ;;  %v5788_v44 = vld [vmem:[#allocation101_spill] sm:$0xff]  ;;  %p3055_p13 = pneg %p3054_p6 }
 0x4a2   : > { %2282 = vrot.lane.b32.xlu1 %v2279_v17, %s5597_s7  ;;  %v1762_v56 = vrot.slane %v1755_v25, 6  ;;  %v1490_v20 = vrot.slane %v1483_v14, 5  ;;  %v5784_v17 = vrot.slane %v4781_v6, 5  ;;  %v5785_v25 = vrot.slane %v4680_v28, 1  ;;  %v5786_v6 = vld [vmem:[#allocation85_spill] sm:$0xff]  ;;  %v5787_v28 = vld [vmem:[#allocation94_spill] sm:$0xff] }
 0x4a3   : > { %v1096_v36 = vpop.permute.xlu0 %1095  ;;  %v1428_v31 = vsel %vm600_vm4, %v5780_v34, %v1427_v21  ;;  %v1351_v62 = vsel %vm654_vm6, %v5781_v41, %v1350_v30  ;;  %v959_v60 = vadd.f32 %v4756_v57, %v938_v46  ;;  %v1462_v21 = vmul.f32 %v4430_v58, %v4700_v47  ;;  %v4900_v46 = vld [vmem:[#allocation2 + $0x28] sm:$0x3f] }
 0x4a4   : > { %v1031_v45 = vpop.permute.xlu1 %1030  ;;  %v1763_v26 = vsel %vm297_vm3, %v5783_v18, %v1762_v56  ;;  %v1491_v61 = vsel %vm654_vm6, %v5784_v17, %v1490_v20  ;;  %v1407_v15 = vsel %vm582_vm1, %v5785_v25, %v1406_v63  ;;  %v1364_v57 = vmul.f32 %v4430_v58, %v4698_v22  ;;  %v5794_v25 = vld [vmem:[#allocation42_spill] sm:$0xff] }
 0x4a5   : > { %v2369_v0 = vmul.f32 %v4750_v55, %v5786_v6  ;;  %v973_v56 = vadd.f32 %v5787_v28, %v959_v60  ;;  %v5789_v22 = vrot.slane %v4178_v48, 2  ;;  %v5790_v18 = vrot.slane %v4712_v3, 4  ;;  %v5793_v48 = vld [vmem:[#allocation86_spill] sm:$0xff] }
 0x4a6   : > { %v1371_v41 = vrot.slane %v1364_v57, 6  ;;  %v5792_v63 = vrot.slane %v4719_v19, 6  ;;  %v2348_v3 = vmul.f32 %v4750_v55, %v5793_v48  ;;  %v5798_v6 = vld [vmem:[#allocation26_spill] sm:$0xff] }
 0x4a7   : > { %v994_v14 = vadd.f32 %v4783_v54, %v973_v56  ;;  %v5800_v56 = vld [vmem:[#allocation97_spill] sm:$0xff] }
 0x4a8   : > { %v2354_v19 = vrot.slane %v2348_v3, 1  ;;  %v5805_v3 = vld [vmem:[#allocation28_spill] sm:$0xff] }
 0x4a9   : > { %1431 = vrot.lane.b32.xlu0 %v1428_v31, %s5747_s13  ;;  %1354 = vrot.lane.b32.xlu2 %v1351_v62, %s5597_s7  ;;  %v2375_v62 = vrot.slane %v2369_v0, 2  ;;  %v1015_v54 = vadd.f32 %v4786_v24, %v994_v14  ;;  %v1832_v0 = vmul.f32 %v4900_v46, %v5798_v6 }
 0x4aa   : > { %1766 = vrot.lane.b32.xlu1 %v1763_v26, %s3112_s25  ;;  %s2862_s25 = sld [smem:[#allocation8 + $0x4c]] }
 0x4ab   : > { %v4869_v23 = vpop.permute.xlu0 %1128  ;;  %v2377_v27 = vsel %vm600_vm4, %v2375_v62, %v5789_v22  ;;  %v1036_v17 = vadd.f32 %v1031_v45, %v1015_v54  ;;  %v5799_v45 = vld [vmem:[#allocation25_spill] sm:$0xff] }
 0x4ac   : > { %v1054_v33 = vpop.permute.xlu1 %1053  ;;  %v1811_v28 = vmul.f32 %v4900_v46, %v5799_v45 }
 0x4ad   : > { %v1058_v2 = vadd.f32 %v1054_v33, %v1037_v51  ;;  %v1131_v51 = vpop.permute.xlu2 %1130  ;;  %v5791_v33 = vld [vmem:[#allocation39_spill] sm:$0xff]  ;;  %v1057_v24 = vadd.f32 %v4828_v4, %v1036_v17 }
 0x4ae   : > { %v1853_v20 = vmul.f32 %v4900_v46, %v5791_v33  ;;  %v1818_v62 = vrot.slane %v1811_v28, 2  ;;  %v5812_v28 = vld [vmem:[#allocation32_spill] sm:$0xff] }
 0x4af   : > { %v1079_v59 = vadd.f32 %v1075_v5, %v1058_v2  ;;  %v1372_v2 = vsel %vm297_vm3, %v5792_v63, %v1371_v41 }
 0x4b1   : > { %v1100_v30 = vadd.f32 %v1096_v36, %v1079_v59  ;;  %1494 = vrot.lane.b32.xlu0 %v1491_v61, %s5747_s13  ;;  %1410 = vrot.lane.b32.xlu2 %v1407_v15, %s5747_s13  ;;  %v1469_v36 = vrot.slane %v1462_v21, 4  ;;  %v5795_v15 = vrot.slane %v5794_v25, 4 }
 0x4b2   : > { %2338 = vrot.lane.b32.xlu1 %v2334_v43, %s5747_s13  ;;  %v1860_v43 = vrot.slane %v1853_v20, 4  ;;  %v5803_v20 = vld [vmem:[#allocation29_spill] sm:$0xff] }
 0x4b3   : > { %v1114_v5 = vadd.f32 %v5788_v44, %v1100_v30  ;;  %v1152_v47 = vpop.permute.xlu0 %1151  ;;  %v1470_v26 = vsel %vm636_vm5, %v5790_v18, %v1469_v36  ;;  %v5796_v30 = vld [vmem:[#allocation89_spill] sm:$0xff]  ;;  %v5801_v44 = vld [vmem:[#allocation87_spill] sm:$0xff]  ;;  %v1839_v36 = vrot.slane %v1832_v0, 3  ;;  %v5804_v63 = vrot.slane %v5803_v20, 3 }
 0x4b4   : > { %v1094_v34 = vpop.permute.xlu1 %1093  ;;  %v1861_v21 = vsel %vm636_vm5, %v5795_v15, %v1860_v43  ;;  %v5797_v57 = vrot.slane %v5796_v30, 1  ;;  %v5808_v43 = vld [vmem:[#allocation71_spill] sm:$0xff]  ;;  %v5809_v30 = vstv %s3365_s29  ;;  %v4959_v0 = vstv %s2862_s25  ;;  %s2865_s29 = sld [smem:[#allocation8 + $0x61]] }
 0x4b5   : > { %v1135_v31 = vadd.f32 %v1131_v51, %v1114_v5  ;;  %v1171_v60 = vpop.permute.xlu2 %1170  ;;  %v2432_v5 = vmul.f32 %v4750_v55, %v5801_v44 }
 0x4b6   : > { %v2356_v51 = vsel %vm582_vm1, %v2354_v19, %v5797_v57 }
 0x4b7   : > { %v1156_v1 = vadd.f32 %v1152_v47, %v1135_v31  ;;  %v1078_v31 = vadd.f32 %v4824_v13, %v1057_v24  ;;  %v2438_v14 = vrot.slane %v2432_v5, 5  ;;  %v5806_v13 = vrot.slane %v5805_v3, 2  ;;  %v5811_v24 = vld [vmem:[#allocation37_spill] sm:$0xff] }
 0x4b8   : > { %v1972_v45 = vmul.f32 %v4900_v46, %v5811_v24  ;;  %v5813_v5 = vrot.slane %v4676_v53, 6 }
 0x4b9   : > { %2380 = vrot.lane.b32.xlu0 %v2377_v27, %s5747_s13  ;;  %1473 = vrot.lane.b32.xlu2 %v1470_v26, %s5747_s13  ;;  %v1099_v22 = vadd.f32 %v1094_v34, %v1078_v31  ;;  %v5802_v26 = vrot.slane %v4193_v35, 5  ;;  %v1504_v35 = vmul.f32 %v4430_v58, %v4664_v10  ;;  %v5807_v34 = vld [vmem:[#allocation88_spill] sm:$0xff]  ;;  %v5810_v58 = vrot.slane %v4197_v39, 4 }
 0x4ba   : > { %1375 = vrot.lane.b32.xlu1 %v1372_v2, %s5597_s7  ;;  %v1840_v2 = vsel %vm618_vm2, %v5804_v63, %v1839_v36  ;;  %v2411_v54 = vmul.f32 %v4750_v55, %v5807_v34  ;;  %v1979_v31 = vrot.slane %v1972_v45, 3 }
 0x4bb   : > { %v4913_v61 = vpop.permute.xlu0 %1191  ;;  %v2440_v33 = vsel %vm654_vm6, %v2438_v14, %v5802_v26  ;;  %v1113_v17 = vadd.f32 %v5808_v43, %v1099_v22  ;;  %v1511_v25 = vrot.slane %v1504_v35, 6 }
 0x4bc   : > { %v1150_v59 = vpop.permute.xlu1 %1149  ;;  %v2417_v15 = vrot.slane %v2411_v54, 4 }
 0x4bd   : > { %v1194_v4 = vpop.permute.xlu2 %1193 }
 0x4be   : > { %v2419_v10 = vsel %vm636_vm5, %v2417_v15, %v5810_v58 }
 0x4c1   : > { %1864 = vrot.lane.b32.xlu0 %v1861_v21, %s5673_s30  ;;  %2359 = vrot.lane.b32.xlu2 %v2356_v51, %s5747_s13  ;;  %v4950_v21 = vld [vmem:[#allocation2 + $0x20] sm:$0xff]  ;;  %v1134_v51 = vadd.f32 %v4869_v23, %v1113_v17  ;;  %v2390_v23 = vmul.f32 %v4750_v55, %v4959_v0 }
 0x4c2   : > { %1452 = vrot.lane.b32.xlu1 %v5800_v56, %s5747_s13  ;;  %v1915_v57 = vmul.f32 %v4950_v21, %v5809_v30  ;;  %v1895_v56 = vmul.f32 %v4900_v46, %v5812_v28  ;;  %v4972_v39 = vmul.f32 %v4950_v21, %v4959_v0  ;;  %v5824_v28 = vld [vmem:[#allocation48_spill] sm:$0xff] }
 0x4c3   : > { %v1215_v18 = vpop.permute.xlu0 %1214  ;;  %v1155_v44 = vadd.f32 %v1150_v59, %v1134_v51  ;;  %v2396_v22 = vrot.slane %v2390_v23, 3  ;;  %v5827_v23 = vld [vmem:[#allocation51_spill] sm:$0xff] }
 0x4c4   : > { %v1173_v47 = vpop.permute.xlu1 %1172  ;;  %v1902_v59 = vrot.slane %v1895_v56, 6  ;;  %v5825_v56 = vrot.slane %v5824_v28, 1  ;;  %v5837_v28 = vstv %s3369_s8  ;;  %s5077_s8 = sld [smem:[#allocation8 + $0x31]] }
 0x4c5   : > { %v1177_v41 = vadd.f32 %v1173_v47, %v1156_v1  ;;  %v1819_v1 = vsel %vm600_vm4, %v5806_v13, %v1818_v62  ;;  %v1234_v6 = vpop.permute.xlu2 %1233  ;;  %v1512_v47 = vsel %vm297_vm3, %v5813_v5, %v1511_v25  ;;  %v2397_v62 = vrot.slane %v4972_v39, 3  ;;  %v5826_v5 = vld [vmem:[#allocation49_spill] sm:$0xff] }
 0x4c6   : > { %v5871_v39 = vrot.slane %v4310_v7, 6 }
 0x4c7   : > { %v1198_v27 = vadd.f32 %v1194_v4, %v1177_v41  ;;  %v1176_v41 = vadd.f32 %v1171_v60, %v1155_v44  ;;  %v5814_v4 = vld [vmem:[#allocation75_spill] sm:$0xff]  ;;  %v2398_v54 = vsel %vm618_vm2, %v2396_v22, %v2397_v62 }
 0x4c8   : > { %v5820_v60 = vld [vmem:[#allocation43_spill] sm:$0xff] }
 0x4c9   : > { %v1219_v48 = vadd.f32 %v1215_v18, %v1198_v27  ;;  %2443 = vrot.lane.b32.xlu0 %v2440_v33, %s5747_s13  ;;  %1843 = vrot.lane.b32.xlu2 %v1840_v2, %s5673_s30  ;;  %v5815_v27 = vld [vmem:[#allocation31_spill] sm:$0xff]  ;;  %v5816_v33 = vld [vmem:[#allocation40_spill] sm:$0xff]  ;;  %v1197_v34 = vadd.f32 %v4913_v61, %v1176_v41  ;;  %v5822_v61 = vld [vmem:[#allocation46_spill] sm:$0xff] }
 0x4ca   : > { %1822 = vrot.lane.b32.xlu1 %v1819_v1, %s5673_s30  ;;  %v1874_v18 = vmul.f32 %v4900_v46, %v5815_v27  ;;  %v5817_v20 = vrot.slane %v5816_v33, 3  ;;  %v5818_v2 = vld [vmem:[#allocation35_spill] sm:$0xff]  ;;  %v5821_v1 = vld [vmem:[#allocation45_spill] sm:$0xff]  ;;  %v5823_v24 = vrot.slane %v5822_v61, 6 }
 0x4cb   : > { %v1271_v26 = vpop.permute.xlu0 %1270  ;;  %v5819_v3 = vrot.slane %v5818_v2, 6  ;;  %v1930_v35 = vmul.f32 %v4900_v46, %v5821_v1  ;;  %v5830_v41 = vld [vmem:[#allocation91_spill] sm:$0xff] }
 0x4cc   : > { %v1213_v19 = vpop.permute.xlu1 %1212  ;;  %v1980_v63 = vsel %vm618_vm2, %v5817_v20, %v1979_v31  ;;  %v1881_v51 = vrot.slane %v1874_v18, 5  ;;  %v5833_v1 = vld [vmem:[#allocation55_spill] sm:$0xff] }
 0x4cd   : > { %v1903_v13 = vsel %vm297_vm3, %v5819_v3, %v1902_v59  ;;  %v1290_v17 = vpop.permute.xlu2 %1289  ;;  %v1218_v25 = vadd.f32 %v1213_v19, %v1197_v34  ;;  %v1993_v19 = vmul.f32 %v4900_v46, %v5827_v23  ;;  %v5840_v23 = vld [vmem:[#allocation66_spill] sm:$0xff] }
 0x4cf   : > { %v1239_v58 = vadd.f32 %v1234_v6, %v1218_v25  ;;  %v2000_v18 = vrot.slane %v1993_v19, 4  ;;  %v2210_v19 = vmul.f32 %v4900_v46, %v5840_v23  ;;  %v5854_v23 = vld [vmem:[#allocation60_spill] sm:$0xff] }
 0x4d1   : > { %1920 = vrot.lane.b32.xlu0 %v1915_v57, %s5719_s10  ;;  %2422 = vrot.lane.b32.xlu2 %v2419_v10, %s5747_s13  ;;  %v1937_v57 = vrot.slane %v1930_v35, 1  ;;  %v4998_v10 = vstv %s2865_s29  ;;  %v5834_v35 = vrot.slane %v5833_v1, 4  ;;  %v5846_v1 = vld [vmem:[#allocation68_spill] sm:$0xff] }
 0x4d2   : > { %1515 = vrot.lane.b32.xlu1 %v1512_v47, %s5747_s13  ;;  %v2091_v47 = vmul.f32 %v4900_v46, %v5826_v5  ;;  %v5017_v59 = vmul.f32 %v4950_v21, %v4998_v10 }
 0x4d3   : > { %v1938_v44 = vsel %vm582_vm1, %v5825_v56, %v1937_v57  ;;  %v1311_v3 = vpop.permute.xlu0 %1310  ;;  %v2001_v34 = vsel %vm636_vm5, %v5834_v35, %v2000_v18  ;;  %v5847_v35 = vrot.slane %v5846_v1, 1  ;;  %v1549_v1 = vmul.f32 %v4750_v55, %v4209_v29  ;;  %v5863_v29 = vld [vmem:[#allocation93_spill] sm:$0xff] }
 0x4d4   : > { %v1236_v36 = vpop.permute.xlu1 %1235  ;;  %v2098_v27 = vrot.slane %v2091_v47, 2  ;;  %v2460_v20 = vrot.slane %v5017_v59, 6 }
 0x4d5   : > { %v1240_v53 = vadd.f32 %v1236_v36, %v1219_v48  ;;  %v2035_v48 = vmul.f32 %v4900_v46, %v5820_v60  ;;  %v5828_v36 = vld [vmem:[#allocation34_spill] sm:$0xff] }
 0x4d6   : > { %v5829_v31 = vrot.slane %v5828_v36, 5  ;;  %v5841_v36 = vld [vmem:[#allocation50_spill] sm:$0xff] }
 0x4d7   : > { %v1254_v14 = vadd.f32 %v5814_v4, %v1240_v53  ;;  %v2042_v30 = vrot.slane %v2035_v48, 6  ;;  %v1253_v53 = vadd.f32 %v5830_v41, %v1239_v58  ;;  %v2453_v4 = vmul.f32 %v4750_v55, %v4998_v10 }
 0x4d8   : > { %v1882_v6 = vsel %vm654_vm6, %v5829_v31, %v1881_v51  ;;  %v2112_v31 = vmul.f32 %v4900_v46, %v5841_v36 }
 0x4d9   : > { %1983 = vrot.lane.b32.xlu0 %v1980_v63, %s5719_s10  ;;  %1906 = vrot.lane.b32.xlu2 %v1903_v13, %s5673_s30  ;;  %v1275_v43 = vadd.f32 %v1271_v26, %v1254_v14  ;;  %v2043_v45 = vsel %vm297_vm3, %v5823_v24, %v2042_v30  ;;  %v1313_v14 = vpop.permute.xlu2 %1312  ;;  %v2459_v2 = vrot.slane %v2453_v4, 6  ;;  %v5831_v13 = vld [vmem:[#allocation52_spill] sm:$0xff]  ;;  %v5836_v30 = vld [vmem:[#allocation38_spill] sm:$0xff] }
 0x4da   : > { %2401 = vrot.lane.b32.xlu1 %v2398_v54, %s5747_s13  ;;  %v5832_v60 = vrot.slane %v5831_v13, 2  ;;  %v5835_v54 = vld [vmem:[#allocation56_spill] sm:$0xff]  ;;  %v1951_v57 = vmul.f32 %v4900_v46, %v5836_v30  ;;  %v5845_v13 = vld [vmem:[#allocation99_spill] sm:$0xff] }
 0x4db   : > { %v2154_v25 = vmul.f32 %v4900_v46, %v5835_v54  ;;  %v5844_v4 = vld [vmem:[#allocation44_spill] sm:$0xff]  ;;  %v5848_v54 = vld [vmem:[#allocation53_spill] sm:$0xff] }
 0x4dc   : > { %v1269_v15 = vpop.permute.xlu1 %1268  ;;  %v2099_v48 = vsel %vm600_vm4, %v5832_v60, %v2098_v27  ;;  %v1958_v24 = vrot.slane %v1951_v57, 2  ;;  %v5851_v57 = vld [vmem:[#allocation47_spill] sm:$0xff] }
 0x4dd   : > { %v1274_v26 = vadd.f32 %v1269_v15, %v1253_v53  ;;  %v2161_v58 = vrot.slane %v2154_v25, 5  ;;  %v5849_v25 = vrot.slane %v5848_v54, 3  ;;  %v2335_v54 = vmul.f32 %v4950_v21, %v2333_v8 }
 0x4de   : > { %v5864_v8 = vrot.slane %v4227_v42, 1 }
 0x4df   : > { %v1295_v15 = vadd.f32 %v1290_v17, %v1274_v26  ;;  %v2055_v17 = vmul.f32 %v4950_v21, %v5837_v28  ;;  %v2217_v26 = vrot.slane %v2210_v19, 1  ;;  %v5855_v19 = vrot.slane %v5854_v23, 6 }
 0x4e1   : > { %2046 = vrot.lane.b32.xlu0 %v2043_v45, %s5719_s10  ;;  %1941 = vrot.lane.b32.xlu2 %v1938_v44, %s5719_s10  ;;  %v1316_v61 = vadd.f32 %v1311_v3, %v1295_v15  ;;  %v1353_v45 = vpop.permute.xlu2 %1352  ;;  %v5838_v44 = vld [vmem:[#allocation59_spill] sm:$0xff] }
 0x4e2   : > { %1885 = vrot.lane.b32.xlu1 %v1882_v6, %s5673_s30  ;;  %v5839_v5 = vrot.slane %v5838_v44, 5  ;;  %v5842_v6 = vld [vmem:[#allocation41_spill] sm:$0xff]  ;;  %s3132_s30 = smov 64  }
 0x4e3   : > { %v5843_v41 = vrot.slane %v5842_v6, 2 }
 0x4e4   : > { %v1292_v22 = vpop.permute.xlu1 %1291  ;;  %v2162_v47 = vsel %vm654_vm6, %v5839_v5, %v2161_v58 }
 0x4e5   : > { %v1296_v33 = vadd.f32 %v1292_v22, %v1275_v43  ;;  %v2461_v43 = vsel %vm297_vm3, %v2459_v2, %v2460_v20  ;;  %v1959_v53 = vsel %vm600_vm4, %v5843_v41, %v1958_v24  ;;  %v1334_v22 = vpop.permute.xlu0 %1333 }
 0x4e7   : > { %v5024_v63 = vadd.f32 %v1313_v14, %v1296_v33  ;;  %v2014_v14 = vmul.f32 %v4900_v46, %v5844_v4  ;;  %v2119_v33 = vrot.slane %v2112_v31, 3  ;;  %v5856_v31 = vld [vmem:[#allocation61_spill] sm:$0xff]  ;;  %v5859_v4 = vld [vmem:[#allocation64_spill] sm:$0xff] }
 0x4e8   : > { %v5857_v6 = vrot.slane %v5856_v31, 1 }
 0x4e9   : > { %2102 = vrot.lane.b32.xlu0 %v2099_v48, %s5598_s11  ;;  %2004 = vrot.lane.b32.xlu2 %v2001_v34, %s5719_s10  ;;  %v2021_v3 = vrot.slane %v2014_v14, 5  ;;  %v1409_v48 = vpop.permute.xlu2 %1408  ;;  %v2218_v34 = vsel %vm582_vm1, %v5847_v35, %v2217_v26  ;;  %v2120_v15 = vsel %vm618_vm2, %v5849_v25, %v2119_v33  ;;  %v2133_v14 = vmul.f32 %v4900_v46, %v5859_v4  ;;  %v5860_v33 = vld [vmem:[#allocation90_spill] sm:$0xff] }
 0x4ea   : > { %2464 = vrot.lane.b32.xlu1 %v2461_v43, %s5747_s13  ;;  %v5850_v43 = vld [vmem:[#allocation57_spill] sm:$0xff]  ;;  %v1525_v26 = vstv %s5077_s8  ;;  %v5124_v42 = vadd.f32 %v1334_v22, %v5024_v63  ;;  %v2455_v22 = vmul.f32 %v4900_v46, %v4998_v10  ;;  %s3056_s8 = scalar_lea.hbm %s5448_s4, 64 }
 0x4eb   : > { %v2175_v30 = vmul.f32 %v4900_v46, %v5850_v43  ;;  %v1526_v35 = vmul.f32 %v4750_v55, %v1525_v26  ;;  %v2392_v43 = vmul.f32 %v4900_v46, %v4959_v0  ;;  %p3058_p3 = scmp.lt.s32.totalorder %s3056_s8, %s3052_s26 }
 0x4ec   : > { %v1332_v51 = vpop.permute.xlu1 %1331 }
 0x4ed   : > { %v1337_v56 = vadd.f32 %v1332_v51, %v1316_v61  ;;  %v5852_v51 = vrot.slane %v5851_v57, 5  ;;  %v5853_v61 = vld [vmem:[#allocation58_spill] sm:$0xff]  ;;  %v1451_v28 = vpop.permute.xlu0 %1450  ;;  %v5861_v57 = vld [vmem:[#allocation65_spill] sm:$0xff]  ;;  %p3059_p5 = por %p3058_p3, %p3057_p0 }
 0x4ee   : > { %v2070_v24 = vmul.f32 %v4900_v46, %v5853_v61 }
 0x4ef   : > { %v1358_v27 = vadd.f32 %v1353_v45, %v1337_v56  ;;  %v2022_v58 = vsel %vm654_vm6, %v5852_v51, %v2021_v3  ;;  %v2182_v56 = vrot.slane %v2175_v30, 6  ;;  %v5862_v51 = vrot.slane %v5861_v57, 4  ;;  %p3060_p8 = pnand %p3059_p5, %p3055_p13 }
 0x4f0   : > { %v2077_v5 = vrot.slane %v2070_v24, 1  ;;  %v1555_v24 = vrot.slane %v1549_v1, 2  ;;  %v5875_v1 = vld [vmem:[#allocation92_spill] sm:$0xff] }
 0x4f1   : > { %2165 = vrot.lane.b32.xlu0 %v2162_v47, %s5598_s11  ;;  %2060 = vrot.lane.b32.xlu2 %v2055_v17, %s5598_s11  ;;  %v2183_v36 = vsel %vm297_vm3, %v5855_v19, %v2182_v56  ;;  %v1600_v56 = vmul.f32 %v4750_v55, %v4280_v50  ;;  %v1617_v19 = vmul.f32 %v4750_v55, %v4304_v12  ;;  %v5868_v50 = vrot.slane %v4269_v52, 4  ;;  %v5869_v12 = vld [vmem:[#allocation96_spill] sm:$0xff] }
 0x4f2   : > { %1962 = vrot.lane.b32.xlu1 %v1959_v53, %s5719_s10  ;;  %v2078_v41 = vsel %vm582_vm1, %v5857_v6, %v2077_v5  ;;  %v5858_v53 = vld [vmem:[#allocation77_spill] sm:$0xff] }
 0x4f3   : > { %v1606_v63 = vrot.slane %v1600_v56, 5  ;;  %v1623_v4 = vrot.slane %v1617_v19, 6 }
 0x4f4   : > { %v1374_v18 = vpop.permute.xlu1 %1373 }
 0x4f5   : > { %v1379_v2 = vadd.f32 %v1374_v18, %v1358_v27  ;;  %v1472_v27 = vpop.permute.xlu2 %1471 }
 0x4f7   : > { %v1393_v60 = vadd.f32 %v5845_v13, %v1379_v2  ;;  %v1532_v2 = vmul.f32 %v4750_v55, %v5860_v33 }
 0x4f9   : > { %2221 = vrot.lane.b32.xlu0 %v2218_v34, %s5597_s7  ;;  %2123 = vrot.lane.b32.xlu2 %v2120_v15, %s5598_s11  ;;  %v1414_v45 = vadd.f32 %v1409_v48, %v1393_v60  ;;  %v2140_v60 = vrot.slane %v2133_v14, 4  ;;  %v1514_v48 = vpop.permute.xlu0 %1513  ;;  %v1538_v25 = vrot.slane %v1532_v2, 1  ;;  %v1566_v15 = vmul.f32 %v4750_v55, %v4212_v37  ;;  %v5873_v2 = vld [vmem:[#allocation80_spill] sm:$0xff] }
 0x4fa   : > { %2025 = vrot.lane.b32.xlu1 %v2022_v58, %s5719_s10  ;;  %v1583_v37 = vmul.f32 %v4750_v55, %v4250_v40  ;;  %v5870_v55 = vrot.slane %v4297_v9, 5  ;;  %s3133_s10 = smov 80  }
 0x4fb   : > { %v2141_v58 = vsel %vm636_vm5, %v5862_v51, %v2140_v60  ;;  %v1540_v61 = vsel %vm582_vm1, %v1538_v25, %v5864_v8  ;;  %v5878_v25 = vld [vmem:[#allocation102_spill] sm:$0xff] }
 0x4fc   : > { %v1430_v17 = vpop.permute.xlu1 %1429  ;;  %v1589_v23 = vrot.slane %v1583_v37, 4  ;;  %v1608_v52 = vsel %vm654_vm6, %v1606_v63, %v5870_v55 }
 0x4fd   : > { %v1435_v44 = vadd.f32 %v1430_v17, %v1414_v45  ;;  %v5865_v45 = vrot.slane %v4231_v49, 2  ;;  %v1572_v17 = vrot.slane %v1566_v15, 3  ;;  %v5867_v49 = vstv %s3384_s23  ;;  %v5134_v6 = vpop.permute.xlu2 %2240  ;;  %s3129_s23 = smov 16  }
 0x4ff   : > { %v1456_v47 = vadd.f32 %v1451_v28, %v1435_v44  ;;  %v1557_v28 = vsel %vm600_vm4, %v1555_v24, %v5865_v45  ;;  %v2399_v44 = vrot.slane %v2392_v43, 3  ;;  %v5884_v24 = vld [vmem:[#allocation100_spill] sm:$0xff] }
 0x501   : > { %2284 = vrot.lane.b32.xlu0 %v5858_v53, %s5597_s7  ;;  %2186 = vrot.lane.b32.xlu2 %v2183_v36, %s5598_s11  ;;  %v1477_v18 = vadd.f32 %v1472_v27, %v1456_v47  ;;  %v5866_v47 = vrot.slane %v4242_v16, 3  ;;  %v2195_v36 = vmul.f32 %v4950_v21, %v5867_v49  ;;  %v2400_v16 = vsel %vm618_vm2, %v2397_v62, %v2399_v44  ;;  %v5154_v10 = vpop.permute.xlu0 %1682 }
 0x502   : > { %2081 = vrot.lane.b32.xlu1 %v2078_v41, %s5598_s11  ;;  %v1591_v41 = vsel %vm636_vm5, %v1589_v23, %v5868_v50  ;;  %v1625_v62 = vsel %vm297_vm3, %v1623_v4, %v5871_v39  ;;  %v2462_v27 = vrot.slane %v2455_v22, 6  ;;  %v5889_v23 = vld [vmem:[#allocation67_spill] sm:$0xff]  ;;  %v5895_v39 = vld [vmem:[#allocation125_spill] sm:$0xff] }
 0x503   : > { %v1574_v40 = vsel %vm618_vm2, %v1572_v17, %v5866_v47  ;;  %v5886_v17 = vld [vmem:[#allocation119_spill] sm:$0xff] }
 0x504   : > { %v1493_v3 = vpop.permute.xlu1 %1492  ;;  %v2463_v9 = vsel %vm297_vm3, %v2460_v20, %v2462_v27  ;;  %v5876_v20 = vld [vmem:[#allocation118_spill] sm:$0xff]  ;;  %v5891_v50 = vld [vmem:[#allocation115_spill] sm:$0xff] }
 0x505   : > { %v1498_v13 = vadd.f32 %v1493_v3, %v1477_v18  ;;  %v5872_v18 = vld [vmem:[#allocation63_spill] sm:$0xff]  ;;  %v5164_v7 = vpop.permute.xlu2 %1724  ;;  %v5896_v27 = vld [vmem:[#allocation62_spill] sm:$0xff] }
 0x507   : > { %v1519_v34 = vadd.f32 %v1514_v48, %v1498_v13  ;;  %v5874_v13 = vld [vmem:[#allocation98_spill] sm:$0xff] }
 0x509   : > { %v1528_v30 = vadd.f32 %v1526_v35, %v1519_v34  ;;  %2340 = vrot.lane.b32.xlu0 %v2335_v54, %s5747_s13  ;;  %2242 = vrot.lane.b32.xlu2 %v5863_v29, %s5597_s7  ;;  %v2262_v35 = vpop.permute.xlu0 %2261  ;;  %v5877_v54 = vld [vmem:[#allocation103_spill] sm:$0xff] }
 0x50a   : > { %2144 = vrot.lane.b32.xlu1 %v2141_v58, %s5598_s11  ;;  %v5882_v58 = vld [vmem:[#allocation116_spill] sm:$0xff]  ;;  %s3131_s11 = smov 48  }
 0x50b   : > { %v1545_v0 = vadd.f32 %v1540_v61, %v1528_v30  ;;  %v5880_v30 = vld [vmem:[#allocation54_spill] sm:$0xff]  ;;  %v5883_v61 = vld [vmem:[#allocation104_spill] sm:$0xff] }
 0x50c   : > { %v5178_v51 = vpop.permute.xlu1 %1703 }
 0x50d   : > { %v1562_v5 = vadd.f32 %v1557_v28, %v1545_v0  ;;  %v2304_v43 = vpop.permute.xlu2 %2303  ;;  %v5885_v0 = vld [vmem:[#allocation124_spill] sm:$0xff] }
 0x50f   : > { %v1579_v31 = vadd.f32 %v1574_v40, %v1562_v5  ;;  %v5887_v5 = vld [vmem:[#allocation108_spill] sm:$0xff]  ;;  %v5888_v40 = vld [vmem:[#allocation105_spill] sm:$0xff] }
 0x511   : > { %v1596_v53 = vadd.f32 %v1591_v41, %v1579_v31  ;;  %2403 = vrot.lane.b32.xlu0 %v2400_v16, %s5747_s13  ;;  %2305 = vrot.lane.b32.xlu2 %v5869_v12, %s5597_s7  ;;  %v5182_v8 = vpop.permute.xlu0 %1745  ;;  %v5892_v16 = vld [vmem:[#allocation122_spill] sm:$0xff]  ;;  %v5893_v12 = vld [vmem:[#allocation129_spill] sm:$0xff] }
 0x512   : > { %2200 = vrot.lane.b32.xlu1 %v2195_v36, %s5597_s7  ;;  %v5890_v36 = vld [vmem:[#allocation127_spill] sm:$0xff] }
 0x513   : > { %v1613_v14 = vadd.f32 %v1608_v52, %v1596_v53  ;;  %v5894_v52 = vld [vmem:[#allocation117_spill] sm:$0xff] }
 0x514   : > { %v2283_v44 = vpop.permute.xlu1 %2282 }
 0x515   : > { %v1630_v46 = vadd.f32 %v1625_v62, %v1613_v14  ;;  %v5188_v28 = vpop.permute.xlu2 %1780 }
 0x517   : > { %v1644_v33 = vadd.f32 %v5872_v18, %v1630_v46 }
 0x519   : > { %v1665_v3 = vadd.f32 %v5873_v2, %v1644_v33  ;;  %2466 = vrot.lane.b32.xlu0 %v2463_v9, %s5747_s13  ;;  %2361 = vrot.lane.b32.xlu2 %v4315_v38, %s5747_s13  ;;  %v5879_v38 = vld [vmem:[#allocation114_spill] sm:$0xff]  ;;  %v2325_v49 = vpop.permute.xlu0 %2324  ;;  %v5897_v9 = vld [vmem:[#allocation131_spill] sm:$0xff] }
 0x51a   : > { %2263 = vrot.lane.b32.xlu1 %v5874_v13, %s5597_s7 }
 0x51b   : > { %v1686_v60 = vadd.f32 %v4425_v11, %v1665_v3  ;;  %v5881_v11 = vld [vmem:[#allocation121_spill] sm:$0xff]  ;;  %v5898_v3 = vld [vmem:[#allocation128_spill] sm:$0xff] }
 0x51c   : > { %v5198_v53 = vpop.permute.xlu1 %1766 }
 0x51d   : > { %v1707_v48 = vadd.f32 %v4372_v32, %v1686_v60  ;;  %v1355_v63 = vpop.permute.xlu2 %1354  ;;  %v5899_v60 = vld [vmem:[#allocation120_spill] sm:$0xff] }
 0x51f   : > { %v1728_v59 = vadd.f32 %v5875_v1, %v1707_v48 }
 0x521   : > { %v1749_v34 = vadd.f32 %v5876_v20, %v1728_v59  ;;  %2424 = vrot.lane.b32.xlu2 %v5877_v54, %s5747_s13  ;;  %v5202_v14 = vpop.permute.xlu0 %1801  ;;  %v1359_v59 = vadd.f32 %v1355_v63, %v5124_v42  ;;  %v5900_v20 = vld [vmem:[#allocation132_spill] sm:$0xff] }
 0x522   : > { %2326 = vrot.lane.b32.xlu1 %v5878_v25, %s5597_s7  ;;  %v5901_v25 = vld [vmem:[#allocation130_spill] sm:$0xff]  ;;  %s3130_s7 = smov 32  }
 0x523   : > { %v1770_v15 = vadd.f32 %v5879_v38, %v1749_v34 }
 0x524   : > { %v2339_v33 = vpop.permute.xlu1 %2338 }
 0x525   : > { %v1784_v57 = vadd.f32 %v5880_v30, %v1770_v15  ;;  %v1411_v18 = vpop.permute.xlu2 %1410 }
 0x527   : > { %v1805_v32 = vadd.f32 %v5881_v11, %v1784_v57  ;;  %v5902_v57 = vld [vmem:[#allocation123_spill] sm:$0xff] }
 0x529   : > { %v1826_v29 = vadd.f32 %v5882_v58, %v1805_v32  ;;  %v1432_v1 = vpop.permute.xlu0 %1431  ;;  %v5903_v32 = vld [vmem:[#allocation112_spill] sm:$0xff] }
 0x52a   : > { %2382 = vrot.lane.b32.xlu1 %v5883_v61, %s5747_s13 }
 0x52b   : > { %v1847_v37 = vadd.f32 %v5884_v24, %v1826_v29  ;;  %v5904_v29 = vld [vmem:[#allocation70_spill] sm:$0xff]  ;;  %v5905_v24 = vld [vmem:[#allocation133_spill] sm:$0xff] }
 0x52c   : > { %v1376_v54 = vpop.permute.xlu1 %1375 }
 0x52d   : > { %v1868_v45 = vadd.f32 %v5885_v0, %v1847_v37  ;;  %v1380_v15 = vadd.f32 %v1376_v54, %v1359_v59  ;;  %v1474_v30 = vpop.permute.xlu2 %1473  ;;  %v5912_v59 = vld [vmem:[#allocation76_spill] sm:$0xff] }
 0x52f   : > { %v1889_v56 = vadd.f32 %v5886_v17, %v1868_v45  ;;  %v1394_v58 = vadd.f32 %v5903_v32, %v1380_v15 }
 0x531   : > { %v1910_v47 = vadd.f32 %v5887_v5, %v1889_v56  ;;  %v1415_v0 = vadd.f32 %v1411_v18, %v1394_v58  ;;  %v1495_v45 = vpop.permute.xlu0 %1494 }
 0x532   : > { %2445 = vrot.lane.b32.xlu1 %v5888_v40, %s5747_s13  ;;  %s2664_s13 = sshll.u32 %s231_s2, 4  ;;  %s2665_s13 = int_to_ptr.vmem [resolvable:$true] %s2664_s13 }
 0x533   : > { %v1924_v19 = vadd.f32 %v5889_v23, %v1910_v47  ;;  %v1436_v5 = vadd.f32 %v1432_v1, %v1415_v0 }
 0x534   : > { %v1453_v17 = vpop.permute.xlu1 %1452 }
 0x535   : > { %v1945_v31 = vadd.f32 %v5890_v36, %v1924_v19  ;;  %v2360_v47 = vpop.permute.xlu2 %2359  ;;  %v1457_v23 = vadd.f32 %v1453_v17, %v1436_v5 }
 0x537   : > { %v1966_v41 = vadd.f32 %v5891_v50, %v1945_v31  ;;  %v1478_v50 = vadd.f32 %v1474_v30, %v1457_v23 }
 0x539   : > { %v1987_v22 = vadd.f32 %v5892_v16, %v1966_v41  ;;  %v2381_v31 = vpop.permute.xlu0 %2380  ;;  %v1499_v16 = vadd.f32 %v1495_v45, %v1478_v50 }
 0x53b   : > { %v2008_v55 = vadd.f32 %v5893_v12, %v1987_v22 }
 0x53c   : > { %v1823_v19 = vpop.permute.xlu1 %1822 }
 0x53d   : > { %v2029_v4 = vadd.f32 %v5894_v52, %v2008_v55  ;;  %v1844_v63 = vpop.permute.xlu2 %1843  ;;  %v1527_v55 = vmul.f32 %v4950_v21, %v1525_v26  ;;  %v5911_v21 = vld [vmem:[#allocation113_spill] sm:$0xff] }
 0x53f   : > { %v2050_v62 = vadd.f32 %v5895_v39, %v2029_v4  ;;  %v5906_v39 = vld [vmem:[#allocation106_spill] sm:$0xff] }
 0x541   : > { %v2064_v46 = vadd.f32 %v5896_v27, %v2050_v62 }
 0x543   : > { %v2085_v2 = vadd.f32 %v5897_v9, %v2064_v46  ;;  %v5908_v9 = vld [vmem:[#allocation109_spill] sm:$0xff] }
 0x544   : > { %v1516_v22 = vpop.permute.xlu1 %1515 }
 0x545   : > { %v2106_v13 = vadd.f32 %v5898_v3, %v2085_v2  ;;  %v1520_v52 = vadd.f32 %v1516_v22, %v1499_v16  ;;  %v2423_v46 = vpop.permute.xlu2 %2422  ;;  %v5909_v2 = vld [vmem:[#allocation110_spill] sm:$0xff] }
 0x547   : > { %v2127_v48 = vadd.f32 %v5899_v60, %v2106_v13  ;;  %v1529_v4 = vadd.f32 %v1527_v55, %v1520_v52  ;;  %v5910_v13 = vld [vmem:[#allocation111_spill] sm:$0xff] }
 0x549   : > { %v2148_v34 = vadd.f32 %v5900_v20, %v2127_v48  ;;  %v1546_v62 = vadd.f32 %v5906_v39, %v1529_v4 }
 0x54b   : > { %v2169_v38 = vadd.f32 %v5901_v25, %v2148_v34  ;;  %v5913_v25 = vld [vmem:[#allocation126_spill] sm:$0xff] }
 0x54d   : > { %v2190_v11 = vadd.f32 %v5902_v57, %v2169_v38  ;;  %v1907_v54 = vpop.permute.xlu2 %1906 }
 0x54f   : > { %v2204_v61 = vadd.f32 %v5904_v29, %v2190_v11 }
 0x551   : > { %v2225_v37 = vadd.f32 %v5905_v24, %v2204_v61 }
 0x553   : > { %v2246_v42 = vadd.f32 %v5134_v6, %v2225_v37  ;;  %v1865_v6 = vpop.permute.xlu0 %1864 }
 0x555   : > { %v2267_v56 = vadd.f32 %v2262_v35, %v2246_v42  ;;  %v1942_v37 = vpop.permute.xlu2 %1941 }
 0x557   : > { %v2288_v40 = vadd.f32 %v2283_v44, %v2267_v56  ;;  %v5907_v44 = vld [vmem:[#allocation107_spill] sm:$0xff] }
 0x558   : > { %v1563_v27 = vadd.f32 %v5907_v44, %v1546_v62 }
 0x559   : > { %v2309_v36 = vadd.f32 %v2304_v43, %v2288_v40  ;;  %v2402_v43 = vpop.permute.xlu1 %2401 }
 0x55b   : > { %v2330_v41 = vadd.f32 %v2325_v49, %v2309_v36  ;;  %v1580_v49 = vadd.f32 %v5908_v9, %v1563_v27  ;;  %v2444_v48 = vpop.permute.xlu0 %2443 }
 0x55d   : > { %v2344_v12 = vadd.f32 %v2339_v33, %v2330_v41  ;;  %v1597_v3 = vadd.f32 %v5909_v2, %v1580_v49 }
 0x55f   : > { %v2365_v35 = vadd.f32 %v2360_v47, %v2344_v12  ;;  %v1614_v33 = vadd.f32 %v5910_v13, %v1597_v3  ;;  %v2005_v47 = vpop.permute.xlu2 %2004 }
 0x561   : > { %v2386_v18 = vadd.f32 %v2381_v31, %v2365_v35  ;;  %v1631_v26 = vadd.f32 %v5911_v21, %v1614_v33  ;;  %v1886_v1 = vpop.permute.xlu1 %1885 }
 0x563   : > { %v2407_v60 = vadd.f32 %v2402_v43, %v2386_v18  ;;  %v1645_v20 = vadd.f32 %v5912_v59, %v1631_v26  ;;  %v1921_v11 = vpop.permute.xlu0 %1920 }
 0x565   : > { %v2428_v34 = vadd.f32 %v2423_v46, %v2407_v60  ;;  %v1666_v38 = vadd.f32 %v5913_v25, %v1645_v20 }
 0x567   : > { %v1687_v15 = vadd.f32 %v5154_v10, %v1666_v38  ;;  %v2449_v30 = vadd.f32 %v2444_v48, %v2428_v34  ;;  %v2061_v41 = vpop.permute.xlu2 %2060 }
 0x569   : > { %v1708_v57 = vadd.f32 %v5178_v51, %v1687_v15  ;;  %v2465_v32 = vpop.permute.xlu1 %2464 }
 0x56a   : > { %v2470_v29 = vadd.f32 %v2465_v32, %v2449_v30 }
 0x56b   : > { %v1729_v58 = vadd.f32 %v5164_v7, %v1708_v57  ;;  %v1984_v10 = vpop.permute.xlu0 %1983 }
 0x56c   : > { %v2866_v24 = vmul.f32 -1.442695, %v2470_v29 }
 0x56d   : > { %v1750_v61 = vadd.f32 %v5182_v8, %v1729_v58 }
 0x56e   : > { %2975 = vpow2.f32 %v2866_v24 }
 0x56f   : > { %v1771_v0 = vadd.f32 %v5198_v53, %v1750_v61  ;;  %v2124_v27 = vpop.permute.xlu2 %2123 }
 0x571   : > { %v1785_v45 = vadd.f32 %v5188_v28, %v1771_v0  ;;  %v1963_v28 = vpop.permute.xlu1 %1962 }
 0x573   : > { %v1806_v17 = vadd.f32 %v5202_v14, %v1785_v45  ;;  %v2047_v36 = vpop.permute.xlu0 %2046 }
 0x574   : > { %v2976_v42 = vpop.eup %2975 }
 0x575   : > { %v1827_v56 = vadd.f32 %v1823_v19, %v1806_v17  ;;  %v2478_v51 = vadd.f32 1.0, %v2976_v42 }
 0x577   : > { %v1848_v5 = vadd.f32 %v1844_v63, %v1827_v56  ;;  %2977 = vrcp.f32 %v2478_v51  ;;  %v2491_v16 = vand.u32 2147483648, %v2478_v51  ;;  %v2489_v14 = vand.u32 2147483647, %v2478_v51  ;;  %v2187_v13 = vpop.permute.xlu2 %2186 }
 0x578   : > { %vm2485_vm7 = vweird.f32 %v2478_v51 }
 0x579   : > { %v1869_v7 = vadd.f32 %v1865_v6, %v1848_v5  ;;  %v2492_v55 = vor.u32 1.1754944e-38, %v2491_v16  ;;  %vm2490_vm9 = vcmp.eq.f32.partialorder %v2489_v14, 8.507059e+37  ;;  %v2026_v62 = vpop.permute.xlu1 %2025 }
 0x57b   : > { %v1890_v40 = vadd.f32 %v1886_v1, %v1869_v7  ;;  %v2103_v35 = vpop.permute.xlu0 %2102 }
 0x57d   : > { %v1911_v23 = vadd.f32 %v1907_v54, %v1890_v40  ;;  %v2978_v8 = vpop.eup %2977 }
 0x57e   : > { %v2481_v31 = vmul.f32 %v2978_v8, %v2478_v51  ;;  %vm2486_vm3 = vweird.f32 %v2978_v8 }
 0x57f   : > { %v1925_v53 = vadd.f32 %v1921_v11, %v1911_v23  ;;  %vm2487_vm8 = vmor %vm2485_vm7, %vm2486_vm3  ;;  %v2243_v34 = vpop.permute.xlu2 %2242 }
 0x580   : > { %v2482_v50 = vsub.f32 1.0, %v2481_v31 }
 0x581   : > { %v1946_v12 = vadd.f32 %v1942_v37, %v1925_v53  ;;  %v2082_v49 = vpop.permute.xlu1 %2081 }
 0x582   : > { %v2483_v22 = vmul.f32 %v2978_v8, %v2482_v50 }
 0x583   : > { %v1967_v63 = vadd.f32 %v1963_v28, %v1946_v12  ;;  %v2166_v9 = vpop.permute.xlu0 %2165 }
 0x584   : > { %v2484_v19 = vadd.f32 %v2978_v8, %v2483_v22 }
 0x585   : > { %v1988_v4 = vadd.f32 %v1984_v10, %v1967_v63 }
 0x586   : > { %v2488_v52 = vsel %vm2487_vm8, %v2978_v8, %v2484_v19 }
 0x587   : > { %v5235_v6 = vsel %vm2490_vm9, %v2492_v55, %v2488_v52  ;;  %v2009_v39 = vadd.f32 %v2005_v47, %v1988_v4  ;;  %v2306_v57 = vpop.permute.xlu2 %2305 }
 0x588   : > { %2516 = vst [vmem:[#allocation1] sm:$0xff] %v5235_v6 }
 0x589   : > { %v2030_v44 = vadd.f32 %v2026_v62, %v2009_v39  ;;  %v2145_v48 = vpop.permute.xlu1 %2144  ;;  %v5914_v62 = vlaneseq }
 0x58b   : > { %v2051_v46 = vadd.f32 %v2047_v36, %v2030_v44  ;;  %v2222_v26 = vpop.permute.xlu0 %2221  ;;  %vm2512_vm14 = vcmp.lt.s32.totalorder %v5914_v62, 16  ;;  %vm5253_vm15 = vcmp.ge.s32.totalorder %v5914_v62, 16  ;;  %vm5258_vm0 = vcmp.lt.s32.totalorder %v5914_v62, 32 }
 0x58c   : > { %2514 = vst.msk [vmem:[#allocation3] sm:$0x1] %vm2512_vm14, %v5235_v6  ;;  %vm2524_vm1 = vmand %vm5253_vm15, %vm5258_vm0  ;;  %vm5276_vm2 = vcmp.ge.s32.totalorder %v5914_v62, 32  ;;  %vm5281_vm4 = vcmp.lt.s32.totalorder %v5914_v62, 48  ;;  %vm5296_vm6 = vcmp.ge.s32.totalorder %v5914_v62, 48  ;;  %vm5301_vm3 = vcmp.lt.s32.totalorder %v5914_v62, 64 }
 0x58d   : > { %v2065_v43 = vadd.f32 %v2061_v41, %v2051_v46  ;;  %vm2534_vm5 = vmand %vm5276_vm2, %vm5281_vm4  ;;  %vm5316_vm8 = vcmp.ge.s32.totalorder %v5914_v62, 64  ;;  %vm5321_vm9 = vcmp.lt.s32.totalorder %v5914_v62, 80 }
 0x58e   : > { %vm5574_vm7 = vmand %vm5296_vm6, %vm5301_vm3 }
 0x58f   : > { %v2518_v18 = vld [vmem:[#allocation1 + $0x1] ss:$9 sm:$0xff]  ;;  %v2086_v2 = vadd.f32 %v2082_v49, %v2065_v43  ;;  %v2362_v0 = vpop.permute.xlu2 %2361  ;;  %vm5939_vm15 = vmand %vm5296_vm6, %vm5301_vm3 }
 0x590   : > { %2526 = vst [vmem:[#allocation1] sm:$0xff] %v5235_v6  ;;  %2519 = vrot.lane.b32.xlu2 %v2518_v18, %s3129_s23  ;;  %vm5940_vm0 = vmand %vm5316_vm8, %vm5321_vm9 }
 0x591   : > { %v2107_v3 = vadd.f32 %v2103_v35, %v2086_v2  ;;  %v2201_v54 = vpop.permute.xlu1 %2200 }
 0x593   : > { %v2128_v33 = vadd.f32 %v2124_v27, %v2107_v3  ;;  %v2285_v15 = vpop.permute.xlu0 %2284 }
 0x595   : > { %v2149_v21 = vadd.f32 %v2145_v48, %v2128_v33 }
 0x597   : > { %v2528_v60 = vld [vmem:[#allocation1 + $0x2] ss:$9 sm:$0xff]  ;;  %v2170_v1 = vadd.f32 %v2166_v9, %v2149_v21  ;;  %v2425_v5 = vpop.permute.xlu2 %2424 }
 0x598   : > { %2536 = vst [vmem:[#allocation1] sm:$0xff] %v5235_v6  ;;  %2529 = vrot.lane.b32.xlu0 %v2528_v60, %s3130_s7 }
 0x599   : > { %v2191_v59 = vadd.f32 %v2187_v13, %v2170_v1  ;;  %v2264_v11 = vpop.permute.xlu1 %2263 }
 0x59b   : > { %v2205_v25 = vadd.f32 %v2201_v54, %v2191_v59  ;;  %v2341_v61 = vpop.permute.xlu0 %2340 }
 0x59d   : > { %v2226_v38 = vadd.f32 %v2222_v26, %v2205_v25 }
 0x59f   : > { %v2538_v20 = vld [vmem:[#allocation1 + $0x3] ss:$9 sm:$0xff]  ;;  %v2247_v30 = vadd.f32 %v2243_v34, %v2226_v38 }
 0x5a0   : > { %2546 = vst [vmem:[#allocation1] sm:$0xff] %v5235_v6  ;;  %2539 = vrot.lane.b32.xlu1 %v2538_v20, %s3131_s11 }
 0x5a1   : > { %v2268_v32 = vadd.f32 %v2264_v11, %v2247_v30  ;;  %v2327_v24 = vpop.permute.xlu1 %2326 }
 0x5a3   : > { %v2289_v58 = vadd.f32 %v2285_v15, %v2268_v32  ;;  %v2404_v10 = vpop.permute.xlu0 %2403  ;;  %v5937_v15 = vmov 0 }
 0x5a5   : > { %v2310_v29 = vadd.f32 %v2306_v57, %v2289_v58 }
 0x5a7   : > { %v2331_v37 = vadd.f32 %v2327_v24, %v2310_v29  ;;  %v2548_v40 = vld [vmem:[#allocation1 + $0x4] ss:$9 sm:$0xff] }
 0x5a8   : > { %2549 = vrot.lane.b32.xlu2 %v2548_v40, %s3132_s30  ;;  %2556 = vst [vmem:[#allocation1] sm:$0xff] %v5235_v6 }
 0x5a9   : > { %v2345_v45 = vadd.f32 %v2341_v61, %v2331_v37  ;;  %v2383_v42 = vpop.permute.xlu1 %2382 }
 0x5ab   : > { %v2366_v17 = vadd.f32 %v2362_v0, %v2345_v45  ;;  %v2467_v8 = vpop.permute.xlu0 %2466 }
 0x5ad   : > { %v2387_v56 = vadd.f32 %v2383_v42, %v2366_v17 }
 0x5af   : > { %v2408_v51 = vadd.f32 %v2404_v10, %v2387_v56  ;;  %v2558_v50 = vld [vmem:[#allocation1 + $0x5] ss:$9 sm:$0xff] }
 0x5b0   : > { %2559 = vrot.lane.b32.xlu0 %v2558_v50, %s3133_s10  ;;  %2566 = vst [vmem:[#allocation1] sm:$0xff] %v5235_v6  ;;  %v5945_v10 = vld [vmem:[#allocation13_spill] sm:$0xff]  ;;  %v5946_v56 = vld [vmem:[#allocation16_spill] sm:$0xff] }
 0x5b1   : > { %v2429_v47 = vadd.f32 %v2425_v5, %v2408_v51  ;;  %v2446_v7 = vpop.permute.xlu1 %2445  ;;  %v5947_v5 = vld [vmem:[#allocation14_spill] sm:$0xff] }
 0x5b3   : > { %v2450_v23 = vadd.f32 %v2446_v7, %v2429_v47  ;;  %v5948_v7 = vld [vmem:[#allocation15_spill] sm:$0xff] }
 0x5b5   : > { %v2471_v36 = vadd.f32 %v2467_v8, %v2450_v23 }
 0x5b7   : > { %v2867_v31 = vmul.f32 -1.442695, %v2471_v36  ;;  %v2568_v16 = vld [vmem:[#allocation1 + $0x6] ss:$9 sm:$0xff] }
 0x5b8   : > { %2569 = vrot.lane.b32.xlu1 %v2568_v16, %s3134_s20  ;;  %2576 = vst [vmem:[#allocation1] sm:$0xff] %v5235_v6 }
 0x5b9   : > { %2979 = vpow2.f32 %v2867_v31 }
 0x5bf   : > { %v2980_v53 = vpop.eup %2979  ;;  %v2578_v39 = vld [vmem:[#allocation1 + $0x7] ss:$9 sm:$0xff] }
 0x5c0   : > { %v2479_v41 = vadd.f32 1.0, %v2980_v53 }
 0x5c2   : > { %2981 = vrcp.f32 %v2479_v41  ;;  %v2506_v12 = vand.u32 2147483648, %v2479_v41  ;;  %v2504_v63 = vand.u32 2147483647, %v2479_v41  ;;  %vm2500_vm11 = vweird.f32 %v2479_v41 }
 0x5c4   : > { %v2507_v52 = vor.u32 1.1754944e-38, %v2506_v12  ;;  %vm2505_vm13 = vcmp.eq.f32.partialorder %v2504_v63, 8.507059e+37 }
 0x5c8   : > { %v2982_v28 = vpop.eup %2981 }
 0x5c9   : > { %v2496_v22 = vmul.f32 %v2982_v28, %v2479_v41  ;;  %vm2501_vm10 = vweird.f32 %v2982_v28 }
 0x5ca   : > { %vm2502_vm12 = vmor %vm2500_vm11, %vm2501_vm10  ;;  %vm5335_vm11 = vcmp.ge.s32.totalorder %v5914_v62, 80 }
 0x5cb   : > { %v2497_v14 = vsub.f32 1.0, %v2496_v22  ;;  %vm5573_vm10 = vmand %vm5316_vm8, %vm5321_vm9 }
 0x5cd   : > { %v2498_v19 = vmul.f32 %v2982_v28, %v2497_v14 }
 0x5cf   : > { %v2499_v55 = vadd.f32 %v2982_v28, %v2498_v19 }
 0x5d1   : > { %v2503_v4 = vsel %vm2502_vm12, %v2982_v28, %v2499_v55  ;;  %vm5340_vm12 = vcmp.lt.s32.totalorder %v5914_v62, 96 }
 0x5d2   : > { %v2508_v35 = vsel %vm2505_vm13, %v2507_v52, %v2503_v4  ;;  %vm5575_vm13 = vmand %vm5335_vm11, %vm5340_vm12 }
 0x5d3   : > { %2588 = vst [vmem:[#allocation1] sm:$0xff] %v2508_v35 }
 0x5d4   : > { %2586 = vst.msk [vmem:[#allocation3 + $0x1] sm:$0x1] %vm2512_vm14, %v2508_v35  ;;  %vm5354_vm14 = vcmp.ge.s32.totalorder %v5914_v62, 96 }
 0x5da   : > { %v2590_v46 = vld [vmem:[#allocation1 + $0x1] ss:$9 sm:$0xff] }
 0x5db   : > { %2591 = vrot.lane.b32.xlu1 %v2590_v46, %s3129_s23  ;;  %2595 = vst [vmem:[#allocation1] sm:$0xff] %v2508_v35 }
 0x5e2   : > { %v2597_v43 = vld [vmem:[#allocation1 + $0x2] ss:$9 sm:$0xff] }
 0x5e3   : > { %2598 = vrot.lane.b32.xlu2 %v2597_v43, %s3130_s7  ;;  %2602 = vst [vmem:[#allocation1] sm:$0xff] %v2508_v35 }
 0x5ea   : > { %v2520_v6 = vpop.permute.xlu2 %2519  ;;  %v2604_v18 = vld [vmem:[#allocation1 + $0x3] ss:$9 sm:$0xff] }
 0x5eb   : > { %2525 = vst.msk [vmem:[#allocation3] sm:$0x1] %vm2524_vm1, %v2520_v6  ;;  %2605 = vrot.lane.b32.xlu0 %v2604_v18, %s3131_s11 }
 0x5ec   : > { %2609 = vst [vmem:[#allocation1] sm:$0xff] %v2508_v35 }
 0x5f3   : > { %v2611_v9 = vld [vmem:[#allocation1 + $0x4] ss:$9 sm:$0xff] }
 0x5f4   : > { %2612 = vrot.lane.b32.xlu1 %v2611_v9, %s3132_s30  ;;  %2616 = vst [vmem:[#allocation1] sm:$0xff] %v2508_v35 }
 0x5fb   : > { %v2618_v3 = vld [vmem:[#allocation1 + $0x5] ss:$9 sm:$0xff] }
 0x5fc   : > { %2619 = vrot.lane.b32.xlu2 %v2618_v3, %s3133_s10  ;;  %2623 = vst [vmem:[#allocation1] sm:$0xff] %v2508_v35 }
 0x602   : > { %v2550_v20 = vpop.permute.xlu2 %2549 }
 0x603   : > { %v2625_v48 = vld [vmem:[#allocation1 + $0x6] ss:$9 sm:$0xff] }
 0x604   : > { %2579 = vrot.lane.b32.xlu2 %v2578_v39, %s3135_s22  ;;  %2626 = vrot.lane.b32.xlu0 %v2625_v48, %s3134_s20  ;;  %2630 = vst [vmem:[#allocation1] sm:$0xff] %v2508_v35 }
 0x60a   : > { %v2530_v13 = vpop.permute.xlu0 %2529 }
 0x60b   : > { %2535 = vst.msk [vmem:[#allocation3] sm:$0x1] %vm2534_vm5, %v2530_v13  ;;  %v2632_v59 = vld [vmem:[#allocation1 + $0x7] ss:$9 sm:$0xff] }
 0x60c   : > { %2633 = vrot.lane.b32.xlu1 %v2632_v59, %s3135_s22 }
 0x612   : > { %v2540_v21 = vpop.permute.xlu1 %2539 }
 0x613   : > { %2545 = vst.msk [vmem:[#allocation3] sm:$0x1] %vm5574_vm7, %v2540_v21 }
 0x614   : > { %2555 = vst.msk [vmem:[#allocation3] sm:$0x1] %vm5573_vm10, %v2550_v20  ;;  %vm5359_vm10 = vcmp.lt.s32.totalorder %v5914_v62, 112 }
 0x615   : > { %v5938_v15 = vsel %vm5359_vm10, 4294967295, %v5937_v15  ;;  %vm5576_vm7 = vmand %vm5354_vm14, %vm5359_vm10 }
 0x616   : > { %vm5942_vm2 = vnez %v5938_v15 }
 0x617   : > { %vm5943_vm4 = vmand %vm5354_vm14, %vm5942_vm2 }
 0x622   : > { %v2560_v25 = vpop.permute.xlu0 %2559 }
 0x623   : > { %2565 = vst.msk [vmem:[#allocation3] sm:$0x1] %vm5575_vm13, %v2560_v25  ;;  %vm2582_vm13 = vcmp.ge.s32.totalorder %v5914_v62, 112 }
 0x62a   : > { %v2570_v30 = vpop.permute.xlu1 %2569 }
 0x62b   : > { %2575 = vst.msk [vmem:[#allocation3] sm:$0x1] %vm5576_vm7, %v2570_v30  ;;  %vm2583_vm7 = vcmp.lt.s32.totalorder %v5914_v62, 128 }
 0x62c   : > { %vm2584_vm10 = vmand %vm2582_vm13, %vm2583_vm7 }
 0x63d   : > { %v2599_v57 = vpop.permute.xlu2 %2598 }
 0x64d   : > { %v2592_v11 = vpop.permute.xlu1 %2591 }
 0x64e   : > { %2594 = vst.msk [vmem:[#allocation3 + $0x1] sm:$0x1] %vm2524_vm1, %v2592_v11  ;;  %vm5941_vm1 = vmand %vm5335_vm11, %vm5340_vm12 }
 0x64f   : > { %2601 = vst.msk [vmem:[#allocation3 + $0x1] sm:$0x1] %vm2534_vm5, %v2599_v57 }
 0x656   : > { %v2620_v32 = vpop.permute.xlu2 %2619 }
 0x65d   : > { %v2606_v58 = vpop.permute.xlu0 %2605 }
 0x65e   : > { %v2580_v29 = vpop.permute.xlu2 %2579  ;;  %2608 = vst.msk [vmem:[#allocation3 + $0x1] sm:$0x1] %vm5939_vm15, %v2606_v58 }
 0x65f   : > { %2585 = vst.msk [vmem:[#allocation3] sm:$0x1] %vm2584_vm10, %v2580_v29 }
 0x666   : > { %v2613_v61 = vpop.permute.xlu1 %2612 }
 0x667   : > { %2615 = vst.msk [vmem:[#allocation3 + $0x1] sm:$0x1] %vm5940_vm0, %v2613_v61 }
 0x668   : > { %2622 = vst.msk [vmem:[#allocation3 + $0x1] sm:$0x1] %vm5941_vm1, %v2620_v32 }
 0x676   : > { %v2627_v24 = vpop.permute.xlu0 %2626 }
 0x677   : > { %2629 = vst.msk [vmem:[#allocation3 + $0x1] sm:$0x1] %vm5943_vm4, %v2627_v24 }
 0x67e   : > { %v2634_v37 = vpop.permute.xlu1 %2633 }
 0x67f   : > { %2636 = vst.msk [vmem:[#allocation3 + $0x1] sm:$0x1] %vm2584_vm10, %v2634_v37 }
 0x686   : > { %v2637_v0 = vld [vmem:[#allocation3] sm:$0x3] }
 0x687   : > { %v2639_v45 = vperm.slane %v2637_v0, 0  ;;  %v2640_v17 = vperm.slane %v2637_v0, 1 }
 0x689   : > { %v2643_v42 = vmul.f32 %v2639_v45, %v5945_v10  ;;  %v2644_v51 = vmul.f32 %v2640_v17, %v5946_v56  ;;  %v2645_v47 = vmul.f32 %v2639_v45, %v5947_v5  ;;  %v2646_v40 = vmul.f32 %v2640_v17, %v5948_v7 }
 0x68b   : > { %2647 = vst [vmem:[%s231_s2] sm:$0xff] %v2643_v42 }
 0x68c   : > { %2648 = vst [vmem:[%s231_s2 + $0x8] sm:$0xff] %v2644_v51 }
 0x68d   : > { %2649 = vst [vmem:[%s231_s2 + $0x10] sm:$0xff] %v2645_v47 }
 0x68e   : > { %2650 = vst [vmem:[%s231_s2 + $0x18] sm:$0xff] %v2646_v40 }
 0x68f   : > { %3063 = shalt.err (!%p3060_p8)
}
 0x690   : > { %s3136_s14 = smov 256  }
 0x691   : > { %2882 = dma.vmem_to_hbm [thread:$0]  (%p3214_p11), %s2665_s13, 512, %s2667_s9, %s2652_s19, %s3136_s14, %s3136_s14, %s3129_s23  }
 0x692 PF: > { %s2681_s30 = sand.u32 1, %s3094_s15   ;;  %p5949_p9 = scmp.ge.s32.totalorder %s3106_s18, 2 }
 0x693   : > { %s2682_s10 = scalar_lea.sflag [#allocation6], %s2681_s30 }
 0x694   : > { %p2893_p10 = pnand %p5949_p9, %p3218_p12 }
 0x696   : > { %p2894_p1 = pneg %p2893_p10 }
 0x698   : > { %3089 = dma.done.wait (%p2894_p1), %s2682_s10, 512  }
 0x699   : > { %3091 = vsyncadd (%p2894_p1), %s2682_s10, 4294966784  ;;  %p18_p2 = scmp.ge.s32.totalorder %s3187_s21, 4   ;;  %s5950_s15 = smov %s3098_s16 }
 0x69a   : > { %s5951_s16 = smov %s3102_s17  ;;  %s5952_s17 = smov %s3199_s24 }
 0x69b   : > { %s5953_s18 = smov %s3187_s21  ;;  %20 = sbr.rel (!%p18_p2) target bundleno = 11 (0xb), region = 101 }
 0x6a0   :  { %2688 = vsyncpa [#allocation5], 1 }
 0x6a1   :  { %2690 = vsyncpa [#allocation5 + $0x1], 1 }
 0x6a2   :  { %2691 = vsyncpa [#allocation6], 1 }
 0x6a3   :  { %2693 = vsyncpa [#allocation6 + $0x1], 1 }
 0x6a4   :  { %2694 = vsyncpa [#allocation7], 1 }
 0x6a5   :  { %2696 = vsyncpa [#allocation7 + $0x1], 1 }

</bundles_post_ra>
